<compile_context>
chip_gen: v5e
topology: v5e:2x2
jax: 0.10.0
libtpu: 0.0.40
codegen_flags: <defaults>
</compile_context>

<pallas_src>
import jax
import jax.numpy as jnp
from jax.experimental import pallas as pl
from jax.experimental.pallas import tpu as pltpu


# ------------------------------ fused kernel --------------------------------

def srcnn_fused_kernel(x_ref, w1l_ref, w2_ref, w3_ref, bn_ref, rct_ref,
                       o_ref, a1p_ref, a2_ref):
    n = x_ref.shape[0]        # samples per grid step (1)
    f32 = jnp.float32

    # ---- conv1 (9x9 valid) + BN1 + ReLU ------------------------------------
    # w1l[dy] : [16(in width), 8(out width)*128(cout)] width-lowered weights.
    acc1 = jnp.zeros((n * 8, 8 * 128), f32)                 # rows=(n,oy)
    for dy in range(9):
        a = x_ref[:, dy:dy + 8, :].reshape(n * 8, 16)
        acc1 = acc1 + jnp.dot(a, w1l_ref[dy], preferred_element_type=f32)
    a1 = jnp.maximum(acc1 * bn_ref[0:1, :] + bn_ref[1:2, :], 0.0)

    # Zero-padded NHWC activation for conv2 (padding=1), VMEM resident.
    a1p_ref[...] = jnp.zeros_like(a1p_ref)
    for ox in range(8):                                     # lane-tile -> width
        a1p_ref[:, 1:9, 1 + ox, :] = (
            a1[:, ox * 128:(ox + 1) * 128].reshape(n, 8, 128))

    # ---- conv2 (3x3, pad=1) + BN2 + ReLU -----------------------------------
    acc2 = jnp.zeros((n * 64, 64), f32)                     # rows=(n,oy,ox)
    for k in range(9):
        dy, dx = divmod(k, 3)
        sl = a1p_ref[:, dy:dy + 8, dx:dx + 8, :].reshape(n * 64, 128)
        acc2 = acc2 + jnp.dot(sl, w2_ref[k], preferred_element_type=f32)
    a2 = jnp.maximum(acc2 * bn_ref[2:3, 0:64] + bn_ref[3:4, 0:64], 0.0)
    a2_ref[...] = a2.reshape(n, 8, 8, 64)

    # ---- conv3 (5x5 valid, Cout=1) -----------------------------------------
    # Accumulate the 25 weighted taps elementwise (VPU), reduce channels once.
    acc3 = jnp.zeros((n, 16, 64), f32)                      # dims=(n,(oy,ox),c)
    for k in range(25):
        dy, dx = divmod(k, 5)
        sl = a2_ref[:, dy:dy + 4, dx:dx + 4, :].reshape(n, 16, 64)
        acc3 = acc3 + sl * w3_ref[k:k + 1, :]
    v = jnp.sum(acc3, axis=-1) + bn_ref[3:4, 64:65]         # + conv3 bias

    # ---- bilinear resize to 20x20 as one lane-dense matmul ------------------
    out = jnp.dot(v, rct_ref[...], preferred_element_type=f32)   # [n,400]
    o_ref[...] = out.reshape(o_ref.shape)


# ---------------------------- parameter prep --------------------------------

def _bilinear_resize_matrix(out_size, in_size):
    """Row-stochastic resize matrix matching F.interpolate(mode='bilinear',
    align_corners=False)."""
    dst = jnp.arange(out_size, dtype=jnp.float32)
    src = (dst + 0.5) * (in_size / out_size) - 0.5
    src = jnp.clip(src, 0.0, float(in_size - 1))
    i0 = jnp.clip(jnp.floor(src).astype(jnp.int32), 0, in_size - 1)
    i1 = jnp.minimum(i0 + 1, in_size - 1)
    frac = src - i0.astype(jnp.float32)
    rows = jnp.arange(out_size)
    r = jnp.zeros((out_size, in_size), jnp.float32)
    r = r.at[rows, i0].add(1.0 - frac)
    r = r.at[rows, i1].add(frac)
    return r


def init_params(key):
    def kaiming_fan_out(k, cout, cin, kh, kw):
        std = (2.0 / (cout * kh * kw)) ** 0.5          # gain=sqrt(2), fan_out
        return jax.random.normal(k, (cout, cin, kh, kw), jnp.float32) * std

    def conv_bias(k, cin, kh, kw, cout):
        bound = 1.0 / ((cin * kh * kw) ** 0.5)          # PyTorch default bias init
        return jax.random.uniform(k, (cout,), jnp.float32, -bound, bound)

    ks = jax.random.split(key, 6)
    return {
        "conv1_w": kaiming_fan_out(ks[0], 128, 1, 9, 9),
        "conv1_b": conv_bias(ks[1], 1, 9, 9, 128),
        "conv2_w": kaiming_fan_out(ks[2], 64, 128, 3, 3),
        "conv2_b": conv_bias(ks[3], 128, 3, 3, 64),
        "conv3_w": kaiming_fan_out(ks[4], 1, 64, 5, 5),
        "conv3_b": conv_bias(ks[5], 64, 5, 5, 1),
        # BatchNorm2d defaults (eval mode)
        "bn1_gamma": jnp.ones((128,), jnp.float32),
        "bn1_beta": jnp.zeros((128,), jnp.float32),
        "bn1_mean": jnp.zeros((128,), jnp.float32),
        "bn1_var": jnp.ones((128,), jnp.float32),
        "bn2_gamma": jnp.ones((64,), jnp.float32),
        "bn2_beta": jnp.zeros((64,), jnp.float32),
        "bn2_mean": jnp.zeros((64,), jnp.float32),
        "bn2_var": jnp.ones((64,), jnp.float32),
    }


# --------------------------------- forward ----------------------------------

def srcnn_forward(x_nchw, params):
    eps = 1e-5
    f32 = jnp.float32
    n = x_nchw.shape[0]
    x = x_nchw[:, 0, :, :].astype(f32)                      # Cin=1 -> [N,16,16]

    # Fold conv bias + eval-mode BatchNorm into per-channel scale / shift.
    s1 = params["bn1_gamma"] / jnp.sqrt(params["bn1_var"] + eps)
    t1 = (params["conv1_b"] - params["bn1_mean"]) * s1 + params["bn1_beta"]
    s2 = params["bn2_gamma"] / jnp.sqrt(params["bn2_var"] + eps)
    t2 = (params["conv2_b"] - params["bn2_mean"]) * s2 + params["bn2_beta"]

    # conv1 weights with the width (dx) dimension lowered into the matrix:
    # w1l[dy, ix, ox*128+co] = w1[co, 0, dy, ix-ox]  (0 <= ix-ox < 9)
    w1_dxc = jnp.transpose(params["conv1_w"][:, 0], (1, 2, 0))       # [9,9,128]
    w1l = jnp.zeros((9, 16, 8, 128), f32)
    for ox in range(8):
        w1l = w1l.at[:, ox:ox + 9, ox, :].set(w1_dxc)
    w1l = w1l.reshape(9, 16, 8 * 128)

    w2t = jnp.transpose(params["conv2_w"], (2, 3, 1, 0)).reshape(9, 128, 64)
    w3t = jnp.transpose(params["conv3_w"], (2, 3, 1, 0)).reshape(25, 64)

    # Packed per-channel affine params + conv3 bias (single VMEM operand).
    bn = jnp.zeros((4, 8 * 128), f32)
    bn = bn.at[0].set(jnp.tile(s1, 8))        # conv1 scale, (ox,co) layout
    bn = bn.at[1].set(jnp.tile(t1, 8))        # conv1 shift
    bn = bn.at[2, :64].set(s2)                # conv2 scale
    bn = bn.at[3, :64].set(t2)                # conv2 shift
    bn = bn.at[3, 64].set(params["conv3_b"][0])   # conv3 bias

    # Combined bilinear resize operator: out[N,400] = v[N,16] @ kron(Rh,Rw)^T
    rh = _bilinear_resize_matrix(20, 4)
    rw = _bilinear_resize_matrix(20, 4)
    rct = jnp.transpose(jnp.kron(rh, rw))                            # [16,400]

    out = pl.pallas_call(
        srcnn_fused_kernel,
        out_shape=jax.ShapeDtypeStruct((n, 1, 400), f32),
        grid_spec=pltpu.PrefetchScalarGridSpec(
            num_scalar_prefetch=0,
            grid=(n,),
            in_specs=[
                pl.BlockSpec((1, 16, 16), lambda i: (i, 0, 0)),       # x
                pl.BlockSpec((9, 16, 1024), lambda i: (0, 0, 0)),     # w1l
                pl.BlockSpec((9, 128, 64), lambda i: (0, 0, 0)),      # w2t
                pl.BlockSpec((25, 64), lambda i: (0, 0)),             # w3t
                pl.BlockSpec((4, 1024), lambda i: (0, 0)),            # bn
                pl.BlockSpec((16, 400), lambda i: (0, 0)),            # rct
            ],
            out_specs=pl.BlockSpec((1, 1, 400), lambda i: (i, 0, 0)),
            scratch_shapes=[
                pltpu.VMEM((1, 10, 10, 128), f32),   # padded conv1 activation
                pltpu.VMEM((1, 8, 8, 64), f32),      # conv2 activation
            ],
        ),
        compiler_params=pltpu.CompilerParams(
            dimension_semantics=("parallel",)),
    )(x, w1l, w2t, w3t, bn, rct)
    return out.reshape(n, 1, 20, 20)                         # NCHW


# ----------------------------------- main ------------------------------------

if __name__ == "__main__":
    key = jax.random.PRNGKey(0)
    k_param, k_input = jax.random.split(key)
    params = init_params(k_param)
    x = jax.random.normal(k_input, (2, 1, 16, 16), jnp.float32)     # NCHW, Cin=1

    y = jax.jit(srcnn_forward)(x, params)
    y = jax.block_until_ready(y)
    assert y.shape == (2, 1, 20, 20), y.shape
    assert jnp.all(jnp.isfinite(y))
    print("KERNEL_OK")
</pallas_src>

<mosaic_0001>
module attributes {stable_mosaic.version = 11 : i64} {
  func.func @srcnn_fused_kernel(%arg0: i32, %arg1: memref<1x16x16xf32, #tpu.memory_space<vmem>>, %arg2: memref<9x16x1024xf32, #tpu.memory_space<vmem>>, %arg3: memref<9x128x64xf32, #tpu.memory_space<vmem>>, %arg4: memref<25x64xf32, #tpu.memory_space<vmem>>, %arg5: memref<4x1024xf32, #tpu.memory_space<vmem>>, %arg6: memref<16x400xf32, #tpu.memory_space<vmem>>, %arg7: memref<1x1x400xf32, #tpu.memory_space<vmem>>, %arg8: memref<1x10x10x128xf32, #tpu.memory_space<vmem>>, %arg9: memref<1x8x8x64xf32, #tpu.memory_space<vmem>>) attributes {dimension_semantics = [#tpu.dimension_semantics<parallel>], iteration_bounds = array<i64: 2>, scalar_prefetch = 0 : i64, scratch_operands = 2 : i64, tpu.core_type = #tpu.core_type<tc>, window_params = [{transform_indices = @transform_0, window_bounds = array<i64: 1, 16, 16>}, {pipeline_mode = #tpu.pipeline_mode<synchronous>, transform_indices = @transform_1, window_bounds = array<i64: 9, 16, 1024>}, {pipeline_mode = #tpu.pipeline_mode<synchronous>, transform_indices = @transform_2, window_bounds = array<i64: 9, 128, 64>}, {pipeline_mode = #tpu.pipeline_mode<synchronous>, transform_indices = @transform_3, window_bounds = array<i64: 25, 64>}, {pipeline_mode = #tpu.pipeline_mode<synchronous>, transform_indices = @transform_4, window_bounds = array<i64: 4, 1024>}, {pipeline_mode = #tpu.pipeline_mode<synchronous>, transform_indices = @transform_5, window_bounds = array<i64: 16, 400>}, {transform_indices = @transform_6, window_bounds = array<i64: 1, 1, 400>}]} {
    %cst = arith.constant 0.000000e+00 : f32
    %0 = vector.broadcast %cst : f32 to vector<8x1024xf32>
    %c0 = arith.constant 0 : index
    %c0_0 = arith.constant 0 : index
    %c0_1 = arith.constant 0 : index
    %1 = vector.load %arg1[%c0, %c0_0, %c0_1] : memref<1x16x16xf32, #tpu.memory_space<vmem>>, vector<1x8x16xf32>
    %2 = vector.shape_cast %1 : vector<1x8x16xf32> to vector<8x16xf32>
    %c0_2 = arith.constant 0 : index
    %c0_3 = arith.constant 0 : index
    %c0_4 = arith.constant 0 : index
    %3 = vector.load %arg2[%c0_2, %c0_3, %c0_4] : memref<9x16x1024xf32, #tpu.memory_space<vmem>>, vector<1x16x1024xf32>
    %4 = vector.shape_cast %3 : vector<1x16x1024xf32> to vector<16x1024xf32>
    %cst_5 = arith.constant dense<0.000000e+00> : vector<8x1024xf32>
    %5 = tpu.matmul %2, %4, %cst_5 {dimension_numbers = #tpu.dot_dimension_numbers<[1], [0], [0], [1], [0, 0, 1, 1], [], []>} : vector<8x16xf32>, vector<16x1024xf32>, vector<8x1024xf32> -> vector<8x1024xf32>
    %6 = arith.addf %0, %5 : vector<8x1024xf32>
    %c0_6 = arith.constant 0 : index
    %c1 = arith.constant 1 : index
    %c0_7 = arith.constant 0 : index
    %7 = vector.load %arg1[%c0_6, %c1, %c0_7] : memref<1x16x16xf32, #tpu.memory_space<vmem>>, vector<1x8x16xf32>
    %8 = vector.shape_cast %7 : vector<1x8x16xf32> to vector<8x16xf32>
    %c1_8 = arith.constant 1 : index
    %c0_9 = arith.constant 0 : index
    %c0_10 = arith.constant 0 : index
    %9 = vector.load %arg2[%c1_8, %c0_9, %c0_10] : memref<9x16x1024xf32, #tpu.memory_space<vmem>>, vector<1x16x1024xf32>
    %10 = vector.shape_cast %9 : vector<1x16x1024xf32> to vector<16x1024xf32>
    %cst_11 = arith.constant dense<0.000000e+00> : vector<8x1024xf32>
    %11 = tpu.matmul %8, %10, %cst_11 {dimension_numbers = #tpu.dot_dimension_numbers<[1], [0], [0], [1], [0, 0, 1, 1], [], []>} : vector<8x16xf32>, vector<16x1024xf32>, vector<8x1024xf32> -> vector<8x1024xf32>
    %12 = arith.addf %6, %11 : vector<8x1024xf32>
    %c0_12 = arith.constant 0 : index
    %c2 = arith.constant 2 : index
    %c0_13 = arith.constant 0 : index
    %13 = vector.load %arg1[%c0_12, %c2, %c0_13] : memref<1x16x16xf32, #tpu.memory_space<vmem>>, vector<1x8x16xf32>
    %14 = vector.shape_cast %13 : vector<1x8x16xf32> to vector<8x16xf32>
    %c2_14 = arith.constant 2 : index
    %c0_15 = arith.constant 0 : index
    %c0_16 = arith.constant 0 : index
    %15 = vector.load %arg2[%c2_14, %c0_15, %c0_16] : memref<9x16x1024xf32, #tpu.memory_space<vmem>>, vector<1x16x1024xf32>
    %16 = vector.shape_cast %15 : vector<1x16x1024xf32> to vector<16x1024xf32>
    %cst_17 = arith.constant dense<0.000000e+00> : vector<8x1024xf32>
    %17 = tpu.matmul %14, %16, %cst_17 {dimension_numbers = #tpu.dot_dimension_numbers<[1], [0], [0], [1], [0, 0, 1, 1], [], []>} : vector<8x16xf32>, vector<16x1024xf32>, vector<8x1024xf32> -> vector<8x1024xf32>
    %18 = arith.addf %12, %17 : vector<8x1024xf32>
    %c0_18 = arith.constant 0 : index
    %c3 = arith.constant 3 : index
    %c0_19 = arith.constant 0 : index
    %19 = vector.load %arg1[%c0_18, %c3, %c0_19] : memref<1x16x16xf32, #tpu.memory_space<vmem>>, vector<1x8x16xf32>
    %20 = vector.shape_cast %19 : vector<1x8x16xf32> to vector<8x16xf32>
    %c3_20 = arith.constant 3 : index
    %c0_21 = arith.constant 0 : index
    %c0_22 = arith.constant 0 : index
    %21 = vector.load %arg2[%c3_20, %c0_21, %c0_22] : memref<9x16x1024xf32, #tpu.memory_space<vmem>>, vector<1x16x1024xf32>
    %22 = vector.shape_cast %21 : vector<1x16x1024xf32> to vector<16x1024xf32>
    %cst_23 = arith.constant dense<0.000000e+00> : vector<8x1024xf32>
    %23 = tpu.matmul %20, %22, %cst_23 {dimension_numbers = #tpu.dot_dimension_numbers<[1], [0], [0], [1], [0, 0, 1, 1], [], []>} : vector<8x16xf32>, vector<16x1024xf32>, vector<8x1024xf32> -> vector<8x1024xf32>
    %24 = arith.addf %18, %23 : vector<8x1024xf32>
    %c0_24 = arith.constant 0 : index
    %c4 = arith.constant 4 : index
    %c0_25 = arith.constant 0 : index
    %25 = vector.load %arg1[%c0_24, %c4, %c0_25] : memref<1x16x16xf32, #tpu.memory_space<vmem>>, vector<1x8x16xf32>
    %26 = vector.shape_cast %25 : vector<1x8x16xf32> to vector<8x16xf32>
    %c4_26 = arith.constant 4 : index
    %c0_27 = arith.constant 0 : index
    %c0_28 = arith.constant 0 : index
    %27 = vector.load %arg2[%c4_26, %c0_27, %c0_28] : memref<9x16x1024xf32, #tpu.memory_space<vmem>>, vector<1x16x1024xf32>
    %28 = vector.shape_cast %27 : vector<1x16x1024xf32> to vector<16x1024xf32>
    %cst_29 = arith.constant dense<0.000000e+00> : vector<8x1024xf32>
    %29 = tpu.matmul %26, %28, %cst_29 {dimension_numbers = #tpu.dot_dimension_numbers<[1], [0], [0], [1], [0, 0, 1, 1], [], []>} : vector<8x16xf32>, vector<16x1024xf32>, vector<8x1024xf32> -> vector<8x1024xf32>
    %30 = arith.addf %24, %29 : vector<8x1024xf32>
    %c0_30 = arith.constant 0 : index
    %c5 = arith.constant 5 : index
    %c0_31 = arith.constant 0 : index
    %31 = vector.load %arg1[%c0_30, %c5, %c0_31] : memref<1x16x16xf32, #tpu.memory_space<vmem>>, vector<1x8x16xf32>
    %32 = vector.shape_cast %31 : vector<1x8x16xf32> to vector<8x16xf32>
    %c5_32 = arith.constant 5 : index
    %c0_33 = arith.constant 0 : index
    %c0_34 = arith.constant 0 : index
    %33 = vector.load %arg2[%c5_32, %c0_33, %c0_34] : memref<9x16x1024xf32, #tpu.memory_space<vmem>>, vector<1x16x1024xf32>
    %34 = vector.shape_cast %33 : vector<1x16x1024xf32> to vector<16x1024xf32>
    %cst_35 = arith.constant dense<0.000000e+00> : vector<8x1024xf32>
    %35 = tpu.matmul %32, %34, %cst_35 {dimension_numbers = #tpu.dot_dimension_numbers<[1], [0], [0], [1], [0, 0, 1, 1], [], []>} : vector<8x16xf32>, vector<16x1024xf32>, vector<8x1024xf32> -> vector<8x1024xf32>
    %36 = arith.addf %30, %35 : vector<8x1024xf32>
    %c0_36 = arith.constant 0 : index
    %c6 = arith.constant 6 : index
    %c0_37 = arith.constant 0 : index
    %37 = vector.load %arg1[%c0_36, %c6, %c0_37] : memref<1x16x16xf32, #tpu.memory_space<vmem>>, vector<1x8x16xf32>
    %38 = vector.shape_cast %37 : vector<1x8x16xf32> to vector<8x16xf32>
    %c6_38 = arith.constant 6 : index
    %c0_39 = arith.constant 0 : index
    %c0_40 = arith.constant 0 : index
    %39 = vector.load %arg2[%c6_38, %c0_39, %c0_40] : memref<9x16x1024xf32, #tpu.memory_space<vmem>>, vector<1x16x1024xf32>
    %40 = vector.shape_cast %39 : vector<1x16x1024xf32> to vector<16x1024xf32>
    %cst_41 = arith.constant dense<0.000000e+00> : vector<8x1024xf32>
    %41 = tpu.matmul %38, %40, %cst_41 {dimension_numbers = #tpu.dot_dimension_numbers<[1], [0], [0], [1], [0, 0, 1, 1], [], []>} : vector<8x16xf32>, vector<16x1024xf32>, vector<8x1024xf32> -> vector<8x1024xf32>
    %42 = arith.addf %36, %41 : vector<8x1024xf32>
    %c0_42 = arith.constant 0 : index
    %c7 = arith.constant 7 : index
    %c0_43 = arith.constant 0 : index
    %43 = vector.load %arg1[%c0_42, %c7, %c0_43] : memref<1x16x16xf32, #tpu.memory_space<vmem>>, vector<1x8x16xf32>
    %44 = vector.shape_cast %43 : vector<1x8x16xf32> to vector<8x16xf32>
    %c7_44 = arith.constant 7 : index
    %c0_45 = arith.constant 0 : index
    %c0_46 = arith.constant 0 : index
    %45 = vector.load %arg2[%c7_44, %c0_45, %c0_46] : memref<9x16x1024xf32, #tpu.memory_space<vmem>>, vector<1x16x1024xf32>
    %46 = vector.shape_cast %45 : vector<1x16x1024xf32> to vector<16x1024xf32>
    %cst_47 = arith.constant dense<0.000000e+00> : vector<8x1024xf32>
    %47 = tpu.matmul %44, %46, %cst_47 {dimension_numbers = #tpu.dot_dimension_numbers<[1], [0], [0], [1], [0, 0, 1, 1], [], []>} : vector<8x16xf32>, vector<16x1024xf32>, vector<8x1024xf32> -> vector<8x1024xf32>
    %48 = arith.addf %42, %47 : vector<8x1024xf32>
    %c0_48 = arith.constant 0 : index
    %c8 = arith.constant 8 : index
    %c0_49 = arith.constant 0 : index
    %49 = vector.load %arg1[%c0_48, %c8, %c0_49] : memref<1x16x16xf32, #tpu.memory_space<vmem>>, vector<1x8x16xf32>
    %50 = vector.shape_cast %49 : vector<1x8x16xf32> to vector<8x16xf32>
    %c8_50 = arith.constant 8 : index
    %c0_51 = arith.constant 0 : index
    %c0_52 = arith.constant 0 : index
    %51 = vector.load %arg2[%c8_50, %c0_51, %c0_52] : memref<9x16x1024xf32, #tpu.memory_space<vmem>>, vector<1x16x1024xf32>
    %52 = vector.shape_cast %51 : vector<1x16x1024xf32> to vector<16x1024xf32>
    %cst_53 = arith.constant dense<0.000000e+00> : vector<8x1024xf32>
    %53 = tpu.matmul %50, %52, %cst_53 {dimension_numbers = #tpu.dot_dimension_numbers<[1], [0], [0], [1], [0, 0, 1, 1], [], []>} : vector<8x16xf32>, vector<16x1024xf32>, vector<8x1024xf32> -> vector<8x1024xf32>
    %54 = arith.addf %48, %53 : vector<8x1024xf32>
    %c0_54 = arith.constant 0 : index
    %c0_55 = arith.constant 0 : index
    %55 = vector.load %arg5[%c0_54, %c0_55] : memref<4x1024xf32, #tpu.memory_space<vmem>>, vector<1x1024xf32>
    %56 = vector.broadcast %55 : vector<1x1024xf32> to vector<8x1024xf32>
    %57 = arith.mulf %54, %56 : vector<8x1024xf32>
    %c1_56 = arith.constant 1 : index
    %c0_57 = arith.constant 0 : index
    %58 = vector.load %arg5[%c1_56, %c0_57] : memref<4x1024xf32, #tpu.memory_space<vmem>>, vector<1x1024xf32>
    %59 = vector.broadcast %58 : vector<1x1024xf32> to vector<8x1024xf32>
    %60 = arith.addf %57, %59 : vector<8x1024xf32>
    %cst_58 = arith.constant 0.000000e+00 : f32
    %61 = vector.broadcast %cst_58 : f32 to vector<8x1024xf32>
    %62 = arith.maximumf %60, %61 : vector<8x1024xf32>
    %cst_59 = arith.constant 0.000000e+00 : f32
    %63 = vector.broadcast %cst_59 : f32 to vector<1x10x10x128xf32>
    %c0_60 = arith.constant 0 : index
    %c0_61 = arith.constant 0 : index
    %c0_62 = arith.constant 0 : index
    %c0_63 = arith.constant 0 : index
    %64 = vector.load %arg8[%c0_60, %c0_61, %c0_62, %c0_63] : memref<1x10x10x128xf32, #tpu.memory_space<vmem>>, vector<1x10x10x128xf32>
    tpu.vector_store %arg8[%c0_60, %c0_61, %c0_62, %c0_63], %63 {strides = array<i32>} : memref<1x10x10x128xf32, #tpu.memory_space<vmem>>, vector<1x10x10x128xf32>,
    %65 = vector.extract_strided_slice %62 {offsets = [0, 0], sizes = [8, 128], strides = [1, 1]} : vector<8x1024xf32> to vector<8x128xf32>
    %66 = vector.shape_cast %65 : vector<8x128xf32> to vector<1x8x128xf32>
    %c0_64 = arith.constant 0 : index
    %c1_65 = arith.constant 1 : index
    %c1_66 = arith.constant 1 : index
    %c0_67 = arith.constant 0 : index
    %67 = vector.load %arg8[%c0_64, %c1_65, %c1_66, %c0_67] : memref<1x10x10x128xf32, #tpu.memory_space<vmem>>, vector<1x8x1x128xf32>
    %68 = vector.shape_cast %67 : vector<1x8x1x128xf32> to vector<1x8x128xf32>
    %69 = vector.shape_cast %66 : vector<1x8x128xf32> to vector<1x8x1x128xf32>
    tpu.vector_store %arg8[%c0_64, %c1_65, %c1_66, %c0_67], %69 {strides = array<i32>} : memref<1x10x10x128xf32, #tpu.memory_space<vmem>>, vector<1x8x1x128xf32>,
    %70 = vector.extract_strided_slice %62 {offsets = [0, 128], sizes = [8, 128], strides = [1, 1]} : vector<8x1024xf32> to vector<8x128xf32>
    %71 = vector.shape_cast %70 : vector<8x128xf32> to vector<1x8x128xf32>
    %c0_68 = arith.constant 0 : index
    %c1_69 = arith.constant 1 : index
    %c2_70 = arith.constant 2 : index
    %c0_71 = arith.constant 0 : index
    %72 = vector.load %arg8[%c0_68, %c1_69, %c2_70, %c0_71] : memref<1x10x10x128xf32, #tpu.memory_space<vmem>>, vector<1x8x1x128xf32>
    %73 = vector.shape_cast %72 : vector<1x8x1x128xf32> to vector<1x8x128xf32>
    %74 = vector.shape_cast %71 : vector<1x8x128xf32> to vector<1x8x1x128xf32>
    tpu.vector_store %arg8[%c0_68, %c1_69, %c2_70, %c0_71], %74 {strides = array<i32>} : memref<1x10x10x128xf32, #tpu.memory_space<vmem>>, vector<1x8x1x128xf32>,
    %75 = vector.extract_strided_slice %62 {offsets = [0, 256], sizes = [8, 128], strides = [1, 1]} : vector<8x1024xf32> to vector<8x128xf32>
    %76 = vector.shape_cast %75 : vector<8x128xf32> to vector<1x8x128xf32>
    %c0_72 = arith.constant 0 : index
    %c1_73 = arith.constant 1 : index
    %c3_74 = arith.constant 3 : index
    %c0_75 = arith.constant 0 : index
    %77 = vector.load %arg8[%c0_72, %c1_73, %c3_74, %c0_75] : memref<1x10x10x128xf32, #tpu.memory_space<vmem>>, vector<1x8x1x128xf32>
    %78 = vector.shape_cast %77 : vector<1x8x1x128xf32> to vector<1x8x128xf32>
    %79 = vector.shape_cast %76 : vector<1x8x128xf32> to vector<1x8x1x128xf32>
    tpu.vector_store %arg8[%c0_72, %c1_73, %c3_74, %c0_75], %79 {strides = array<i32>} : memref<1x10x10x128xf32, #tpu.memory_space<vmem>>, vector<1x8x1x128xf32>,
    %80 = vector.extract_strided_slice %62 {offsets = [0, 384], sizes = [8, 128], strides = [1, 1]} : vector<8x1024xf32> to vector<8x128xf32>
    %81 = vector.shape_cast %80 : vector<8x128xf32> to vector<1x8x128xf32>
    %c0_76 = arith.constant 0 : index
    %c1_77 = arith.constant 1 : index
    %c4_78 = arith.constant 4 : index
    %c0_79 = arith.constant 0 : index
    %82 = vector.load %arg8[%c0_76, %c1_77, %c4_78, %c0_79] : memref<1x10x10x128xf32, #tpu.memory_space<vmem>>, vector<1x8x1x128xf32>
    %83 = vector.shape_cast %82 : vector<1x8x1x128xf32> to vector<1x8x128xf32>
    %84 = vector.shape_cast %81 : vector<1x8x128xf32> to vector<1x8x1x128xf32>
    tpu.vector_store %arg8[%c0_76, %c1_77, %c4_78, %c0_79], %84 {strides = array<i32>} : memref<1x10x10x128xf32, #tpu.memory_space<vmem>>, vector<1x8x1x128xf32>,
    %85 = vector.extract_strided_slice %62 {offsets = [0, 512], sizes = [8, 128], strides = [1, 1]} : vector<8x1024xf32> to vector<8x128xf32>
    %86 = vector.shape_cast %85 : vector<8x128xf32> to vector<1x8x128xf32>
    %c0_80 = arith.constant 0 : index
    %c1_81 = arith.constant 1 : index
    %c5_82 = arith.constant 5 : index
    %c0_83 = arith.constant 0 : index
    %87 = vector.load %arg8[%c0_80, %c1_81, %c5_82, %c0_83] : memref<1x10x10x128xf32, #tpu.memory_space<vmem>>, vector<1x8x1x128xf32>
    %88 = vector.shape_cast %87 : vector<1x8x1x128xf32> to vector<1x8x128xf32>
    %89 = vector.shape_cast %86 : vector<1x8x128xf32> to vector<1x8x1x128xf32>
    tpu.vector_store %arg8[%c0_80, %c1_81, %c5_82, %c0_83], %89 {strides = array<i32>} : memref<1x10x10x128xf32, #tpu.memory_space<vmem>>, vector<1x8x1x128xf32>,
    %90 = vector.extract_strided_slice %62 {offsets = [0, 640], sizes = [8, 128], strides = [1, 1]} : vector<8x1024xf32> to vector<8x128xf32>
    %91 = vector.shape_cast %90 : vector<8x128xf32> to vector<1x8x128xf32>
    %c0_84 = arith.constant 0 : index
    %c1_85 = arith.constant 1 : index
    %c6_86 = arith.constant 6 : index
    %c0_87 = arith.constant 0 : index
    %92 = vector.load %arg8[%c0_84, %c1_85, %c6_86, %c0_87] : memref<1x10x10x128xf32, #tpu.memory_space<vmem>>, vector<1x8x1x128xf32>
    %93 = vector.shape_cast %92 : vector<1x8x1x128xf32> to vector<1x8x128xf32>
    %94 = vector.shape_cast %91 : vector<1x8x128xf32> to vector<1x8x1x128xf32>
    tpu.vector_store %arg8[%c0_84, %c1_85, %c6_86, %c0_87], %94 {strides = array<i32>} : memref<1x10x10x128xf32, #tpu.memory_space<vmem>>, vector<1x8x1x128xf32>,
    %95 = vector.extract_strided_slice %62 {offsets = [0, 768], sizes = [8, 128], strides = [1, 1]} : vector<8x1024xf32> to vector<8x128xf32>
    %96 = vector.shape_cast %95 : vector<8x128xf32> to vector<1x8x128xf32>
    %c0_88 = arith.constant 0 : index
    %c1_89 = arith.constant 1 : index
    %c7_90 = arith.constant 7 : index
    %c0_91 = arith.constant 0 : index
    %97 = vector.load %arg8[%c0_88, %c1_89, %c7_90, %c0_91] : memref<1x10x10x128xf32, #tpu.memory_space<vmem>>, vector<1x8x1x128xf32>
    %98 = vector.shape_cast %97 : vector<1x8x1x128xf32> to vector<1x8x128xf32>
    %99 = vector.shape_cast %96 : vector<1x8x128xf32> to vector<1x8x1x128xf32>
    tpu.vector_store %arg8[%c0_88, %c1_89, %c7_90, %c0_91], %99 {strides = array<i32>} : memref<1x10x10x128xf32, #tpu.memory_space<vmem>>, vector<1x8x1x128xf32>,
    %100 = vector.extract_strided_slice %62 {offsets = [0, 896], sizes = [8, 128], strides = [1, 1]} : vector<8x1024xf32> to vector<8x128xf32>
    %101 = vector.shape_cast %100 : vector<8x128xf32> to vector<1x8x128xf32>
    %c0_92 = arith.constant 0 : index
    %c1_93 = arith.constant 1 : index
    %c8_94 = arith.constant 8 : index
    %c0_95 = arith.constant 0 : index
    %102 = vector.load %arg8[%c0_92, %c1_93, %c8_94, %c0_95] : memref<1x10x10x128xf32, #tpu.memory_space<vmem>>, vector<1x8x1x128xf32>
    %103 = vector.shape_cast %102 : vector<1x8x1x128xf32> to vector<1x8x128xf32>
    %104 = vector.shape_cast %101 : vector<1x8x128xf32> to vector<1x8x1x128xf32>
    tpu.vector_store %arg8[%c0_92, %c1_93, %c8_94, %c0_95], %104 {strides = array<i32>} : memref<1x10x10x128xf32, #tpu.memory_space<vmem>>, vector<1x8x1x128xf32>,
    %cst_96 = arith.constant 0.000000e+00 : f32
    %105 = vector.broadcast %cst_96 : f32 to vector<64x64xf32>
    %c0_97 = arith.constant 0 : index
    %c0_98 = arith.constant 0 : index
    %c0_99 = arith.constant 0 : index
    %c0_100 = arith.constant 0 : index
    %106 = vector.load %arg8[%c0_97, %c0_98, %c0_99, %c0_100] : memref<1x10x10x128xf32, #tpu.memory_space<vmem>>, vector<1x8x8x128xf32>
    %107 = vector.shape_cast %106 : vector<1x8x8x128xf32> to vector<64x128xf32>
    %c0_101 = arith.constant 0 : index
    %c0_102 = arith.constant 0 : index
    %c0_103 = arith.constant 0 : index
    %108 = vector.load %arg3[%c0_101, %c0_102, %c0_103] : memref<9x128x64xf32, #tpu.memory_space<vmem>>, vector<1x128x64xf32>
    %109 = vector.shape_cast %108 : vector<1x128x64xf32> to vector<128x64xf32>
    %cst_104 = arith.constant dense<0.000000e+00> : vector<64x64xf32>
    %110 = tpu.matmul %107, %109, %cst_104 {dimension_numbers = #tpu.dot_dimension_numbers<[1], [0], [0], [1], [0, 0, 1, 1], [], []>} : vector<64x128xf32>, vector<128x64xf32>, vector<64x64xf32> -> vector<64x64xf32>
    %111 = arith.addf %105, %110 : vector<64x64xf32>
    %c0_105 = arith.constant 0 : index
    %c0_106 = arith.constant 0 : index
    %c1_107 = arith.constant 1 : index
    %c0_108 = arith.constant 0 : index
    %112 = vector.load %arg8[%c0_105, %c0_106, %c1_107, %c0_108] : memref<1x10x10x128xf32, #tpu.memory_space<vmem>>, vector<1x8x8x128xf32>
    %113 = vector.shape_cast %112 : vector<1x8x8x128xf32> to vector<64x128xf32>
    %c1_109 = arith.constant 1 : index
    %c0_110 = arith.constant 0 : index
    %c0_111 = arith.constant 0 : index
    %114 = vector.load %arg3[%c1_109, %c0_110, %c0_111] : memref<9x128x64xf32, #tpu.memory_space<vmem>>, vector<1x128x64xf32>
    %115 = vector.shape_cast %114 : vector<1x128x64xf32> to vector<128x64xf32>
    %cst_112 = arith.constant dense<0.000000e+00> : vector<64x64xf32>
    %116 = tpu.matmul %113, %115, %cst_112 {dimension_numbers = #tpu.dot_dimension_numbers<[1], [0], [0], [1], [0, 0, 1, 1], [], []>} : vector<64x128xf32>, vector<128x64xf32>, vector<64x64xf32> -> vector<64x64xf32>
    %117 = arith.addf %111, %116 : vector<64x64xf32>
    %c0_113 = arith.constant 0 : index
    %c0_114 = arith.constant 0 : index
    %c2_115 = arith.constant 2 : index
    %c0_116 = arith.constant 0 : index
    %118 = vector.load %arg8[%c0_113, %c0_114, %c2_115, %c0_116] : memref<1x10x10x128xf32, #tpu.memory_space<vmem>>, vector<1x8x8x128xf32>
    %119 = vector.shape_cast %118 : vector<1x8x8x128xf32> to vector<64x128xf32>
    %c2_117 = arith.constant 2 : index
    %c0_118 = arith.constant 0 : index
    %c0_119 = arith.constant 0 : index
    %120 = vector.load %arg3[%c2_117, %c0_118, %c0_119] : memref<9x128x64xf32, #tpu.memory_space<vmem>>, vector<1x128x64xf32>
    %121 = vector.shape_cast %120 : vector<1x128x64xf32> to vector<128x64xf32>
    %cst_120 = arith.constant dense<0.000000e+00> : vector<64x64xf32>
    %122 = tpu.matmul %119, %121, %cst_120 {dimension_numbers = #tpu.dot_dimension_numbers<[1], [0], [0], [1], [0, 0, 1, 1], [], []>} : vector<64x128xf32>, vector<128x64xf32>, vector<64x64xf32> -> vector<64x64xf32>
    %123 = arith.addf %117, %122 : vector<64x64xf32>
    %c0_121 = arith.constant 0 : index
    %c1_122 = arith.constant 1 : index
    %c0_123 = arith.constant 0 : index
    %c0_124 = arith.constant 0 : index
    %124 = vector.load %arg8[%c0_121, %c1_122, %c0_123, %c0_124] : memref<1x10x10x128xf32, #tpu.memory_space<vmem>>, vector<1x8x8x128xf32>
    %125 = vector.shape_cast %124 : vector<1x8x8x128xf32> to vector<64x128xf32>
    %c3_125 = arith.constant 3 : index
    %c0_126 = arith.constant 0 : index
    %c0_127 = arith.constant 0 : index
    %126 = vector.load %arg3[%c3_125, %c0_126, %c0_127] : memref<9x128x64xf32, #tpu.memory_space<vmem>>, vector<1x128x64xf32>
    %127 = vector.shape_cast %126 : vector<1x128x64xf32> to vector<128x64xf32>
    %cst_128 = arith.constant dense<0.000000e+00> : vector<64x64xf32>
    %128 = tpu.matmul %125, %127, %cst_128 {dimension_numbers = #tpu.dot_dimension_numbers<[1], [0], [0], [1], [0, 0, 1, 1], [], []>} : vector<64x128xf32>, vector<128x64xf32>, vector<64x64xf32> -> vector<64x64xf32>
    %129 = arith.addf %123, %128 : vector<64x64xf32>
    %c0_129 = arith.constant 0 : index
    %c1_130 = arith.constant 1 : index
    %c1_131 = arith.constant 1 : index
    %c0_132 = arith.constant 0 : index
    %130 = vector.load %arg8[%c0_129, %c1_130, %c1_131, %c0_132] : memref<1x10x10x128xf32, #tpu.memory_space<vmem>>, vector<1x8x8x128xf32>
    %131 = vector.shape_cast %130 : vector<1x8x8x128xf32> to vector<64x128xf32>
    %c4_133 = arith.constant 4 : index
    %c0_134 = arith.constant 0 : index
    %c0_135 = arith.constant 0 : index
    %132 = vector.load %arg3[%c4_133, %c0_134, %c0_135] : memref<9x128x64xf32, #tpu.memory_space<vmem>>, vector<1x128x64xf32>
    %133 = vector.shape_cast %132 : vector<1x128x64xf32> to vector<128x64xf32>
    %cst_136 = arith.constant dense<0.000000e+00> : vector<64x64xf32>
    %134 = tpu.matmul %131, %133, %cst_136 {dimension_numbers = #tpu.dot_dimension_numbers<[1], [0], [0], [1], [0, 0, 1, 1], [], []>} : vector<64x128xf32>, vector<128x64xf32>, vector<64x64xf32> -> vector<64x64xf32>
    %135 = arith.addf %129, %134 : vector<64x64xf32>
    %c0_137 = arith.constant 0 : index
    %c1_138 = arith.constant 1 : index
    %c2_139 = arith.constant 2 : index
    %c0_140 = arith.constant 0 : index
    %136 = vector.load %arg8[%c0_137, %c1_138, %c2_139, %c0_140] : memref<1x10x10x128xf32, #tpu.memory_space<vmem>>, vector<1x8x8x128xf32>
    %137 = vector.shape_cast %136 : vector<1x8x8x128xf32> to vector<64x128xf32>
    %c5_141 = arith.constant 5 : index
    %c0_142 = arith.constant 0 : index
    %c0_143 = arith.constant 0 : index
    %138 = vector.load %arg3[%c5_141, %c0_142, %c0_143] : memref<9x128x64xf32, #tpu.memory_space<vmem>>, vector<1x128x64xf32>
    %139 = vector.shape_cast %138 : vector<1x128x64xf32> to vector<128x64xf32>
    %cst_144 = arith.constant dense<0.000000e+00> : vector<64x64xf32>
    %140 = tpu.matmul %137, %139, %cst_144 {dimension_numbers = #tpu.dot_dimension_numbers<[1], [0], [0], [1], [0, 0, 1, 1], [], []>} : vector<64x128xf32>, vector<128x64xf32>, vector<64x64xf32> -> vector<64x64xf32>
    %141 = arith.addf %135, %140 : vector<64x64xf32>
    %c0_145 = arith.constant 0 : index
    %c2_146 = arith.constant 2 : index
    %c0_147 = arith.constant 0 : index
    %c0_148 = arith.constant 0 : index
    %142 = vector.load %arg8[%c0_145, %c2_146, %c0_147, %c0_148] : memref<1x10x10x128xf32, #tpu.memory_space<vmem>>, vector<1x8x8x128xf32>
    %143 = vector.shape_cast %142 : vector<1x8x8x128xf32> to vector<64x128xf32>
    %c6_149 = arith.constant 6 : index
    %c0_150 = arith.constant 0 : index
    %c0_151 = arith.constant 0 : index
    %144 = vector.load %arg3[%c6_149, %c0_150, %c0_151] : memref<9x128x64xf32, #tpu.memory_space<vmem>>, vector<1x128x64xf32>
    %145 = vector.shape_cast %144 : vector<1x128x64xf32> to vector<128x64xf32>
    %cst_152 = arith.constant dense<0.000000e+00> : vector<64x64xf32>
    %146 = tpu.matmul %143, %145, %cst_152 {dimension_numbers = #tpu.dot_dimension_numbers<[1], [0], [0], [1], [0, 0, 1, 1], [], []>} : vector<64x128xf32>, vector<128x64xf32>, vector<64x64xf32> -> vector<64x64xf32>
    %147 = arith.addf %141, %146 : vector<64x64xf32>
    %c0_153 = arith.constant 0 : index
    %c2_154 = arith.constant 2 : index
    %c1_155 = arith.constant 1 : index
    %c0_156 = arith.constant 0 : index
    %148 = vector.load %arg8[%c0_153, %c2_154, %c1_155, %c0_156] : memref<1x10x10x128xf32, #tpu.memory_space<vmem>>, vector<1x8x8x128xf32>
    %149 = vector.shape_cast %148 : vector<1x8x8x128xf32> to vector<64x128xf32>
    %c7_157 = arith.constant 7 : index
    %c0_158 = arith.constant 0 : index
    %c0_159 = arith.constant 0 : index
    %150 = vector.load %arg3[%c7_157, %c0_158, %c0_159] : memref<9x128x64xf32, #tpu.memory_space<vmem>>, vector<1x128x64xf32>
    %151 = vector.shape_cast %150 : vector<1x128x64xf32> to vector<128x64xf32>
    %cst_160 = arith.constant dense<0.000000e+00> : vector<64x64xf32>
    %152 = tpu.matmul %149, %151, %cst_160 {dimension_numbers = #tpu.dot_dimension_numbers<[1], [0], [0], [1], [0, 0, 1, 1], [], []>} : vector<64x128xf32>, vector<128x64xf32>, vector<64x64xf32> -> vector<64x64xf32>
    %153 = arith.addf %147, %152 : vector<64x64xf32>
    %c0_161 = arith.constant 0 : index
    %c2_162 = arith.constant 2 : index
    %c2_163 = arith.constant 2 : index
    %c0_164 = arith.constant 0 : index
    %154 = vector.load %arg8[%c0_161, %c2_162, %c2_163, %c0_164] : memref<1x10x10x128xf32, #tpu.memory_space<vmem>>, vector<1x8x8x128xf32>
    %155 = vector.shape_cast %154 : vector<1x8x8x128xf32> to vector<64x128xf32>
    %c8_165 = arith.constant 8 : index
    %c0_166 = arith.constant 0 : index
    %c0_167 = arith.constant 0 : index
    %156 = vector.load %arg3[%c8_165, %c0_166, %c0_167] : memref<9x128x64xf32, #tpu.memory_space<vmem>>, vector<1x128x64xf32>
    %157 = vector.shape_cast %156 : vector<1x128x64xf32> to vector<128x64xf32>
    %cst_168 = arith.constant dense<0.000000e+00> : vector<64x64xf32>
    %158 = tpu.matmul %155, %157, %cst_168 {dimension_numbers = #tpu.dot_dimension_numbers<[1], [0], [0], [1], [0, 0, 1, 1], [], []>} : vector<64x128xf32>, vector<128x64xf32>, vector<64x64xf32> -> vector<64x64xf32>
    %159 = arith.addf %153, %158 : vector<64x64xf32>
    %c2_169 = arith.constant 2 : index
    %c0_170 = arith.constant 0 : index
    %160 = vector.load %arg5[%c2_169, %c0_170] : memref<4x1024xf32, #tpu.memory_space<vmem>>, vector<1x64xf32>
    %161 = vector.broadcast %160 : vector<1x64xf32> to vector<64x64xf32>
    %162 = arith.mulf %159, %161 : vector<64x64xf32>
    %c3_171 = arith.constant 3 : index
    %c0_172 = arith.constant 0 : index
    %163 = vector.load %arg5[%c3_171, %c0_172] : memref<4x1024xf32, #tpu.memory_space<vmem>>, vector<1x64xf32>
    %164 = vector.broadcast %163 : vector<1x64xf32> to vector<64x64xf32>
    %165 = arith.addf %162, %164 : vector<64x64xf32>
    %cst_173 = arith.constant 0.000000e+00 : f32
    %166 = vector.broadcast %cst_173 : f32 to vector<64x64xf32>
    %167 = arith.maximumf %165, %166 : vector<64x64xf32>
    %168 = vector.shape_cast %167 : vector<64x64xf32> to vector<1x8x8x64xf32>
    %c0_174 = arith.constant 0 : index
    %c0_175 = arith.constant 0 : index
    %c0_176 = arith.constant 0 : index
    %c0_177 = arith.constant 0 : index
    %169 = vector.load %arg9[%c0_174, %c0_175, %c0_176, %c0_177] : memref<1x8x8x64xf32, #tpu.memory_space<vmem>>, vector<1x8x8x64xf32>
    tpu.vector_store %arg9[%c0_174, %c0_175, %c0_176, %c0_177], %168 {strides = array<i32>} : memref<1x8x8x64xf32, #tpu.memory_space<vmem>>, vector<1x8x8x64xf32>,
    %cst_178 = arith.constant 0.000000e+00 : f32
    %170 = vector.broadcast %cst_178 : f32 to vector<1x16x64xf32>
    %c0_179 = arith.constant 0 : index
    %c0_180 = arith.constant 0 : index
    %c0_181 = arith.constant 0 : index
    %c0_182 = arith.constant 0 : index
    %171 = vector.load %arg9[%c0_179, %c0_180, %c0_181, %c0_182] : memref<1x8x8x64xf32, #tpu.memory_space<vmem>>, vector<1x4x4x64xf32>
    %172 = vector.shape_cast %171 : vector<1x4x4x64xf32> to vector<1x16x64xf32>
    %c0_183 = arith.constant 0 : index
    %c0_184 = arith.constant 0 : index
    %173 = vector.load %arg4[%c0_183, %c0_184] : memref<25x64xf32, #tpu.memory_space<vmem>>, vector<1x64xf32>
    %174 = vector.shape_cast %173 : vector<1x64xf32> to vector<1x1x64xf32>
    %175 = vector.broadcast %174 : vector<1x1x64xf32> to vector<1x16x64xf32>
    %176 = arith.mulf %172, %175 : vector<1x16x64xf32>
    %177 = arith.addf %170, %176 : vector<1x16x64xf32>
    %c0_185 = arith.constant 0 : index
    %c0_186 = arith.constant 0 : index
    %c1_187 = arith.constant 1 : index
    %c0_188 = arith.constant 0 : index
    %178 = vector.load %arg9[%c0_185, %c0_186, %c1_187, %c0_188] : memref<1x8x8x64xf32, #tpu.memory_space<vmem>>, vector<1x4x4x64xf32>
    %179 = vector.shape_cast %178 : vector<1x4x4x64xf32> to vector<1x16x64xf32>
    %c1_189 = arith.constant 1 : index
    %c0_190 = arith.constant 0 : index
    %180 = vector.load %arg4[%c1_189, %c0_190] : memref<25x64xf32, #tpu.memory_space<vmem>>, vector<1x64xf32>
    %181 = vector.shape_cast %180 : vector<1x64xf32> to vector<1x1x64xf32>
    %182 = vector.broadcast %181 : vector<1x1x64xf32> to vector<1x16x64xf32>
    %183 = arith.mulf %179, %182 : vector<1x16x64xf32>
    %184 = arith.addf %177, %183 : vector<1x16x64xf32>
    %c0_191 = arith.constant 0 : index
    %c0_192 = arith.constant 0 : index
    %c2_193 = arith.constant 2 : index
    %c0_194 = arith.constant 0 : index
    %185 = vector.load %arg9[%c0_191, %c0_192, %c2_193, %c0_194] : memref<1x8x8x64xf32, #tpu.memory_space<vmem>>, vector<1x4x4x64xf32>
    %186 = vector.shape_cast %185 : vector<1x4x4x64xf32> to vector<1x16x64xf32>
    %c2_195 = arith.constant 2 : index
    %c0_196 = arith.constant 0 : index
    %187 = vector.load %arg4[%c2_195, %c0_196] : memref<25x64xf32, #tpu.memory_space<vmem>>, vector<1x64xf32>
    %188 = vector.shape_cast %187 : vector<1x64xf32> to vector<1x1x64xf32>
    %189 = vector.broadcast %188 : vector<1x1x64xf32> to vector<1x16x64xf32>
    %190 = arith.mulf %186, %189 : vector<1x16x64xf32>
    %191 = arith.addf %184, %190 : vector<1x16x64xf32>
    %c0_197 = arith.constant 0 : index
    %c0_198 = arith.constant 0 : index
    %c3_199 = arith.constant 3 : index
    %c0_200 = arith.constant 0 : index
    %192 = vector.load %arg9[%c0_197, %c0_198, %c3_199, %c0_200] : memref<1x8x8x64xf32, #tpu.memory_space<vmem>>, vector<1x4x4x64xf32>
    %193 = vector.shape_cast %192 : vector<1x4x4x64xf32> to vector<1x16x64xf32>
    %c3_201 = arith.constant 3 : index
    %c0_202 = arith.constant 0 : index
    %194 = vector.load %arg4[%c3_201, %c0_202] : memref<25x64xf32, #tpu.memory_space<vmem>>, vector<1x64xf32>
    %195 = vector.shape_cast %194 : vector<1x64xf32> to vector<1x1x64xf32>
    %196 = vector.broadcast %195 : vector<1x1x64xf32> to vector<1x16x64xf32>
    %197 = arith.mulf %193, %196 : vector<1x16x64xf32>
    %198 = arith.addf %191, %197 : vector<1x16x64xf32>
    %c0_203 = arith.constant 0 : index
    %c0_204 = arith.constant 0 : index
    %c4_205 = arith.constant 4 : index
    %c0_206 = arith.constant 0 : index
    %199 = vector.load %arg9[%c0_203, %c0_204, %c4_205, %c0_206] : memref<1x8x8x64xf32, #tpu.memory_space<vmem>>, vector<1x4x4x64xf32>
    %200 = vector.shape_cast %199 : vector<1x4x4x64xf32> to vector<1x16x64xf32>
    %c4_207 = arith.constant 4 : index
    %c0_208 = arith.constant 0 : index
    %201 = vector.load %arg4[%c4_207, %c0_208] : memref<25x64xf32, #tpu.memory_space<vmem>>, vector<1x64xf32>
    %202 = vector.shape_cast %201 : vector<1x64xf32> to vector<1x1x64xf32>
    %203 = vector.broadcast %202 : vector<1x1x64xf32> to vector<1x16x64xf32>
    %204 = arith.mulf %200, %203 : vector<1x16x64xf32>
    %205 = arith.addf %198, %204 : vector<1x16x64xf32>
    %c0_209 = arith.constant 0 : index
    %c1_210 = arith.constant 1 : index
    %c0_211 = arith.constant 0 : index
    %c0_212 = arith.constant 0 : index
    %206 = vector.load %arg9[%c0_209, %c1_210, %c0_211, %c0_212] : memref<1x8x8x64xf32, #tpu.memory_space<vmem>>, vector<1x4x4x64xf32>
    %207 = vector.shape_cast %206 : vector<1x4x4x64xf32> to vector<1x16x64xf32>
    %c5_213 = arith.constant 5 : index
    %c0_214 = arith.constant 0 : index
    %208 = vector.load %arg4[%c5_213, %c0_214] : memref<25x64xf32, #tpu.memory_space<vmem>>, vector<1x64xf32>
    %209 = vector.shape_cast %208 : vector<1x64xf32> to vector<1x1x64xf32>
    %210 = vector.broadcast %209 : vector<1x1x64xf32> to vector<1x16x64xf32>
    %211 = arith.mulf %207, %210 : vector<1x16x64xf32>
    %212 = arith.addf %205, %211 : vector<1x16x64xf32>
    %c0_215 = arith.constant 0 : index
    %c1_216 = arith.constant 1 : index
    %c1_217 = arith.constant 1 : index
    %c0_218 = arith.constant 0 : index
    %213 = vector.load %arg9[%c0_215, %c1_216, %c1_217, %c0_218] : memref<1x8x8x64xf32, #tpu.memory_space<vmem>>, vector<1x4x4x64xf32>
    %214 = vector.shape_cast %213 : vector<1x4x4x64xf32> to vector<1x16x64xf32>
    %c6_219 = arith.constant 6 : index
    %c0_220 = arith.constant 0 : index
    %215 = vector.load %arg4[%c6_219, %c0_220] : memref<25x64xf32, #tpu.memory_space<vmem>>, vector<1x64xf32>
    %216 = vector.shape_cast %215 : vector<1x64xf32> to vector<1x1x64xf32>
    %217 = vector.broadcast %216 : vector<1x1x64xf32> to vector<1x16x64xf32>
    %218 = arith.mulf %214, %217 : vector<1x16x64xf32>
    %219 = arith.addf %212, %218 : vector<1x16x64xf32>
    %c0_221 = arith.constant 0 : index
    %c1_222 = arith.constant 1 : index
    %c2_223 = arith.constant 2 : index
    %c0_224 = arith.constant 0 : index
    %220 = vector.load %arg9[%c0_221, %c1_222, %c2_223, %c0_224] : memref<1x8x8x64xf32, #tpu.memory_space<vmem>>, vector<1x4x4x64xf32>
    %221 = vector.shape_cast %220 : vector<1x4x4x64xf32> to vector<1x16x64xf32>
    %c7_225 = arith.constant 7 : index
    %c0_226 = arith.constant 0 : index
    %222 = vector.load %arg4[%c7_225, %c0_226] : memref<25x64xf32, #tpu.memory_space<vmem>>, vector<1x64xf32>
    %223 = vector.shape_cast %222 : vector<1x64xf32> to vector<1x1x64xf32>
    %224 = vector.broadcast %223 : vector<1x1x64xf32> to vector<1x16x64xf32>
    %225 = arith.mulf %221, %224 : vector<1x16x64xf32>
    %226 = arith.addf %219, %225 : vector<1x16x64xf32>
    %c0_227 = arith.constant 0 : index
    %c1_228 = arith.constant 1 : index
    %c3_229 = arith.constant 3 : index
    %c0_230 = arith.constant 0 : index
    %227 = vector.load %arg9[%c0_227, %c1_228, %c3_229, %c0_230] : memref<1x8x8x64xf32, #tpu.memory_space<vmem>>, vector<1x4x4x64xf32>
    %228 = vector.shape_cast %227 : vector<1x4x4x64xf32> to vector<1x16x64xf32>
    %c8_231 = arith.constant 8 : index
    %c0_232 = arith.constant 0 : index
    %229 = vector.load %arg4[%c8_231, %c0_232] : memref<25x64xf32, #tpu.memory_space<vmem>>, vector<1x64xf32>
    %230 = vector.shape_cast %229 : vector<1x64xf32> to vector<1x1x64xf32>
    %231 = vector.broadcast %230 : vector<1x1x64xf32> to vector<1x16x64xf32>
    %232 = arith.mulf %228, %231 : vector<1x16x64xf32>
    %233 = arith.addf %226, %232 : vector<1x16x64xf32>
    %c0_233 = arith.constant 0 : index
    %c1_234 = arith.constant 1 : index
    %c4_235 = arith.constant 4 : index
    %c0_236 = arith.constant 0 : index
    %234 = vector.load %arg9[%c0_233, %c1_234, %c4_235, %c0_236] : memref<1x8x8x64xf32, #tpu.memory_space<vmem>>, vector<1x4x4x64xf32>
    %235 = vector.shape_cast %234 : vector<1x4x4x64xf32> to vector<1x16x64xf32>
    %c9 = arith.constant 9 : index
    %c0_237 = arith.constant 0 : index
    %236 = vector.load %arg4[%c9, %c0_237] : memref<25x64xf32, #tpu.memory_space<vmem>>, vector<1x64xf32>
    %237 = vector.shape_cast %236 : vector<1x64xf32> to vector<1x1x64xf32>
    %238 = vector.broadcast %237 : vector<1x1x64xf32> to vector<1x16x64xf32>
    %239 = arith.mulf %235, %238 : vector<1x16x64xf32>
    %240 = arith.addf %233, %239 : vector<1x16x64xf32>
    %c0_238 = arith.constant 0 : index
    %c2_239 = arith.constant 2 : index
    %c0_240 = arith.constant 0 : index
    %c0_241 = arith.constant 0 : index
    %241 = vector.load %arg9[%c0_238, %c2_239, %c0_240, %c0_241] : memref<1x8x8x64xf32, #tpu.memory_space<vmem>>, vector<1x4x4x64xf32>
    %242 = vector.shape_cast %241 : vector<1x4x4x64xf32> to vector<1x16x64xf32>
    %c10 = arith.constant 10 : index
    %c0_242 = arith.constant 0 : index
    %243 = vector.load %arg4[%c10, %c0_242] : memref<25x64xf32, #tpu.memory_space<vmem>>, vector<1x64xf32>
    %244 = vector.shape_cast %243 : vector<1x64xf32> to vector<1x1x64xf32>
    %245 = vector.broadcast %244 : vector<1x1x64xf32> to vector<1x16x64xf32>
    %246 = arith.mulf %242, %245 : vector<1x16x64xf32>
    %247 = arith.addf %240, %246 : vector<1x16x64xf32>
    %c0_243 = arith.constant 0 : index
    %c2_244 = arith.constant 2 : index
    %c1_245 = arith.constant 1 : index
    %c0_246 = arith.constant 0 : index
    %248 = vector.load %arg9[%c0_243, %c2_244, %c1_245, %c0_246] : memref<1x8x8x64xf32, #tpu.memory_space<vmem>>, vector<1x4x4x64xf32>
    %249 = vector.shape_cast %248 : vector<1x4x4x64xf32> to vector<1x16x64xf32>
    %c11 = arith.constant 11 : index
    %c0_247 = arith.constant 0 : index
    %250 = vector.load %arg4[%c11, %c0_247] : memref<25x64xf32, #tpu.memory_space<vmem>>, vector<1x64xf32>
    %251 = vector.shape_cast %250 : vector<1x64xf32> to vector<1x1x64xf32>
    %252 = vector.broadcast %251 : vector<1x1x64xf32> to vector<1x16x64xf32>
    %253 = arith.mulf %249, %252 : vector<1x16x64xf32>
    %254 = arith.addf %247, %253 : vector<1x16x64xf32>
    %c0_248 = arith.constant 0 : index
    %c2_249 = arith.constant 2 : index
    %c2_250 = arith.constant 2 : index
    %c0_251 = arith.constant 0 : index
    %255 = vector.load %arg9[%c0_248, %c2_249, %c2_250, %c0_251] : memref<1x8x8x64xf32, #tpu.memory_space<vmem>>, vector<1x4x4x64xf32>
    %256 = vector.shape_cast %255 : vector<1x4x4x64xf32> to vector<1x16x64xf32>
    %c12 = arith.constant 12 : index
    %c0_252 = arith.constant 0 : index
    %257 = vector.load %arg4[%c12, %c0_252] : memref<25x64xf32, #tpu.memory_space<vmem>>, vector<1x64xf32>
    %258 = vector.shape_cast %257 : vector<1x64xf32> to vector<1x1x64xf32>
    %259 = vector.broadcast %258 : vector<1x1x64xf32> to vector<1x16x64xf32>
    %260 = arith.mulf %256, %259 : vector<1x16x64xf32>
    %261 = arith.addf %254, %260 : vector<1x16x64xf32>
    %c0_253 = arith.constant 0 : index
    %c2_254 = arith.constant 2 : index
    %c3_255 = arith.constant 3 : index
    %c0_256 = arith.constant 0 : index
    %262 = vector.load %arg9[%c0_253, %c2_254, %c3_255, %c0_256] : memref<1x8x8x64xf32, #tpu.memory_space<vmem>>, vector<1x4x4x64xf32>
    %263 = vector.shape_cast %262 : vector<1x4x4x64xf32> to vector<1x16x64xf32>
    %c13 = arith.constant 13 : index
    %c0_257 = arith.constant 0 : index
    %264 = vector.load %arg4[%c13, %c0_257] : memref<25x64xf32, #tpu.memory_space<vmem>>, vector<1x64xf32>
    %265 = vector.shape_cast %264 : vector<1x64xf32> to vector<1x1x64xf32>
    %266 = vector.broadcast %265 : vector<1x1x64xf32> to vector<1x16x64xf32>
    %267 = arith.mulf %263, %266 : vector<1x16x64xf32>
    %268 = arith.addf %261, %267 : vector<1x16x64xf32>
    %c0_258 = arith.constant 0 : index
    %c2_259 = arith.constant 2 : index
    %c4_260 = arith.constant 4 : index
    %c0_261 = arith.constant 0 : index
    %269 = vector.load %arg9[%c0_258, %c2_259, %c4_260, %c0_261] : memref<1x8x8x64xf32, #tpu.memory_space<vmem>>, vector<1x4x4x64xf32>
    %270 = vector.shape_cast %269 : vector<1x4x4x64xf32> to vector<1x16x64xf32>
    %c14 = arith.constant 14 : index
    %c0_262 = arith.constant 0 : index
    %271 = vector.load %arg4[%c14, %c0_262] : memref<25x64xf32, #tpu.memory_space<vmem>>, vector<1x64xf32>
    %272 = vector.shape_cast %271 : vector<1x64xf32> to vector<1x1x64xf32>
    %273 = vector.broadcast %272 : vector<1x1x64xf32> to vector<1x16x64xf32>
    %274 = arith.mulf %270, %273 : vector<1x16x64xf32>
    %275 = arith.addf %268, %274 : vector<1x16x64xf32>
    %c0_263 = arith.constant 0 : index
    %c3_264 = arith.constant 3 : index
    %c0_265 = arith.constant 0 : index
    %c0_266 = arith.constant 0 : index
    %276 = vector.load %arg9[%c0_263, %c3_264, %c0_265, %c0_266] : memref<1x8x8x64xf32, #tpu.memory_space<vmem>>, vector<1x4x4x64xf32>
    %277 = vector.shape_cast %276 : vector<1x4x4x64xf32> to vector<1x16x64xf32>
    %c15 = arith.constant 15 : index
    %c0_267 = arith.constant 0 : index
    %278 = vector.load %arg4[%c15, %c0_267] : memref<25x64xf32, #tpu.memory_space<vmem>>, vector<1x64xf32>
    %279 = vector.shape_cast %278 : vector<1x64xf32> to vector<1x1x64xf32>
    %280 = vector.broadcast %279 : vector<1x1x64xf32> to vector<1x16x64xf32>
    %281 = arith.mulf %277, %280 : vector<1x16x64xf32>
    %282 = arith.addf %275, %281 : vector<1x16x64xf32>
    %c0_268 = arith.constant 0 : index
    %c3_269 = arith.constant 3 : index
    %c1_270 = arith.constant 1 : index
    %c0_271 = arith.constant 0 : index
    %283 = vector.load %arg9[%c0_268, %c3_269, %c1_270, %c0_271] : memref<1x8x8x64xf32, #tpu.memory_space<vmem>>, vector<1x4x4x64xf32>
    %284 = vector.shape_cast %283 : vector<1x4x4x64xf32> to vector<1x16x64xf32>
    %c16 = arith.constant 16 : index
    %c0_272 = arith.constant 0 : index
    %285 = vector.load %arg4[%c16, %c0_272] : memref<25x64xf32, #tpu.memory_space<vmem>>, vector<1x64xf32>
    %286 = vector.shape_cast %285 : vector<1x64xf32> to vector<1x1x64xf32>
    %287 = vector.broadcast %286 : vector<1x1x64xf32> to vector<1x16x64xf32>
    %288 = arith.mulf %284, %287 : vector<1x16x64xf32>
    %289 = arith.addf %282, %288 : vector<1x16x64xf32>
    %c0_273 = arith.constant 0 : index
    %c3_274 = arith.constant 3 : index
    %c2_275 = arith.constant 2 : index
    %c0_276 = arith.constant 0 : index
    %290 = vector.load %arg9[%c0_273, %c3_274, %c2_275, %c0_276] : memref<1x8x8x64xf32, #tpu.memory_space<vmem>>, vector<1x4x4x64xf32>
    %291 = vector.shape_cast %290 : vector<1x4x4x64xf32> to vector<1x16x64xf32>
    %c17 = arith.constant 17 : index
    %c0_277 = arith.constant 0 : index
    %292 = vector.load %arg4[%c17, %c0_277] : memref<25x64xf32, #tpu.memory_space<vmem>>, vector<1x64xf32>
    %293 = vector.shape_cast %292 : vector<1x64xf32> to vector<1x1x64xf32>
    %294 = vector.broadcast %293 : vector<1x1x64xf32> to vector<1x16x64xf32>
    %295 = arith.mulf %291, %294 : vector<1x16x64xf32>
    %296 = arith.addf %289, %295 : vector<1x16x64xf32>
    %c0_278 = arith.constant 0 : index
    %c3_279 = arith.constant 3 : index
    %c3_280 = arith.constant 3 : index
    %c0_281 = arith.constant 0 : index
    %297 = vector.load %arg9[%c0_278, %c3_279, %c3_280, %c0_281] : memref<1x8x8x64xf32, #tpu.memory_space<vmem>>, vector<1x4x4x64xf32>
    %298 = vector.shape_cast %297 : vector<1x4x4x64xf32> to vector<1x16x64xf32>
    %c18 = arith.constant 18 : index
    %c0_282 = arith.constant 0 : index
    %299 = vector.load %arg4[%c18, %c0_282] : memref<25x64xf32, #tpu.memory_space<vmem>>, vector<1x64xf32>
    %300 = vector.shape_cast %299 : vector<1x64xf32> to vector<1x1x64xf32>
    %301 = vector.broadcast %300 : vector<1x1x64xf32> to vector<1x16x64xf32>
    %302 = arith.mulf %298, %301 : vector<1x16x64xf32>
    %303 = arith.addf %296, %302 : vector<1x16x64xf32>
    %c0_283 = arith.constant 0 : index
    %c3_284 = arith.constant 3 : index
    %c4_285 = arith.constant 4 : index
    %c0_286 = arith.constant 0 : index
    %304 = vector.load %arg9[%c0_283, %c3_284, %c4_285, %c0_286] : memref<1x8x8x64xf32, #tpu.memory_space<vmem>>, vector<1x4x4x64xf32>
    %305 = vector.shape_cast %304 : vector<1x4x4x64xf32> to vector<1x16x64xf32>
    %c19 = arith.constant 19 : index
    %c0_287 = arith.constant 0 : index
    %306 = vector.load %arg4[%c19, %c0_287] : memref<25x64xf32, #tpu.memory_space<vmem>>, vector<1x64xf32>
    %307 = vector.shape_cast %306 : vector<1x64xf32> to vector<1x1x64xf32>
    %308 = vector.broadcast %307 : vector<1x1x64xf32> to vector<1x16x64xf32>
    %309 = arith.mulf %305, %308 : vector<1x16x64xf32>
    %310 = arith.addf %303, %309 : vector<1x16x64xf32>
    %c0_288 = arith.constant 0 : index
    %c4_289 = arith.constant 4 : index
    %c0_290 = arith.constant 0 : index
    %c0_291 = arith.constant 0 : index
    %311 = vector.load %arg9[%c0_288, %c4_289, %c0_290, %c0_291] : memref<1x8x8x64xf32, #tpu.memory_space<vmem>>, vector<1x4x4x64xf32>
    %312 = vector.shape_cast %311 : vector<1x4x4x64xf32> to vector<1x16x64xf32>
    %c20 = arith.constant 20 : index
    %c0_292 = arith.constant 0 : index
    %313 = vector.load %arg4[%c20, %c0_292] : memref<25x64xf32, #tpu.memory_space<vmem>>, vector<1x64xf32>
    %314 = vector.shape_cast %313 : vector<1x64xf32> to vector<1x1x64xf32>
    %315 = vector.broadcast %314 : vector<1x1x64xf32> to vector<1x16x64xf32>
    %316 = arith.mulf %312, %315 : vector<1x16x64xf32>
    %317 = arith.addf %310, %316 : vector<1x16x64xf32>
    %c0_293 = arith.constant 0 : index
    %c4_294 = arith.constant 4 : index
    %c1_295 = arith.constant 1 : index
    %c0_296 = arith.constant 0 : index
    %318 = vector.load %arg9[%c0_293, %c4_294, %c1_295, %c0_296] : memref<1x8x8x64xf32, #tpu.memory_space<vmem>>, vector<1x4x4x64xf32>
    %319 = vector.shape_cast %318 : vector<1x4x4x64xf32> to vector<1x16x64xf32>
    %c21 = arith.constant 21 : index
    %c0_297 = arith.constant 0 : index
    %320 = vector.load %arg4[%c21, %c0_297] : memref<25x64xf32, #tpu.memory_space<vmem>>, vector<1x64xf32>
    %321 = vector.shape_cast %320 : vector<1x64xf32> to vector<1x1x64xf32>
    %322 = vector.broadcast %321 : vector<1x1x64xf32> to vector<1x16x64xf32>
    %323 = arith.mulf %319, %322 : vector<1x16x64xf32>
    %324 = arith.addf %317, %323 : vector<1x16x64xf32>
    %c0_298 = arith.constant 0 : index
    %c4_299 = arith.constant 4 : index
    %c2_300 = arith.constant 2 : index
    %c0_301 = arith.constant 0 : index
    %325 = vector.load %arg9[%c0_298, %c4_299, %c2_300, %c0_301] : memref<1x8x8x64xf32, #tpu.memory_space<vmem>>, vector<1x4x4x64xf32>
    %326 = vector.shape_cast %325 : vector<1x4x4x64xf32> to vector<1x16x64xf32>
    %c22 = arith.constant 22 : index
    %c0_302 = arith.constant 0 : index
    %327 = vector.load %arg4[%c22, %c0_302] : memref<25x64xf32, #tpu.memory_space<vmem>>, vector<1x64xf32>
    %328 = vector.shape_cast %327 : vector<1x64xf32> to vector<1x1x64xf32>
    %329 = vector.broadcast %328 : vector<1x1x64xf32> to vector<1x16x64xf32>
    %330 = arith.mulf %326, %329 : vector<1x16x64xf32>
    %331 = arith.addf %324, %330 : vector<1x16x64xf32>
    %c0_303 = arith.constant 0 : index
    %c4_304 = arith.constant 4 : index
    %c3_305 = arith.constant 3 : index
    %c0_306 = arith.constant 0 : index
    %332 = vector.load %arg9[%c0_303, %c4_304, %c3_305, %c0_306] : memref<1x8x8x64xf32, #tpu.memory_space<vmem>>, vector<1x4x4x64xf32>
    %333 = vector.shape_cast %332 : vector<1x4x4x64xf32> to vector<1x16x64xf32>
    %c23 = arith.constant 23 : index
    %c0_307 = arith.constant 0 : index
    %334 = vector.load %arg4[%c23, %c0_307] : memref<25x64xf32, #tpu.memory_space<vmem>>, vector<1x64xf32>
    %335 = vector.shape_cast %334 : vector<1x64xf32> to vector<1x1x64xf32>
    %336 = vector.broadcast %335 : vector<1x1x64xf32> to vector<1x16x64xf32>
    %337 = arith.mulf %333, %336 : vector<1x16x64xf32>
    %338 = arith.addf %331, %337 : vector<1x16x64xf32>
    %c0_308 = arith.constant 0 : index
    %c4_309 = arith.constant 4 : index
    %c4_310 = arith.constant 4 : index
    %c0_311 = arith.constant 0 : index
    %339 = vector.load %arg9[%c0_308, %c4_309, %c4_310, %c0_311] : memref<1x8x8x64xf32, #tpu.memory_space<vmem>>, vector<1x4x4x64xf32>
    %340 = vector.shape_cast %339 : vector<1x4x4x64xf32> to vector<1x16x64xf32>
    %c24 = arith.constant 24 : index
    %c0_312 = arith.constant 0 : index
    %341 = vector.load %arg4[%c24, %c0_312] : memref<25x64xf32, #tpu.memory_space<vmem>>, vector<1x64xf32>
    %342 = vector.shape_cast %341 : vector<1x64xf32> to vector<1x1x64xf32>
    %343 = vector.broadcast %342 : vector<1x1x64xf32> to vector<1x16x64xf32>
    %344 = arith.mulf %340, %343 : vector<1x16x64xf32>
    %345 = arith.addf %338, %344 : vector<1x16x64xf32>
    %cst_313 = arith.constant dense<0.000000e+00> : vector<1x16xf32>
    %346 = vector.multi_reduction <add>, %345, %cst_313 [2] : vector<1x16x64xf32> to vector<1x16xf32>
    %c3_314 = arith.constant 3 : index
    %c64 = arith.constant 64 : index
    %347 = vector.load %arg5[%c3_314, %c64] : memref<4x1024xf32, #tpu.memory_space<vmem>>, vector<1x1xf32>
    %348 = vector.broadcast %347 : vector<1x1xf32> to vector<1x16xf32>
    %349 = arith.addf %346, %348 : vector<1x16xf32>
    %c0_315 = arith.constant 0 : index
    %c0_316 = arith.constant 0 : index
    %350 = vector.load %arg6[%c0_315, %c0_316] : memref<16x400xf32, #tpu.memory_space<vmem>>, vector<16x400xf32>
    %cst_317 = arith.constant dense<0.000000e+00> : vector<1x400xf32>
    %351 = tpu.matmul %349, %350, %cst_317 {dimension_numbers = #tpu.dot_dimension_numbers<[1], [0], [0], [1], [0, 0, 1, 1], [], []>} : vector<1x16xf32>, vector<16x400xf32>, vector<1x400xf32> -> vector<1x400xf32>
    %352 = vector.shape_cast %351 : vector<1x400xf32> to vector<1x1x400xf32>
    %c0_318 = arith.constant 0 : index
    %c0_319 = arith.constant 0 : index
    %c0_320 = arith.constant 0 : index
    %353 = vector.load %arg7[%c0_318, %c0_319, %c0_320] : memref<1x1x400xf32, #tpu.memory_space<vmem>>, vector<1x1x400xf32>
    tpu.vector_store %arg7[%c0_318, %c0_319, %c0_320], %352 {strides = array<i32>} : memref<1x1x400xf32, #tpu.memory_space<vmem>>, vector<1x1x400xf32>,
    return
  }
  func.func @transform_0(%arg0: i32) -> (i32, i32, i32) {
    %c0_i32 = arith.constant 0 : i32
    %c0_i32_0 = arith.constant 0 : i32
    %c0_i32_1 = arith.constant 0 : i32
    return %arg0, %c0_i32, %c0_i32_0 : i32, i32, i32
  }
  func.func @transform_1(%arg0: i32) -> (i32, i32, i32) {
    %c0_i32 = arith.constant 0 : i32
    %c0_i32_0 = arith.constant 0 : i32
    %c0_i32_1 = arith.constant 0 : i32
    %c0_i32_2 = arith.constant 0 : i32
    return %c0_i32, %c0_i32_0, %c0_i32_1 : i32, i32, i32
  }
  func.func @transform_2(%arg0: i32) -> (i32, i32, i32) {
    %c0_i32 = arith.constant 0 : i32
    %c0_i32_0 = arith.constant 0 : i32
    %c0_i32_1 = arith.constant 0 : i32
    %c0_i32_2 = arith.constant 0 : i32
    return %c0_i32, %c0_i32_0, %c0_i32_1 : i32, i32, i32
  }
  func.func @transform_3(%arg0: i32) -> (i32, i32) {
    %c0_i32 = arith.constant 0 : i32
    %c0_i32_0 = arith.constant 0 : i32
    %c0_i32_1 = arith.constant 0 : i32
    return %c0_i32, %c0_i32_0 : i32, i32
  }
  func.func @transform_4(%arg0: i32) -> (i32, i32) {
    %c0_i32 = arith.constant 0 : i32
    %c0_i32_0 = arith.constant 0 : i32
    %c0_i32_1 = arith.constant 0 : i32
    return %c0_i32, %c0_i32_0 : i32, i32
  }
  func.func @transform_5(%arg0: i32) -> (i32, i32) {
    %c0_i32 = arith.constant 0 : i32
    %c0_i32_0 = arith.constant 0 : i32
    %c0_i32_1 = arith.constant 0 : i32
    return %c0_i32, %c0_i32_0 : i32, i32
  }
  func.func @transform_6(%arg0: i32) -> (i32, i32, i32) {
    %c0_i32 = arith.constant 0 : i32
    %c0_i32_0 = arith.constant 0 : i32
    %c0_i32_1 = arith.constant 0 : i32
    return %arg0, %c0_i32, %c0_i32_0 : i32, i32, i32
  }
}

</mosaic_0001>

<bundles_post_ra>
// kernel: tile.18
= control target key start
LH: loop header
LB: loop body
LE: loop exit
PB: predicated region body
PF: predicated region fallthrough
CT: control target
= control target key end

     0   :  { %s22_s0 = inlined_call_operand.vmem [shape: f32[128], index: 0, kind: input, shape index: {}]   ;;  %s23_s1 = inlined_call_operand.vmem [shape: f32[8,128], index: 1, kind: output, shape index: {}]  }
   0x1   :  { %v4_v0 = vld [vmem:[%s22_s0] ss:$0 sm:$0xff] }
   0x2   :  { %5 = vst [vmem:[%s23_s1] sm:$0xff] %v4_v0 }

// kernel: srcnn_forward.1
= control target key start
LH: loop header
LB: loop body
LE: loop exit
PB: predicated region body
PF: predicated region fallthrough
CT: control target
= control target key end

     0   :  { %s3981_s21 = smov 0   ;;  %s5830_s0 = inlined_call_operand.vmem [shape: f32[2,16,16], index: 0, kind: input, shape index: {}]   ;;  %s5831_s1 = inlined_call_operand.vmem [shape: f32[9,16,1024], index: 1, kind: input, shape index: {}]   ;;  %s5832_s2 = inlined_call_operand.vmem [shape: f32[9,128,64], index: 2, kind: input, shape index: {}]   ;;  %s5833_s3 = inlined_call_operand.vmem [shape: f32[25,64], index: 3, kind: input, shape index: {}]   ;;  %s5834_s4 = inlined_call_operand.vmem [shape: f32[4,1024], index: 4, kind: input, shape index: {}]   ;;  %s5835_s5 = inlined_call_operand.vmem [shape: f32[16,400], index: 5, kind: input, shape index: {}]   ;;  %s5836_s6 = inlined_call_operand.vmem [shape: f32[2,1,400], index: 6, kind: output, shape index: {}]  }
   0x1 LB: > { %s3530_s22 = sadd.s32 4294967295, %s3940_s21   ;;  %p3534_p0 = scmp.ge.s32.totalorder %s3940_s21, 1  ;;  %s3940_s21 = sphi %s3981_s21, %s16_s21  }
   0x2   : > { %p212_p1 = scmp.lt.s32.totalorder %s3940_s21, 3 }
   0x4   : > { %p213_p2 = pnand %p3534_p0, %p212_p1 }
   0x5   : > { %p241_p3 = scmp.lt.s32.totalorder (!%p213_p2), %s3530_s22, 1 }
   0x6   : > { %216 = sbr.rel (%p213_p2) target bundleno = 1024 (0x400), region = 44 }
   0xb   : > { %v3546_v0 = vld [vmem:[%s5831_s1 + $0xc0] sm:$0xff]  ;;  %v3548_v1 = vld [vmem:[%s5831_s1 + $0xd0] sm:$0xff]  ;;  %s5838_s22 = smov (!%p241_p3, %s3530_s22), 1  ;;  %v3549_v8 = vld [vmem:[%s5831_s1 + $0xd8] sm:$0xff]  ;;  %vm285_vm0 = vcmask 130048   ;;  %vm2879_vm1 = vcmask 523264  }
   0xc   : > { %v3550_v2 = vld [vmem:[%s5831_s1 + $0xe0] sm:$0xff]  ;;  %303 = vmatpush.msra.mxu1 %v3546_v0  ;;  %343 = vmatpush.msra.mxu3 %v3548_v1  ;;  %v261_v3 = vld [vmem:[%s5831_s1 + $0x50] sm:$0xff]  ;;  %v3547_v9 = vld [vmem:[%s5831_s1 + $0xc8] sm:$0xff]  ;;  %s3873_s23 = sshll.u32 %s5838_s22, 4  ;;  %vm3374_vm2 = vcmask 130112   ;;  %s3537_s30 = sshll.u32 %s5838_s22, 2 }
   0xd   : > { %v3538_v4 = vld [vmem:[%s5831_s1 + $0x80] sm:$0xff]  ;;  %v3540_v5 = vld [vmem:[%s5831_s1 + $0x90] sm:$0xff]  ;;  %383 = vmatpush.msra.mxu0 %v3550_v2  ;;  %506 = vmatpush.msra.mxu2 %v261_v3  ;;  %s4031_s28 = scalar_lea.vmem %s5830_s0, %s3873_s23  ;;  %v3541_v12 = vld [vmem:[%s5831_s1 + $0x98] sm:$0xff]  ;;  %vm3465_vm3 = vcmask 1040384   ;;  %vm3467_vm4 = vcmask 1042434   ;;  %vm3469_vm5 = vcmask 1041408   ;;  %s249_s9 = scalar_lea.vmem %s5836_s6, %s3537_s30 }
   0xe   : > { %v3542_v6 = vld [vmem:[%s5831_s1 + $0xa0] sm:$0xff]  ;;  %v253_v7 = vld [vmem:[%s5831_s1 + $0x10] sm:$0xff]  ;;  %304 = vmatpush.msra.mxu1 %v3538_v4  ;;  %344 = vmatpush.msra.mxu3 %v3540_v5  ;;  %v3539_v15 = vld [vmem:[%s5831_s1 + $0x88] sm:$0xff] }
   0xf   : > { %v259_v10 = vld [vmem:[%s5831_s1 + $0x40] sm:$0xff]  ;;  %384 = vmatpush.msra.mxu0 %v3542_v6  ;;  %507 = vmatpush.msra.mxu2 %v253_v7  ;;  %v265_v11 = vld [vmem:[%s5831_s1 + $0x70] sm:$0xff]  ;;  %v3551_v19 = vld [vmem:[%s5831_s1 + $0xe8] sm:$0xff] }
  0x10   : > { %363 = vmatpush.msrb.mxu3 %v3549_v8  ;;  %323 = vmatpush.msrb.mxu1 %v3547_v9  ;;  %v4037_v13 = vld [vmem:[%s4031_s28 + $0x1] sm:$0xff]  ;;  %v257_v17 = vld [vmem:[%s5831_s1 + $0x30] sm:$0xff]  ;;  %v3553_v26 = vld [vmem:[%s5831_s1 + $0xf8] sm:$0xff] }
  0x11   : > { %v4040_v14 = vld [vmem:[%s4031_s28] sm:$0xff]  ;;  %466 = vmatpush.msrb.mxu0 %v259_v10  ;;  %586 = vmatpush.msrb.mxu2 %v265_v11  ;;  %v3552_v18 = vld [vmem:[%s5831_s1 + $0xf0] sm:$0xff]  ;;  %v3543_v23 = vld [vmem:[%s5831_s1 + $0xa8] sm:$0xff] }
  0x12   : > { %3554 = vmatmul.msk.f32.vlgmr.msra.gmra.mxu1 %vm285_vm0, %v4037_v13  ;;  %3556 = vmatmul.msk.f32.vlgmr.msra.gmra.mxu3 %vm285_vm0, %v4037_v13  ;;  %v251_v16 = vld [vmem:[%s5831_s1] sm:$0xff]  ;;  %v3580_v21 = vld [vmem:[%s5831_s1 + $0x150] sm:$0xff]  ;;  %v260_v27 = vld [vmem:[%s5831_s1 + $0x48] sm:$0xff] }
  0x13   : > { %3558 = vmatmul.msk.f32.vlgmr.msra.gmra.mxu0 %vm285_vm0, %v4037_v13  ;;  %3564 = vmatmul.msk.f32.vlgmr.msra.gmra.mxu2 %vm285_vm0, %v4040_v14  ;;  %v263_v20 = vld [vmem:[%s5831_s1 + $0x60] sm:$0xff]  ;;  %v3544_v22 = vld [vmem:[%s5831_s1 + $0xb0] sm:$0xff]  ;;  %v3545_v30 = vld [vmem:[%s5831_s1 + $0xb8] sm:$0xff] }
  0x14   : > { %364 = vmatpush.msrb.mxu3 %v3541_v12  ;;  %324 = vmatpush.msrb.mxu1 %v3539_v15  ;;  %v255_v24 = vld [vmem:[%s5831_s1 + $0x20] sm:$0xff]  ;;  %v3572_v25 = vld [vmem:[%s5831_s1 + $0x110] sm:$0xff]  ;;  %v252_v31 = vld [vmem:[%s5831_s1 + $0x8] sm:$0xff] }
  0x15   : > { %467 = vmatpush.msrb.mxu0 %v251_v16  ;;  %587 = vmatpush.msrb.mxu2 %v257_v17  ;;  %v3578_v28 = vld [vmem:[%s5831_s1 + $0x140] sm:$0xff]  ;;  %v3584_v29 = vld [vmem:[%s5831_s1 + $0x170] sm:$0xff]  ;;  %v262_v35 = vld [vmem:[%s5831_s1 + $0x58] sm:$0xff] }
  0x16   : > { %423 = vmatpush.msra.mxu3 %v3552_v18  ;;  %403 = vmatpush.msra.mxu1 %v3551_v19  ;;  %v3570_v32 = vld [vmem:[%s5831_s1 + $0x100] sm:$0xff]  ;;  %v3576_v33 = vld [vmem:[%s5831_s1 + $0x130] sm:$0xff]  ;;  %v264_v36 = vld [vmem:[%s5831_s1 + $0x68] sm:$0xff] }
  0x17   : > { %546 = vmatpush.msra.mxu0 %v263_v20  ;;  %687 = vmatpush.msra.mxu2 %v3580_v21  ;;  %v4116_v34 = vld [vmem:[%s4031_s28 + $0x2] sm:$0xff]  ;;  %v3604_v38 = vld [vmem:[%s5831_s1 + $0x1d0] sm:$0xff]  ;;  %v254_v39 = vld [vmem:[%s5831_s1 + $0x18] sm:$0xff] }
  0x18   : > { %424 = vmatpush.msra.mxu3 %v3544_v22  ;;  %404 = vmatpush.msra.mxu1 %v3543_v23  ;;  %v3582_v37 = vld [vmem:[%s5831_s1 + $0x160] sm:$0xff]  ;;  %v256_v40 = vld [vmem:[%s5831_s1 + $0x28] sm:$0xff]  ;;  %v3596_v42 = vld [vmem:[%s5831_s1 + $0x190] sm:$0xff] }
  0x19   : > { %547 = vmatpush.msra.mxu0 %v255_v24  ;;  %688 = vmatpush.msra.mxu2 %v3572_v25  ;;  %v3574_v41 = vld [vmem:[%s5831_s1 + $0x120] sm:$0xff]  ;;  %v266_v43 = vld [vmem:[%s5831_s1 + $0x78] sm:$0xff]  ;;  %v3579_v44 = vld [vmem:[%s5831_s1 + $0x148] sm:$0xff] }
  0x1a   : > { %3555 = vmatmul.msk.f32.vlgmr.msrb.gmra.mxu1 %vm285_vm0, %v4037_v13  ;;  %3557 = vmatmul.msk.f32.vlgmr.msrb.gmra.mxu3 %vm285_vm0, %v4037_v13  ;;  %v3602_v45 = vld [vmem:[%s5831_s1 + $0x1c0] sm:$0xff]  ;;  %v3608_v46 = vld [vmem:[%s5831_s1 + $0x1f0] sm:$0xff]  ;;  %v258_v47 = vld [vmem:[%s5831_s1 + $0x38] sm:$0xff] }
  0x1b   : > { %3562 = vmatmul.msk.f32.vlgmr.msrb.gmra.mxu0 %vm285_vm0, %v4040_v14  ;;  %3568 = vmatmul.msk.f32.vlgmr.msrb.gmra.mxu2 %vm285_vm0, %v4040_v14  ;;  %v3571_v48 = vld [vmem:[%s5831_s1 + $0x108] sm:$0xff]  ;;  %v3594_v49 = vld [vmem:[%s5831_s1 + $0x180] sm:$0xff]  ;;  %v3600_v50 = vld [vmem:[%s5831_s1 + $0x1b0] sm:$0xff] }
  0x1c   : > { %443 = vmatpush.msrb.mxu3 %v3553_v26  ;;  %486 = vmatpush.msrb.mxu1 %v260_v27  ;;  %v4183_v51 = vld [vmem:[%s4031_s28 + $0x3] sm:$0xff]  ;;  %v3581_v52 = vld [vmem:[%s5831_s1 + $0x158] sm:$0xff]  ;;  %v3628_v55 = vld [vmem:[%s5831_s1 + $0x250] sm:$0xff] }
  0x1d   : > { %647 = vmatpush.msrb.mxu0 %v3578_v28  ;;  %767 = vmatpush.msrb.mxu2 %v3584_v29  ;;  %v3583_v53 = vld [vmem:[%s5831_s1 + $0x168] sm:$0xff]  ;;  %v3606_v54 = vld [vmem:[%s5831_s1 + $0x1e0] sm:$0xff]  ;;  %v3573_v56 = vld [vmem:[%s5831_s1 + $0x118] sm:$0xff] }
  0x1e   : > { %444 = vmatpush.msrb.mxu3 %v3545_v30  ;;  %487 = vmatpush.msrb.mxu1 %v252_v31  ;;  %v3575_v57 = vld [vmem:[%s5831_s1 + $0x128] sm:$0xff]  ;;  %v3598_v58 = vld [vmem:[%s5831_s1 + $0x1a0] sm:$0xff]  ;;  %v3620_v59 = vld [vmem:[%s5831_s1 + $0x210] sm:$0xff] }
  0x1f   : > { %648 = vmatpush.msrb.mxu0 %v3570_v32  ;;  %768 = vmatpush.msrb.mxu2 %v3576_v33  ;;  %v3585_v60 = vld [vmem:[%s5831_s1 + $0x178] sm:$0xff]  ;;  %v3603_v61 = vld [vmem:[%s5831_s1 + $0x1c8] sm:$0xff]  ;;  %v3626_v62 = vld [vmem:[%s5831_s1 + $0x240] sm:$0xff] }
  0x20   : > { %v3632_v63 = vld [vmem:[%s5831_s1 + $0x270] sm:$0xff]  ;;  %v3577_v0 = vld [vmem:[%s5831_s1 + $0x138] sm:$0xff]  ;;  %v3595_v1 = vld [vmem:[%s5831_s1 + $0x188] sm:$0xff] }
  0x21   : > { %v3618_v2 = vld [vmem:[%s5831_s1 + $0x200] sm:$0xff]  ;;  %v3624_v3 = vld [vmem:[%s5831_s1 + $0x230] sm:$0xff]  ;;  %v3605_v5 = vld [vmem:[%s5831_s1 + $0x1d8] sm:$0xff] }
  0x22   : > { %3559 = vmatmul.msk.f32.vlgmr.msra.gmra.mxu1 %vm285_vm0, %v4037_v13  ;;  %3560 = vmatmul.msk.f32.vlgmr.msra.gmra.mxu3 %vm285_vm0, %v4037_v13  ;;  %v4250_v4 = vld [vmem:[%s4031_s28 + $0x4] sm:$0xff]  ;;  %v3652_v8 = vld [vmem:[%s5831_s1 + $0x2d0] sm:$0xff]  ;;  %v3597_v9 = vld [vmem:[%s5831_s1 + $0x198] sm:$0xff] }
  0x23   : > { %3566 = vmatmul.msk.f32.vlgmr.msra.gmra.mxu0 %vm285_vm0, %v4040_v14  ;;  %3588 = vmatmul.msk.f32.vlgmr.msra.gmra.mxu2 %vm285_vm0, %v4116_v34  ;;  %v3607_v6 = vld [vmem:[%s5831_s1 + $0x1e8] sm:$0xff]  ;;  %v3630_v7 = vld [vmem:[%s5831_s1 + $0x260] sm:$0xff]  ;;  %v3644_v12 = vld [vmem:[%s5831_s1 + $0x290] sm:$0xff] }
  0x24   : > { %526 = vmatpush.msra.mxu3 %v262_v35  ;;  %566 = vmatpush.msra.mxu1 %v264_v36  ;;  %v3599_v10 = vld [vmem:[%s5831_s1 + $0x1a8] sm:$0xff]  ;;  %v3622_v11 = vld [vmem:[%s5831_s1 + $0x220] sm:$0xff]  ;;  %v3656_v16 = vld [vmem:[%s5831_s1 + $0x2f0] sm:$0xff] }
  0x25   : > { %727 = vmatpush.msra.mxu0 %v3582_v37  ;;  %876 = vmatpush.msra.mxu2 %v3604_v38  ;;  %v3650_v15 = vld [vmem:[%s5831_s1 + $0x2c0] sm:$0xff]  ;;  %v3601_v17 = vld [vmem:[%s5831_s1 + $0x1b8] sm:$0xff]  ;;  %v3619_v18 = vld [vmem:[%s5831_s1 + $0x208] sm:$0xff] }
  0x26   : > { %527 = vmatpush.msra.mxu3 %v254_v39  ;;  %567 = vmatpush.msra.mxu1 %v256_v40  ;;  %v3642_v19 = vld [vmem:[%s5831_s1 + $0x280] sm:$0xff]  ;;  %v3648_v20 = vld [vmem:[%s5831_s1 + $0x2b0] sm:$0xff]  ;;  %v3629_v22 = vld [vmem:[%s5831_s1 + $0x258] sm:$0xff] }
  0x27   : > { %728 = vmatpush.msra.mxu0 %v3574_v41  ;;  %877 = vmatpush.msra.mxu2 %v3596_v42  ;;  %v4317_v21 = vld [vmem:[%s4031_s28 + $0x5] sm:$0xff]  ;;  %v3676_v25 = vld [vmem:[%s5831_s1 + $0x350] sm:$0xff]  ;;  %v3621_v26 = vld [vmem:[%s5831_s1 + $0x218] sm:$0xff] }
  0x28   : > { %v3631_v23 = vld [vmem:[%s5831_s1 + $0x268] sm:$0xff]  ;;  %v3654_v24 = vld [vmem:[%s5831_s1 + $0x2e0] sm:$0xff]  ;;  %v3668_v29 = vld [vmem:[%s5831_s1 + $0x310] sm:$0xff] }
  0x29   : > { %v3623_v27 = vld [vmem:[%s5831_s1 + $0x228] sm:$0xff]  ;;  %v3646_v28 = vld [vmem:[%s5831_s1 + $0x2a0] sm:$0xff]  ;;  %v3633_v30 = vld [vmem:[%s5831_s1 + $0x278] sm:$0xff] }
  0x2a   : > { %3561 = vmatmul.msk.f32.vlgmr.msrb.gmra.mxu3 %vm285_vm0, %v4037_v13  ;;  %3563 = vmatmul.msk.f32.vlgmr.msrb.gmra.mxu1 %vm285_vm0, %v4040_v14  ;;  %v3609_v13 = vld [vmem:[%s5831_s1 + $0x1f8] sm:$0xff]  ;;  %v3651_v31 = vld [vmem:[%s5831_s1 + $0x2c8] sm:$0xff]  ;;  %v3674_v32 = vld [vmem:[%s5831_s1 + $0x340] sm:$0xff] }
  0x2b   : > { %3586 = vmatmul.msk.f32.vlgmr.msrb.gmra.mxu0 %vm285_vm0, %v4116_v34  ;;  %3592 = vmatmul.msk.f32.vlgmr.msrb.gmra.mxu2 %vm285_vm0, %v4116_v34  ;;  %v3680_v33 = vld [vmem:[%s5831_s1 + $0x370] sm:$0xff]  ;;  %v3643_v35 = vld [vmem:[%s5831_s1 + $0x288] sm:$0xff]  ;;  %v3666_v36 = vld [vmem:[%s5831_s1 + $0x300] sm:$0xff] }
  0x2c   : > { %606 = vmatpush.msrb.mxu3 %v266_v43  ;;  %667 = vmatpush.msrb.mxu1 %v3579_v44  ;;  %v3672_v37 = vld [vmem:[%s5831_s1 + $0x330] sm:$0xff]  ;;  %v4384_v38 = vld [vmem:[%s4031_s28 + $0x6] sm:$0xff]  ;;  %v3653_v39 = vld [vmem:[%s5831_s1 + $0x2d8] sm:$0xff] }
  0x2d   : > { %836 = vmatpush.msrb.mxu0 %v3602_v45  ;;  %956 = vmatpush.msrb.mxu2 %v3608_v46  ;;  %v3655_v40 = vld [vmem:[%s5831_s1 + $0x2e8] sm:$0xff]  ;;  %v3678_v41 = vld [vmem:[%s5831_s1 + $0x360] sm:$0xff]  ;;  %v3700_v42 = vld [vmem:[%s5831_s1 + $0x3d0] sm:$0xff] }
  0x2e   : > { %607 = vmatpush.msrb.mxu3 %v258_v47  ;;  %668 = vmatpush.msrb.mxu1 %v3571_v48  ;;  %v3645_v43 = vld [vmem:[%s5831_s1 + $0x298] sm:$0xff]  ;;  %v3647_v44 = vld [vmem:[%s5831_s1 + $0x2a8] sm:$0xff]  ;;  %v3670_v45 = vld [vmem:[%s5831_s1 + $0x320] sm:$0xff] }
  0x2f   : > { %837 = vmatpush.msrb.mxu0 %v3594_v49  ;;  %957 = vmatpush.msrb.mxu2 %v3600_v50  ;;  %v3692_v46 = vld [vmem:[%s5831_s1 + $0x390] sm:$0xff]  ;;  %v3657_v47 = vld [vmem:[%s5831_s1 + $0x2f8] sm:$0xff]  ;;  %v3675_v48 = vld [vmem:[%s5831_s1 + $0x348] sm:$0xff] }
  0x30   : > { %v3698_v49 = vld [vmem:[%s5831_s1 + $0x3c0] sm:$0xff]  ;;  %v3704_v50 = vld [vmem:[%s5831_s1 + $0x3f0] sm:$0xff] }
  0x32   : > { %3565 = vmatmul.msk.f32.vlgmr.msra.gmra.mxu3 %vm285_vm0, %v4040_v14  ;;  %3567 = vmatmul.msk.f32.vlgmr.msra.gmra.mxu1 %vm285_vm0, %v4040_v14 }
  0x33   : > { %3590 = vmatmul.msk.f32.vlgmr.msra.gmra.mxu0 %vm285_vm0, %v4116_v34  ;;  %3612 = vmatmul.msk.f32.vlgmr.msra.gmra.mxu2 %vm285_vm0, %v4183_v51 }
  0x34   : > { %707 = vmatpush.msra.mxu3 %v3581_v52  ;;  %747 = vmatpush.msra.mxu1 %v3583_v53  ;;  %v3667_v52 = vld [vmem:[%s5831_s1 + $0x308] sm:$0xff]  ;;  %v3690_v53 = vld [vmem:[%s5831_s1 + $0x380] sm:$0xff] }
  0x35   : > { %916 = vmatpush.msra.mxu0 %v3606_v54  ;;  %1065 = vmatpush.msra.mxu2 %v3628_v55  ;;  %v3696_v54 = vld [vmem:[%s5831_s1 + $0x3b0] sm:$0xff]  ;;  %v4451_v55 = vld [vmem:[%s4031_s28 + $0x7] sm:$0xff] }
  0x36   : > { %708 = vmatpush.msra.mxu3 %v3573_v56  ;;  %748 = vmatpush.msra.mxu1 %v3575_v57  ;;  %v3677_v56 = vld [vmem:[%s5831_s1 + $0x358] sm:$0xff]  ;;  %v3679_v57 = vld [vmem:[%s5831_s1 + $0x368] sm:$0xff] }
  0x37   : > { %917 = vmatpush.msra.mxu0 %v3598_v58  ;;  %1066 = vmatpush.msra.mxu2 %v3620_v59  ;;  %v3702_v58 = vld [vmem:[%s5831_s1 + $0x3e0] sm:$0xff]  ;;  %v3724_v59 = vld [vmem:[%s5831_s1 + $0x450] sm:$0xff] }
  0x3a   : > { %3569 = vmatmul.msk.f32.vlgmr.msrb.gmra.mxu3 %vm285_vm0, %v4040_v14  ;;  %3587 = vmatmul.msk.f32.vlgmr.msrb.gmra.mxu1 %vm285_vm0, %v4116_v34  ;;  %v3627_v14 = vld [vmem:[%s5831_s1 + $0x248] sm:$0xff] }
  0x3b   : > { %3610 = vmatmul.msk.f32.vlgmr.msrb.gmra.mxu0 %vm285_vm0, %v4183_v51  ;;  %3616 = vmatmul.msk.f32.vlgmr.msrb.gmra.mxu2 %vm285_vm0, %v4183_v51 }
  0x3c   : > { %787 = vmatpush.msrb.mxu3 %v3585_v60  ;;  %856 = vmatpush.msrb.mxu1 %v3603_v61  ;;  %v3669_v60 = vld [vmem:[%s5831_s1 + $0x318] sm:$0xff]  ;;  %v3671_v61 = vld [vmem:[%s5831_s1 + $0x328] sm:$0xff] }
  0x3d   : > { %1025 = vmatpush.msrb.mxu0 %v3626_v62  ;;  %1145 = vmatpush.msrb.mxu2 %v3632_v63  ;;  %v3694_v62 = vld [vmem:[%s5831_s1 + $0x3a0] sm:$0xff]  ;;  %v3716_v63 = vld [vmem:[%s5831_s1 + $0x410] sm:$0xff] }
  0x3e   : > { %788 = vmatpush.msrb.mxu3 %v3577_v0  ;;  %857 = vmatpush.msrb.mxu1 %v3595_v1  ;;  %v3681_v0 = vld [vmem:[%s5831_s1 + $0x378] sm:$0xff]  ;;  %v3699_v1 = vld [vmem:[%s5831_s1 + $0x3c8] sm:$0xff] }
  0x3f   : > { %1026 = vmatpush.msrb.mxu0 %v3618_v2  ;;  %1146 = vmatpush.msrb.mxu2 %v3624_v3  ;;  %v3722_v2 = vld [vmem:[%s5831_s1 + $0x440] sm:$0xff]  ;;  %v3728_v3 = vld [vmem:[%s5831_s1 + $0x470] sm:$0xff] }
  0x42   : > { %3589 = vmatmul.msk.f32.vlgmr.msra.gmra.mxu3 %vm285_vm0, %v4116_v34  ;;  %3591 = vmatmul.msk.f32.vlgmr.msra.gmra.mxu1 %vm285_vm0, %v4116_v34 }
  0x43   : > { %3614 = vmatmul.msk.f32.vlgmr.msra.gmra.mxu0 %vm285_vm0, %v4183_v51  ;;  %3636 = vmatmul.msk.f32.vlgmr.msra.gmra.mxu2 %vm285_vm0, %v4250_v4 }
  0x44   : > { %896 = vmatpush.msra.mxu3 %v3605_v5  ;;  %936 = vmatpush.msra.mxu1 %v3607_v6  ;;  %v3691_v5 = vld [vmem:[%s5831_s1 + $0x388] sm:$0xff]  ;;  %v3714_v6 = vld [vmem:[%s5831_s1 + $0x400] sm:$0xff] }
  0x45   : > { %1105 = vmatpush.msra.mxu0 %v3630_v7  ;;  %1254 = vmatpush.msra.mxu2 %v3652_v8  ;;  %v3720_v7 = vld [vmem:[%s5831_s1 + $0x430] sm:$0xff]  ;;  %v1746_v8 = vld [vmem:[%s4031_s28 + $0x8] sm:$0xff] }
  0x46   : > { %897 = vmatpush.msra.mxu3 %v3597_v9  ;;  %937 = vmatpush.msra.mxu1 %v3599_v10  ;;  %v3701_v9 = vld [vmem:[%s5831_s1 + $0x3d8] sm:$0xff]  ;;  %v3703_v10 = vld [vmem:[%s5831_s1 + $0x3e8] sm:$0xff] }
  0x47   : > { %1106 = vmatpush.msra.mxu0 %v3622_v11  ;;  %1255 = vmatpush.msra.mxu2 %v3644_v12  ;;  %v3726_v11 = vld [vmem:[%s5831_s1 + $0x460] sm:$0xff]  ;;  %v3693_v12 = vld [vmem:[%s5831_s1 + $0x398] sm:$0xff] }
  0x4a   : > { %3593 = vmatmul.msk.f32.vlgmr.msrb.gmra.mxu3 %vm285_vm0, %v4116_v34  ;;  %3611 = vmatmul.msk.f32.vlgmr.msrb.gmra.mxu1 %vm285_vm0, %v4183_v51  ;;  %v3625_v34 = vld [vmem:[%s5831_s1 + $0x238] sm:$0xff] }
  0x4b   : > { %3634 = vmatmul.msk.f32.vlgmr.msrb.gmra.mxu0 %vm285_vm0, %v4250_v4  ;;  %3640 = vmatmul.msk.f32.vlgmr.msrb.gmra.mxu2 %vm285_vm0, %v4250_v4 }
  0x4c   : > { %976 = vmatpush.msrb.mxu3 %v3609_v13  ;;  %1045 = vmatpush.msrb.mxu1 %v3627_v14  ;;  %v3695_v13 = vld [vmem:[%s5831_s1 + $0x3a8] sm:$0xff]  ;;  %v3718_v14 = vld [vmem:[%s5831_s1 + $0x420] sm:$0xff] }
  0x4d   : > { %1214 = vmatpush.msrb.mxu0 %v3650_v15  ;;  %1334 = vmatpush.msrb.mxu2 %v3656_v16  ;;  %v3705_v15 = vld [vmem:[%s5831_s1 + $0x3f8] sm:$0xff]  ;;  %v3723_v16 = vld [vmem:[%s5831_s1 + $0x448] sm:$0xff] }
  0x4e   : > { %977 = vmatpush.msrb.mxu3 %v3601_v17  ;;  %1046 = vmatpush.msrb.mxu1 %v3619_v18  ;;  %v3697_v17 = vld [vmem:[%s5831_s1 + $0x3b8] sm:$0xff]  ;;  %v3715_v18 = vld [vmem:[%s5831_s1 + $0x408] sm:$0xff] }
  0x4f   : > { %1215 = vmatpush.msrb.mxu0 %v3642_v19  ;;  %1335 = vmatpush.msrb.mxu2 %v3648_v20 }
  0x52   : > { %3613 = vmatmul.msk.f32.vlgmr.msra.gmra.mxu3 %vm285_vm0, %v4183_v51  ;;  %3615 = vmatmul.msk.f32.vlgmr.msra.gmra.mxu1 %vm285_vm0, %v4183_v51 }
  0x53   : > { %3638 = vmatmul.msk.f32.vlgmr.msra.gmra.mxu0 %vm285_vm0, %v4250_v4  ;;  %3660 = vmatmul.msk.f32.vlgmr.msra.gmra.mxu2 %vm285_vm0, %v4317_v21 }
  0x54   : > { %1085 = vmatpush.msra.mxu3 %v3629_v22  ;;  %1125 = vmatpush.msra.mxu1 %v3631_v23  ;;  %v3727_v22 = vld [vmem:[%s5831_s1 + $0x468] sm:$0xff]  ;;  %v3717_v23 = vld [vmem:[%s5831_s1 + $0x418] sm:$0xff] }
  0x55   : > { %1294 = vmatpush.msra.mxu0 %v3654_v24  ;;  %1443 = vmatpush.msra.mxu2 %v3676_v25  ;;  %v3719_v24 = vld [vmem:[%s5831_s1 + $0x428] sm:$0xff] }
  0x56   : > { %1086 = vmatpush.msra.mxu3 %v3621_v26  ;;  %1126 = vmatpush.msra.mxu1 %v3623_v27 }
  0x57   : > { %1295 = vmatpush.msra.mxu0 %v3646_v28  ;;  %1444 = vmatpush.msra.mxu2 %v3668_v29  ;;  %v3729_v29 = vld [vmem:[%s5831_s1 + $0x478] sm:$0xff] }
  0x5a   : > { %3617 = vmatmul.msk.f32.vlgmr.msrb.gmra.mxu3 %vm285_vm0, %v4183_v51  ;;  %3635 = vmatmul.msk.f32.vlgmr.msrb.gmra.mxu1 %vm285_vm0, %v4250_v4  ;;  %v3649_v51 = vld [vmem:[%s5831_s1 + $0x2b8] sm:$0xff] }
  0x5b   : > { %3658 = vmatmul.msk.f32.vlgmr.msrb.gmra.mxu0 %vm285_vm0, %v4317_v21  ;;  %3664 = vmatmul.msk.f32.vlgmr.msrb.gmra.mxu2 %vm285_vm0, %v4317_v21 }
  0x5c   : > { %1165 = vmatpush.msrb.mxu3 %v3633_v30  ;;  %1234 = vmatpush.msrb.mxu1 %v3651_v31  ;;  %v3721_v30 = vld [vmem:[%s5831_s1 + $0x438] sm:$0xff] }
  0x5d   : > { %1403 = vmatpush.msrb.mxu0 %v3674_v32  ;;  %1523 = vmatpush.msrb.mxu2 %v3680_v33 }
  0x5e   : > { %1166 = vmatpush.msrb.mxu3 %v3625_v34  ;;  %1235 = vmatpush.msrb.mxu1 %v3643_v35 }
  0x5f   : > { %1404 = vmatpush.msrb.mxu0 %v3666_v36  ;;  %1524 = vmatpush.msrb.mxu2 %v3672_v37 }
  0x62   : > { %3637 = vmatmul.msk.f32.vlgmr.msra.gmra.mxu3 %vm285_vm0, %v4250_v4  ;;  %3639 = vmatmul.msk.f32.vlgmr.msra.gmra.mxu1 %vm285_vm0, %v4250_v4 }
  0x63   : > { %3662 = vmatmul.msk.f32.vlgmr.msra.gmra.mxu0 %vm285_vm0, %v4317_v21  ;;  %3684 = vmatmul.msk.f32.vlgmr.msra.gmra.mxu2 %vm285_vm0, %v4384_v38 }
  0x64   : > { %1274 = vmatpush.msra.mxu3 %v3653_v39  ;;  %1314 = vmatpush.msra.mxu1 %v3655_v40 }
  0x65   : > { %1483 = vmatpush.msra.mxu0 %v3678_v41  ;;  %1632 = vmatpush.msra.mxu2 %v3700_v42 }
  0x66   : > { %1275 = vmatpush.msra.mxu3 %v3645_v43  ;;  %1315 = vmatpush.msra.mxu1 %v3647_v44 }
  0x67   : > { %1484 = vmatpush.msra.mxu0 %v3670_v45  ;;  %1633 = vmatpush.msra.mxu2 %v3692_v46 }
  0x6a   : > { %3641 = vmatmul.msk.f32.vlgmr.msrb.gmra.mxu3 %vm285_vm0, %v4250_v4  ;;  %3659 = vmatmul.msk.f32.vlgmr.msrb.gmra.mxu1 %vm285_vm0, %v4317_v21  ;;  %v3673_v4 = vld [vmem:[%s5831_s1 + $0x338] sm:$0xff] }
  0x6b   : > { %3682 = vmatmul.msk.f32.vlgmr.msrb.gmra.mxu0 %vm285_vm0, %v4384_v38  ;;  %3688 = vmatmul.msk.f32.vlgmr.msrb.gmra.mxu2 %vm285_vm0, %v4384_v38 }
  0x6c   : > { %1354 = vmatpush.msrb.mxu3 %v3657_v47  ;;  %1423 = vmatpush.msrb.mxu1 %v3675_v48 }
  0x6d   : > { %1592 = vmatpush.msrb.mxu0 %v3698_v49  ;;  %1712 = vmatpush.msrb.mxu2 %v3704_v50 }
  0x6e   : > { %1355 = vmatpush.msrb.mxu3 %v3649_v51  ;;  %1424 = vmatpush.msrb.mxu1 %v3667_v52 }
  0x6f   : > { %1593 = vmatpush.msrb.mxu0 %v3690_v53  ;;  %1713 = vmatpush.msrb.mxu2 %v3696_v54 }
  0x72   : > { %3661 = vmatmul.msk.f32.vlgmr.msra.gmra.mxu3 %vm285_vm0, %v4317_v21  ;;  %3663 = vmatmul.msk.f32.vlgmr.msra.gmra.mxu1 %vm285_vm0, %v4317_v21 }
  0x73   : > { %3686 = vmatmul.msk.f32.vlgmr.msra.gmra.mxu0 %vm285_vm0, %v4384_v38  ;;  %3708 = vmatmul.msk.f32.vlgmr.msra.gmra.mxu2 %vm285_vm0, %v4451_v55 }
  0x74   : > { %1463 = vmatpush.msra.mxu3 %v3677_v56  ;;  %1503 = vmatpush.msra.mxu1 %v3679_v57 }
  0x75   : > { %1672 = vmatpush.msra.mxu0 %v3702_v58  ;;  %1821 = vmatpush.msra.mxu2 %v3724_v59 }
  0x76   : > { %1464 = vmatpush.msra.mxu3 %v3669_v60  ;;  %1504 = vmatpush.msra.mxu1 %v3671_v61 }
  0x77   : > { %1673 = vmatpush.msra.mxu0 %v3694_v62  ;;  %1822 = vmatpush.msra.mxu2 %v3716_v63 }
  0x7a   : > { %3665 = vmatmul.msk.f32.vlgmr.msrb.gmra.mxu3 %vm285_vm0, %v4317_v21  ;;  %3683 = vmatmul.msk.f32.vlgmr.msrb.gmra.mxu1 %vm285_vm0, %v4384_v38  ;;  %v3725_v21 = vld [vmem:[%s5831_s1 + $0x458] sm:$0xff] }
  0x7b   : > { %3706 = vmatmul.msk.f32.vlgmr.msrb.gmra.mxu0 %vm285_vm0, %v4451_v55  ;;  %3712 = vmatmul.msk.f32.vlgmr.msrb.gmra.mxu2 %vm285_vm0, %v4451_v55 }
  0x7c   : > { %1543 = vmatpush.msrb.mxu3 %v3681_v0  ;;  %1612 = vmatpush.msrb.mxu1 %v3699_v1 }
  0x7d   : > { %1781 = vmatpush.msrb.mxu0 %v3722_v2  ;;  %1901 = vmatpush.msrb.mxu2 %v3728_v3 }
  0x7e   : > { %1544 = vmatpush.msrb.mxu3 %v3673_v4  ;;  %1613 = vmatpush.msrb.mxu1 %v3691_v5 }
  0x7f   : > { %1782 = vmatpush.msrb.mxu0 %v3714_v6  ;;  %1902 = vmatpush.msrb.mxu2 %v3720_v7 }
  0x82   : > { %3685 = vmatmul.msk.f32.vlgmr.msra.gmra.mxu3 %vm285_vm0, %v4384_v38  ;;  %3687 = vmatmul.msk.f32.vlgmr.msra.gmra.mxu1 %vm285_vm0, %v4384_v38 }
  0x83   : > { %3710 = vmatmul.msk.f32.vlgmr.msra.gmra.mxu0 %vm285_vm0, %v4451_v55  ;;  %3732 = vmatmul.msk.f32.vlgmr.msra.gmra.mxu2 %vm285_vm0, %v1746_v8 }
  0x84   : > { %1652 = vmatpush.msra.mxu3 %v3701_v9  ;;  %1692 = vmatpush.msra.mxu1 %v3703_v10  ;;  %v3942_v9 = vmov 0.0  }
  0x85   : > { %1861 = vmatpush.msra.mxu0 %v3726_v11  ;;  %1996 = vst [vmem:[#allocation2] sm:$0xff] %v3942_v9  ;;  %v2224_v11 = vld [vmem:[%s5832_s2 + $0x78] sm:$0xff] }
  0x86   : > { %1653 = vmatpush.msra.mxu3 %v3693_v12  ;;  %1693 = vmatpush.msra.mxu1 %v3695_v13  ;;  %1997 = vst [vmem:[#allocation2 + $0x8] sm:$0x3] %v3942_v9  ;;  %v2223_v13 = vld [vmem:[%s5832_s2 + $0x70] sm:$0xff] }
  0x87   : > { %1862 = vmatpush.msra.mxu0 %v3718_v14  ;;  %1998 = vst [vmem:[#allocation2 + $0x10] sm:$0xff] %v3942_v9  ;;  %v2222_v14 = vld [vmem:[%s5832_s2 + $0x68] sm:$0xff] }
  0x88   : > { %1999 = vst [vmem:[#allocation2 + $0x18] sm:$0x3] %v3942_v9 }
  0x89   : > { %2000 = vst [vmem:[#allocation2 + $0x20] sm:$0xff] %v3942_v9 }
  0x8a   : > { %3689 = vmatmul.msk.f32.vlgmr.msrb.gmra.mxu3 %vm285_vm0, %v4384_v38  ;;  %3707 = vmatmul.msk.f32.vlgmr.msrb.gmra.mxu1 %vm285_vm0, %v4451_v55  ;;  %2001 = vst [vmem:[#allocation2 + $0x28] sm:$0x3] %v3942_v9 }
  0x8b   : > { %3730 = vmatmul.msk.f32.vlgmr.msrb.gmra.mxu0 %vm285_vm0, %v1746_v8  ;;  %3736 = vmatmul.msk.f32.vlgmr.msrb.gmra.mxu2 %vm285_vm0, %v1746_v8  ;;  %2002 = vst [vmem:[#allocation2 + $0x30] sm:$0xff] %v3942_v9 }
  0x8c   : > { %1732 = vmatpush.msrb.mxu3 %v3705_v15  ;;  %1801 = vmatpush.msrb.mxu1 %v3723_v16  ;;  %v2221_v16 = vld [vmem:[%s5832_s2 + $0x60] sm:$0xff]  ;;  %2003 = vst [vmem:[#allocation2 + $0x38] sm:$0x3] %v3942_v9 }
  0x8d   : > { %2004 = vst [vmem:[#allocation2 + $0x40] sm:$0xff] %v3942_v9 }
  0x8e   : > { %1733 = vmatpush.msrb.mxu3 %v3697_v17  ;;  %1802 = vmatpush.msrb.mxu1 %v3715_v18  ;;  %2005 = vst [vmem:[#allocation2 + $0x48] sm:$0x3] %v3942_v9 }
  0x8f   : > { %v4561_v19 = vpop.f32.mrf.mxu1  ;;  %2006 = vst [vmem:[#allocation2 + $0x50] sm:$0xff] %v3942_v9 }
  0x90   : > { %v4563_v20 = vpop.f32.mrf.mxu0  ;;  %2007 = vst [vmem:[#allocation2 + $0x58] sm:$0x3] %v3942_v9 }
  0x91   : > { %2008 = vst [vmem:[#allocation2 + $0x60] sm:$0xff] %v3942_v9 }
  0x92   : > { %3709 = vmatmul.msk.f32.vlgmr.msra.gmra.mxu3 %vm285_vm0, %v4451_v55  ;;  %3711 = vmatmul.msk.f32.vlgmr.msra.gmra.mxu1 %vm285_vm0, %v4451_v55  ;;  %2009 = vst [vmem:[#allocation2 + $0x68] sm:$0x3] %v3942_v9 }
  0x93   : > { %3734 = vmatmul.msk.f32.vlgmr.msra.gmra.mxu0 %vm285_vm0, %v1746_v8  ;;  %1841 = vmatpush.msra.mxu3 %v3725_v21  ;;  %v3754_v21 = vld [vmem:[%s5832_s2 + $0xf8] sm:$0xff]  ;;  %2010 = vst [vmem:[#allocation2 + $0x70] sm:$0xff] %v3942_v9 }
  0x94   : > { %1881 = vmatpush.msra.mxu1 %v3727_v22  ;;  %v2220_v22 = vld [vmem:[%s5832_s2 + $0x58] sm:$0xff]  ;;  %2250 = vmatpush.msrb.mxu0 %v3754_v21  ;;  %2011 = vst [vmem:[#allocation2 + $0x78] sm:$0x3] %v3942_v9 }
  0x95   : > { %v4582_v25 = vpop.f32.mrf.mxu3  ;;  %1842 = vmatpush.msra.mxu3 %v3717_v23  ;;  %v3786_v23 = vld [vmem:[%s5832_s2 + $0x1f8] sm:$0xff]  ;;  %3874 = vmatpush.msra.mxu2 %v3754_v21  ;;  %v3784_v21 = vld [vmem:[%s5832_s2 + $0x1e8] sm:$0xff]  ;;  %2012 = vst [vmem:[#allocation2 + $0x80] sm:$0xff] %v3942_v9 }
  0x96   : > { %v4584_v26 = vpop.f32.mrf.mxu2  ;;  %1882 = vmatpush.msra.mxu1 %v3719_v24  ;;  %2013 = vst [vmem:[#allocation2 + $0x88] sm:$0x3] %v3942_v9 }
  0x97   : > { %v4586_v27 = vpop.f32.mrf.mxu1  ;;  %2014 = vst [vmem:[#allocation2 + $0x90] sm:$0xff] %v3942_v9 }
  0x98   : > { %v4588_v28 = vpop.f32.mrf.mxu0  ;;  %2015 = vst [vmem:[#allocation2 + $0x98] sm:$0x3] %v3942_v9 }
  0x9a   : > { %3713 = vmatmul.msk.f32.vlgmr.msrb.gmra.mxu3 %vm285_vm0, %v4451_v55  ;;  %3731 = vmatmul.msk.f32.vlgmr.msrb.gmra.mxu1 %vm285_vm0, %v1746_v8 }
  0x9b   : > { %1921 = vmatpush.msrb.mxu3 %v3729_v29  ;;  %2291 = vmatpush.msrb.mxu1 %v2224_v11  ;;  %v510_v29 = vadd.f32 %v4584_v26, %v4582_v25  ;;  %v2219_v11 = vld [vmem:[%s5832_s2 + $0x50] sm:$0xff]  ;;  %v470_v25 = vadd.f32 %v4588_v28, %v4561_v19 }
  0x9d   : > { %v4599_v31 = vpop.f32.mrf.mxu3  ;;  %1922 = vmatpush.msrb.mxu3 %v3721_v30  ;;  %2292 = vmatpush.msrb.mxu1 %v2223_v13  ;;  %v3753_v30 = vld [vmem:[%s5832_s2 + $0xf0] sm:$0xff] }
  0x9e   : > { %v4601_v32 = vpop.f32.mrf.mxu2  ;;  %v3785_v13 = vld [vmem:[%s5832_s2 + $0x1f0] sm:$0xff]  ;;  %2251 = vmatpush.msrb.mxu0 %v3753_v30  ;;  %3875 = vmatpush.msra.mxu2 %v3753_v30 }
  0x9f   : > { %v4603_v33 = vpop.f32.mrf.mxu1  ;;  %2293 = vmatpush.msrb.mxu1 %v2222_v14  ;;  %v3752_v14 = vld [vmem:[%s5832_s2 + $0xe8] sm:$0xff] }
  0xa0   : > { %v4605_v34 = vpop.f32.mrf.mxu0  ;;  %2252 = vmatpush.msrb.mxu0 %v3752_v14  ;;  %3876 = vmatpush.msra.mxu2 %v3752_v14 }
  0xa1   : > { %2294 = vmatpush.msrb.mxu1 %v2221_v16  ;;  %v2218_v16 = vld [vmem:[%s5832_s2 + $0x48] sm:$0xff] }
  0xa2   : > { %3733 = vmatmul.msk.f32.vlgmr.msra.gmra.mxu3 %vm285_vm0, %v1746_v8  ;;  %3735 = vmatmul.msk.f32.vlgmr.msra.gmra.mxu1 %vm285_vm0, %v1746_v8 }
  0xa3   : > { %2295 = vmatpush.msrb.mxu1 %v2220_v22  ;;  %2431 = vmatpush.msra.mxu3 %v3786_v23  ;;  %v3751_v22 = vld [vmem:[%s5832_s2 + $0xe0] sm:$0xff] }
  0xa4   : > { %v2217_v23 = vld [vmem:[%s5832_s2 + $0x40] sm:$0xff]  ;;  %2253 = vmatpush.msrb.mxu0 %v3751_v22  ;;  %3877 = vmatpush.msra.mxu2 %v3751_v22  ;;  %v3780_v22 = vld [vmem:[%s5832_s2 + $0x1c8] sm:$0xff] }
  0xa5   : > { %v4609_v35 = vpop.f32.mrf.mxu3  ;;  %2296 = vmatpush.msrb.mxu1 %v2219_v11  ;;  %2432 = vmatpush.msra.mxu3 %v3785_v13  ;;  %v3750_v13 = vld [vmem:[%s5832_s2 + $0xd8] sm:$0xff] }
  0xa6   : > { %v4611_v36 = vpop.f32.mrf.mxu2  ;;  %2254 = vmatpush.msrb.mxu0 %v3750_v13  ;;  %3878 = vmatpush.msra.mxu2 %v3750_v13 }
  0xa7   : > { %v4613_v37 = vpop.f32.mrf.mxu1  ;;  %v795_v26 = vadd.f32 %v4611_v36, %v510_v29  ;;  %2297 = vmatpush.msrb.mxu1 %v2218_v16  ;;  %2433 = vmatpush.msra.mxu3 %v3784_v21  ;;  %v3783_v29 = vld [vmem:[%s5832_s2 + $0x1e0] sm:$0xff] }
  0xa8   : > { %v4615_v38 = vpop.f32.mrf.mxu0 }
  0xa9   : > { %v793_v19 = vadd.f32 %v4615_v38, %v470_v25  ;;  %2298 = vmatpush.msrb.mxu1 %v2217_v23  ;;  %2434 = vmatpush.msra.mxu3 %v3783_v29  ;;  %v2216_v25 = vld [vmem:[%s5832_s2 + $0x38] sm:$0xff] }
  0xaa   : > { %3737 = vmatmul.msk.f32.vlgmr.msrb.gmra.mxu3 %vm285_vm0, %v1746_v8 }
  0xab   : > { %2299 = vmatpush.msrb.mxu1 %v2216_v25  ;;  %v3779_v25 = vld [vmem:[%s5832_s2 + $0x1c0] sm:$0xff] }
  0xad   : > { %v4618_v39 = vpop.f32.mrf.mxu3 }
  0xae   : > { %v4620_v40 = vpop.f32.mrf.mxu2 }
  0xaf   : > { %v4622_v41 = vpop.f32.mrf.mxu1 }
  0xb0   : > { %v4624_v42 = vpop.f32.mrf.mxu0 }
  0xb5   : > { %v4626_v43 = vpop.f32.mrf.mxu3 }
  0xb6   : > { %v4628_v44 = vpop.f32.mrf.mxu2 }
  0xb7   : > { %v4630_v45 = vpop.f32.mrf.mxu1  ;;  %v984_v28 = vadd.f32 %v4628_v44, %v795_v26  ;;  %v3782_v26 = vld [vmem:[%s5832_s2 + $0x1d8] sm:$0xff] }
  0xb8   : > { %v4632_v46 = vpop.f32.mrf.mxu0  ;;  %2435 = vmatpush.msra.mxu3 %v3782_v26 }
  0xb9   : > { %v982_v44 = vadd.f32 %v4632_v46, %v793_v19  ;;  %v550_v46 = vadd.f32 %v4605_v34, %v4563_v20  ;;  %v3749_v19 = vld [vmem:[%s5832_s2 + $0xd0] sm:$0xff] }
  0xba   : > { %v2215_v20 = vld [vmem:[%s5832_s2 + $0x30] sm:$0xff]  ;;  %2255 = vmatpush.msrb.mxu0 %v3749_v19  ;;  %3879 = vmatpush.msra.mxu2 %v3749_v19 }
  0xbb   : > { %2300 = vmatpush.msrb.mxu1 %v2215_v20  ;;  %v797_v23 = vadd.f32 %v4624_v42, %v550_v46  ;;  %v3747_v42 = vld [vmem:[%s5832_s2 + $0xc0] sm:$0xff]  ;;  %v3746_v20 = vld [vmem:[%s5832_s2 + $0xb8] sm:$0xff] }
  0xbd   : > { %v4634_v47 = vpop.f32.mrf.mxu3 }
  0xbe   : > { %v4636_v48 = vpop.f32.mrf.mxu2 }
  0xbf   : > { %v4638_v49 = vpop.f32.mrf.mxu1 }
  0xc0   : > { %v4640_v50 = vpop.f32.mrf.mxu0 }
  0xc5   : > { %v4642_v51 = vpop.f32.mrf.mxu3 }
  0xc6   : > { %v4644_v52 = vpop.f32.mrf.mxu2 }
  0xc7   : > { %v4646_v53 = vpop.f32.mrf.mxu1  ;;  %v1173_v30 = vadd.f32 %v4644_v52, %v984_v28  ;;  %v590_v52 = vadd.f32 %v4601_v32, %v4609_v35  ;;  %v3781_v32 = vld [vmem:[%s5832_s2 + $0x1d0] sm:$0xff]  ;;  %v3748_v28 = vld [vmem:[%s5832_s2 + $0xc8] sm:$0xff] }
  0xc8   : > { %v4648_v54 = vpop.f32.mrf.mxu0  ;;  %v4811_v35 = vld [vmem:[%s5834_s4] ss:$4 sm:$0xff]  ;;  %2436 = vmatpush.msra.mxu3 %v3781_v32  ;;  %2256 = vmatpush.msrb.mxu0 %v3748_v28 }
  0xc9   : > { %v1171_v16 = vadd.f32 %v4648_v54, %v982_v44  ;;  %v799_v34 = vadd.f32 %v4620_v40, %v590_v52  ;;  %v2214_v40 = vld [vmem:[%s5832_s2 + $0x28] sm:$0xff]  ;;  %v1939_v13 = vperm.slane %v4811_v35, 2  ;;  %3880 = vmatpush.msra.mxu2 %v3748_v28  ;;  %v1937_v19 = vperm.slane %v4811_v35, 0 }
  0xca   : > { %2301 = vmatpush.msrb.mxu1 %v2214_v40  ;;  %2437 = vmatpush.msra.mxu3 %v3780_v22  ;;  %v3745_v40 = vld [vmem:[%s5832_s2 + $0xb0] sm:$0xff] }
  0xcb   : > { %2257 = vmatpush.msrb.mxu0 %v3747_v42  ;;  %3881 = vmatpush.msra.mxu2 %v3747_v42  ;;  %v2211_v22 = vld [vmem:[%s5832_s2 + $0x10] sm:$0xff]  ;;  %v2210_v42 = vld [vmem:[%s5832_s2 + $0x8] sm:$0xff] }
  0xcc   : > { %2438 = vmatpush.msra.mxu3 %v3779_v25 }
  0xcd   : > { %v4650_v55 = vpop.f32.mrf.mxu3  ;;  %2258 = vmatpush.msrb.mxu0 %v3746_v20  ;;  %3882 = vmatpush.msra.mxu2 %v3746_v20 }
  0xce   : > { %v4652_v56 = vpop.f32.mrf.mxu2 }
  0xcf   : > { %v4654_v57 = vpop.f32.mrf.mxu1  ;;  %2259 = vmatpush.msrb.mxu0 %v3745_v40  ;;  %3883 = vmatpush.msra.mxu2 %v3745_v40 }
  0xd0   : > { %v4656_v58 = vpop.f32.mrf.mxu0 }
  0xd5   : > { %v4658_v59 = vpop.f32.mrf.mxu3 }
  0xd6   : > { %v4660_v60 = vpop.f32.mrf.mxu2 }
  0xd7   : > { %v4662_v61 = vpop.f32.mrf.mxu1  ;;  %v1362_v21 = vadd.f32 %v4660_v60, %v1173_v30 }
  0xd8   : > { %v4664_v62 = vpop.f32.mrf.mxu0 }
  0xd9   : > { %v1360_v54 = vadd.f32 %v4664_v62, %v1171_v16  ;;  %v988_v62 = vadd.f32 %v4636_v48, %v799_v34  ;;  %v2213_v48 = vld [vmem:[%s5832_s2 + $0x20] sm:$0xff] }
  0xda   : > { %2302 = vmatpush.msrb.mxu1 %v2213_v48 }
  0xdd   : > { %v4666_v63 = vpop.f32.mrf.mxu3 }
  0xde   : > { %v4668_v0 = vpop.f32.mrf.mxu2 }
  0xdf   : > { %v4670_v1 = vpop.f32.mrf.mxu1 }
  0xe0   : > { %v4672_v2 = vpop.f32.mrf.mxu0 }
  0xe5   : > { %v4674_v3 = vpop.f32.mrf.mxu3 }
  0xe6   : > { %v4676_v4 = vpop.f32.mrf.mxu2 }
  0xe7   : > { %v4678_v5 = vpop.f32.mrf.mxu1  ;;  %v1551_v60 = vadd.f32 %v4676_v4, %v1362_v21  ;;  %v4829_v4 = vld [vmem:[%s5834_s4 + $0x1] ss:$4 sm:$0xff] }
  0xe8   : > { %v4680_v6 = vpop.f32.mrf.mxu0  ;;  %v1966_v16 = vperm.slane %v4829_v4, 2  ;;  %v1964_v28 = vperm.slane %v4829_v4, 0 }
  0xe9   : > { %v1549_v29 = vadd.f32 %v4680_v6, %v1360_v54  ;;  %v986_v6 = vadd.f32 %v4640_v50, %v797_v23  ;;  %v2212_v50 = vld [vmem:[%s5832_s2 + $0x18] sm:$0xff] }
  0xea   : > { %2303 = vmatpush.msrb.mxu1 %v2212_v50 }
  0xec   : > { %2304 = vmatpush.msrb.mxu1 %v2211_v22  ;;  %v570_v22 = vadd.f32 %v4622_v41, %v4603_v33 }
  0xed   : > { %v4682_v7 = vpop.f32.mrf.mxu3 }
  0xee   : > { %v4684_v8 = vpop.f32.mrf.mxu2  ;;  %2305 = vmatpush.msrb.mxu1 %v2210_v42  ;;  %v798_v33 = vadd.f32 %v4638_v49, %v570_v22 }
  0xef   : > { %v4687_v10 = vpop.f32.mrf.mxu1 }
  0xf0   : > { %v4693_v12 = vpop.f32.mrf.mxu0  ;;  %v987_v49 = vadd.f32 %v4654_v57, %v798_v33 }
  0xf5   : > { %v4706_v15 = vpop.f32.mrf.mxu3 }
  0xf6   : > { %v4712_v17 = vpop.f32.mrf.mxu2 }
  0xf7   : > { %v4715_v18 = vpop.f32.mrf.mxu1  ;;  %v1740_v44 = vadd.f32 %v4712_v17, %v1551_v60  ;;  %v1177_v17 = vadd.f32 %v4652_v56, %v988_v62  ;;  %v3778_v56 = vld [vmem:[%s5832_s2 + $0x1b8] sm:$0xff] }
  0xf8   : > { %v4727_v24 = vpop.f32.mrf.mxu0  ;;  %2439 = vmatpush.msra.mxu3 %v3778_v56 }
  0xf9   : > { %v1738_v46 = vadd.f32 %v4727_v24, %v1549_v29  ;;  %v1175_v24 = vadd.f32 %v4656_v58, %v986_v6  ;;  %v1366_v34 = vadd.f32 %v4668_v0, %v1177_v17  ;;  %v3777_v58 = vld [vmem:[%s5832_s2 + $0x1b0] sm:$0xff]  ;;  %v490_v0 = vadd.f32 %v4613_v37, %v4586_v27  ;;  %v3776_v27 = vld [vmem:[%s5832_s2 + $0x1a8] sm:$0xff] }
  0xfa   : > { %2440 = vmatpush.msra.mxu3 %v3777_v58 }
  0xfb   : > { %v1364_v23 = vadd.f32 %v4672_v2, %v1175_v24  ;;  %v1555_v62 = vadd.f32 %v4684_v8, %v1366_v34  ;;  %v794_v37 = vadd.f32 %v4630_v45, %v490_v0  ;;  %v1943_v2 = vperm.slane %v4811_v35, 6  ;;  %v2209_v45 = vld [vmem:[%s5832_s2] sm:$0xff]  ;;  %v3741_v0 = vld [vmem:[%s5832_s2 + $0x90] sm:$0xff] }
  0xfc   : > { %2441 = vmatpush.msra.mxu3 %v3776_v27  ;;  %2306 = vmatpush.msrb.mxu1 %v2209_v45  ;;  %v1968_v34 = vperm.slane %v4829_v4, 4 }
  0xfd   : > { %v4759_v36 = vpop.f32.mrf.mxu3  ;;  %v1553_v8 = vadd.f32 %v4693_v12, %v1364_v23  ;;  %v3775_v12 = vld [vmem:[%s5832_s2 + $0x1a0] sm:$0xff]  ;;  %2307 = vmatmul.f32.vlgmr.msrb.gmra.mxu1 %v3942_v9  ;;  %v3773_v23 = vld [vmem:[%s5832_s2 + $0x190] sm:$0xff] }
  0xfe   : > { %v4771_v38 = vpop.f32.mrf.mxu2  ;;  %2442 = vmatpush.msra.mxu3 %v3775_v12  ;;  %v2225_v12 = vld [vmem:[#allocation2 + $0x1] sm:$0xff] }
  0xff   : > { %v4776_v11 = vpop.f32.mrf.mxu1  ;;  %v1744_v48 = vadd.f32 %v4771_v38, %v1555_v62  ;;  %v983_v38 = vadd.f32 %v4646_v53, %v794_v37 }
 0x100   : > { %v4792_v14 = vpop.f32.mrf.mxu0 }
 0x101   : > { %v1172_v53 = vadd.f32 %v4662_v61, %v983_v38  ;;  %v1176_v38 = vadd.f32 %v4670_v1, %v987_v49 }
 0x103   : > { %v1361_v58 = vadd.f32 %v4678_v5, %v1172_v53  ;;  %v3740_v5 = vld [vmem:[%s5832_s2 + $0x88] sm:$0xff] }
 0x105   : > { %v4833_v30 = vpop.f32.mrf.mxu3  ;;  %v1550_v41 = vadd.f32 %v4715_v18, %v1361_v58 }
 0x106   : > { %v1824_v26 = vpop.f32.mrf.mxu2 }
 0x107   : > { %v1929_v52 = vadd.f32 %v1824_v26, %v1740_v44  ;;  %v4849_v21 = vpop.f32.mrf.mxu1  ;;  %v3743_v26 = vld [vmem:[%s5832_s2 + $0xa0] sm:$0xff] }
 0x108   : > { %v1784_v32 = vpop.f32.mrf.mxu0  ;;  %v1739_v18 = vadd.f32 %v4849_v21, %v1550_v41 }
 0x109   : > { %v1955_v54 = vmul.f32 %v1939_v13, %v1929_v52  ;;  %v1927_v60 = vadd.f32 %v1784_v32, %v1738_v46  ;;  %v3744_v13 = vld [vmem:[%s5832_s2 + $0xa8] sm:$0xff]  ;;  %v1970_v52 = vperm.slane %v4829_v4, 6 }
 0x10a   : > { %2260 = vmatpush.msrb.mxu0 %v3744_v13  ;;  %3884 = vmatpush.msra.mxu2 %v3744_v13  ;;  %v3772_v13 = vld [vmem:[%s5832_s2 + $0x188] sm:$0xff] }
 0x10b   : > { %v1982_v29 = vadd.f32 %v1966_v16, %v1955_v54  ;;  %v1953_v44 = vmul.f32 %v1937_v19, %v1927_v60  ;;  %v1941_v16 = vperm.slane %v4811_v35, 4  ;;  %v1742_v19 = vadd.f32 %v4792_v14, %v1553_v8  ;;  %v3742_v14 = vld [vmem:[%s5832_s2 + $0x98] sm:$0xff] }
 0x10c   : > { %2261 = vmatpush.msrb.mxu0 %v3743_v26  ;;  %v3774_v54 = vld [vmem:[%s5832_s2 + $0x198] sm:$0xff]  ;;  %3885 = vmatpush.msra.mxu2 %v3743_v26  ;;  %v1938_v8 = vperm.slane %v4811_v35, 1  ;;  %v530_v26 = vadd.f32 %v4626_v43, %v4599_v31  ;;  %v3801_v43 = vld [vmem:[%s5832_s2 + $0x270] sm:$0xff] }
 0x10d   : > { %v4890_v25 = vmax.f32 %v1982_v29, 0.0  ;;  %v1980_v6 = vadd.f32 %v1964_v28, %v1953_v44  ;;  %v4892_v17 = vpop.f32.mrf.mxu3  ;;  %2443 = vmatpush.msra.mxu3 %v3774_v54  ;;  %v3802_v31 = vld [vmem:[%s5832_s2 + $0x278] sm:$0xff] }
 0x10e   : > { %v1904_v46 = vpop.f32.mrf.mxu2  ;;  %2262 = vmatpush.msrb.mxu0 %v3742_v14  ;;  %3886 = vmatpush.msra.mxu2 %v3742_v14 }
 0x10f   : > { %v2066_v20 = vrot.slane %v4890_v25, 3  ;;  %v4908_v50 = vmax.f32 %v1980_v6, 0.0  ;;  %v1933_v56 = vadd.f32 %v1904_v46, %v1744_v48  ;;  %v4910_v24 = vpop.f32.mrf.mxu1  ;;  %2078 = vst [vmem:[#allocation2 + $0x13] sm:$0x1] %v4890_v25  ;;  %v2064_v60 = vrot.slane %v4890_v25, 1  ;;  %2444 = vmatpush.msra.mxu3 %v3773_v23  ;;  %v3739_v48 = vld [vmem:[%s5832_s2 + $0x80] sm:$0xff] }
 0x110   : > { %v1864_v32 = vpop.f32.mrf.mxu0  ;;  %2263 = vmatpush.msrb.mxu0 %v3741_v0  ;;  %3887 = vmatpush.msra.mxu2 %v3741_v0  ;;  %v2065_v42 = vrot.slane %v4890_v25, 2  ;;  %v3771_v6 = vld [vmem:[%s5832_s2 + $0x180] sm:$0xff]  ;;  %v1969_v0 = vperm.slane %v4829_v4, 5  ;;  %v3798_v23 = vld [vmem:[%s5832_s2 + $0x258] sm:$0xff] }
 0x111   : > { %v2019_v9 = vrot.slane %v4908_v50, 3  ;;  %v1959_v28 = vmul.f32 %v1943_v2, %v1933_v56  ;;  %v1931_v40 = vadd.f32 %v1864_v32, %v1742_v19  ;;  %2032 = vst [vmem:[#allocation2 + $0x11] sm:$0x1] %v4908_v50  ;;  %v2017_v61 = vrot.slane %v4908_v50, 1  ;;  %2445 = vmatpush.msra.mxu3 %v3772_v13  ;;  %v3800_v32 = vld [vmem:[%s5832_s2 + $0x268] sm:$0xff] }
 0x112   : > { %2081 = vst [vmem:[#allocation2 + $0x43] sm:$0x1] %v2066_v20  ;;  %v2018_v62 = vrot.slane %v4908_v50, 2  ;;  %2264 = vmatpush.msrb.mxu0 %v3740_v5  ;;  %3888 = vmatpush.msra.mxu2 %v3740_v5  ;;  %v796_v20 = vadd.f32 %v4642_v51, %v530_v26  ;;  %v1365_v56 = vadd.f32 %v4687_v10, %v1176_v38  ;;  %v3799_v51 = vld [vmem:[%s5832_s2 + $0x260] sm:$0xff]  ;;  %v3796_v13 = vld [vmem:[%s5832_s2 + $0x248] sm:$0xff] }
 0x113   : > { %v1986_v29 = vadd.f32 %v1970_v52, %v1959_v28  ;;  %v1957_v44 = vmul.f32 %v1941_v16, %v1931_v40  ;;  %2035 = vst [vmem:[#allocation2 + $0x41] sm:$0x1] %v2019_v9  ;;  %2446 = vmatpush.msra.mxu3 %v3771_v6  ;;  %v1965_v52 = vperm.slane %v4829_v4, 1  ;;  %v2020_v28 = vrot.slane %v4908_v50, 4  ;;  %v3795_v6 = vld [vmem:[%s5832_s2 + $0x240] sm:$0xff] }
 0x114   : > { %2033 = vst [vmem:[#allocation2 + $0x21] sm:$0x1] %v2017_v61  ;;  %2265 = vmatpush.msrb.mxu0 %v3739_v48  ;;  %3889 = vmatpush.msra.mxu2 %v3739_v48  ;;  %v985_v54 = vadd.f32 %v4658_v59, %v796_v20  ;;  %v1942_v59 = vperm.slane %v4811_v35, 5  ;;  %v1940_v48 = vperm.slane %v4811_v35, 3  ;;  %v3767_v38 = vld [vmem:[%s5832_s2 + $0x160] sm:$0xff]  ;;  %v3765_v20 = vld [vmem:[%s5832_s2 + $0x150] sm:$0xff] }
 0x115   : > { %v4945_v27 = vmax.f32 %v1986_v29, 0.0  ;;  %v1984_v37 = vadd.f32 %v1968_v34, %v1957_v44  ;;  %v4947_v2 = vpop.f32.mrf.mxu3  ;;  %2079 = vst [vmem:[#allocation2 + $0x23] sm:$0x1] %v2064_v60  ;;  %2266 = vmatmul.f32.vlgmr.msrb.gmra.mxu0 %v2225_v12  ;;  %v1554_v60 = vadd.f32 %v4776_v11, %v1365_v56  ;;  %v610_v11 = vadd.f32 %v4634_v47, %v4618_v39  ;;  %v3770_v39 = vld [vmem:[%s5832_s2 + $0x178] sm:$0xff]  ;;  %v3797_v47 = vld [vmem:[%s5832_s2 + $0x250] sm:$0xff] }
 0x116   : > { %2034 = vst [vmem:[#allocation2 + $0x31] sm:$0x1] %v2018_v62  ;;  %2505 = vmatpush.msra.mxu0 %v3802_v31  ;;  %v1174_v40 = vadd.f32 %v4674_v3, %v985_v54  ;;  %2357 = vmatpush.msrb.mxu2 %v3770_v39  ;;  %v3761_v39 = vld [vmem:[%s5832_s2 + $0x130] sm:$0xff] }
 0x117   : > { %v2158_v45 = vrot.slane %v4945_v27, 3  ;;  %v4961_v57 = vmax.f32 %v1984_v37, 0.0  ;;  %v1804_v21 = vpop.f32.mrf.mxu1  ;;  %2170 = vst [vmem:[#allocation2 + $0x17] sm:$0x1] %v4945_v27  ;;  %v2156_v19 = vrot.slane %v4945_v27, 1  ;;  %v2157_v14 = vrot.slane %v4945_v27, 2 }
 0x118   : > { %v1928_v46 = vadd.f32 %v1804_v21, %v1739_v18  ;;  %2080 = vst [vmem:[#allocation2 + $0x33] sm:$0x1] %v2065_v42  ;;  %2506 = vmatpush.msra.mxu0 %v3801_v43  ;;  %v1743_v61 = vadd.f32 %v4910_v24, %v1554_v60  ;;  %v1363_v3 = vadd.f32 %v4706_v15, %v1174_v40  ;;  %v3769_v15 = vld [vmem:[%s5832_s2 + $0x170] sm:$0xff]  ;;  %v2067_v37 = vrot.slane %v4890_v25, 4 }
 0x119   : > { %v2112_v16 = vrot.slane %v4961_v57, 3  ;;  %2124 = vst [vmem:[#allocation2 + $0x15] sm:$0x1] %v4961_v57  ;;  %v2110_v1 = vrot.slane %v4961_v57, 1  ;;  %v2111_v34 = vrot.slane %v4961_v57, 2  ;;  %v800_v44 = vadd.f32 %v4650_v55, %v610_v11  ;;  %v3768_v55 = vld [vmem:[%s5832_s2 + $0x168] sm:$0xff]  ;;  %2358 = vmatpush.msrb.mxu2 %v3769_v15 }
 0x11a   : > { %v1954_v53 = vmul.f32 %v1938_v8, %v1928_v46  ;;  %2173 = vst [vmem:[#allocation2 + $0x47] sm:$0x1] %v2158_v45  ;;  %2507 = vmatpush.msra.mxu0 %v3800_v32  ;;  %v1552_v41 = vadd.f32 %v4833_v30, %v1363_v3  ;;  %v2113_v30 = vrot.slane %v4961_v57, 4  ;;  %v3792_v32 = vld [vmem:[%s5832_s2 + $0x228] sm:$0xff]  ;;  %v3762_v3 = vld [vmem:[%s5832_s2 + $0x138] sm:$0xff] }
 0x11b   : > { %2127 = vst [vmem:[#allocation2 + $0x45] sm:$0x1] %v2112_v16  ;;  %v989_v49 = vadd.f32 %v4666_v63, %v800_v44  ;;  %2359 = vmatpush.msrb.mxu2 %v3768_v55  ;;  %v2159_v63 = vrot.slane %v4945_v27, 4  ;;  %v3788_v15 = vld [vmem:[%s5832_s2 + $0x208] sm:$0xff]  ;;  %v3815_v55 = vld [vmem:[%s5832_s2 + $0x2e0] sm:$0xff] }
 0x11c   : > { %v1981_v9 = vadd.f32 %v1965_v52, %v1954_v53  ;;  %2125 = vst [vmem:[#allocation2 + $0x25] sm:$0x1] %v2110_v1  ;;  %2508 = vmatpush.msra.mxu0 %v3799_v51  ;;  %v1741_v18 = vadd.f32 %v4947_v2, %v1552_v41  ;;  %v1967_v2 = vperm.slane %v4829_v4, 3 }
 0x11d   : > { %v4988_v10 = vpop.f32.mrf.mxu3  ;;  %2171 = vst [vmem:[#allocation2 + $0x27] sm:$0x1] %v2156_v19  ;;  %v1178_v26 = vadd.f32 %v4682_v7, %v989_v49  ;;  %2360 = vmatpush.msrb.mxu2 %v3767_v38  ;;  %v3794_v7 = vld [vmem:[%s5832_s2 + $0x238] sm:$0xff]  ;;  %v3793_v19 = vld [vmem:[%s5832_s2 + $0x230] sm:$0xff] }
 0x11e   : > { %v4993_v22 = vmax.f32 %v1981_v9, 0.0  ;;  %2126 = vst [vmem:[#allocation2 + $0x35] sm:$0x1] %v2111_v34  ;;  %2509 = vmatpush.msra.mxu0 %v3798_v23  ;;  %v3764_v34 = vld [vmem:[%s5832_s2 + $0x148] sm:$0xff]  ;;  %v3791_v9 = vld [vmem:[%s5832_s2 + $0x220] sm:$0xff]  ;;  %v3849_v38 = vld [vmem:[%s5832_s2 + $0x3f0] sm:$0xff] }
 0x11f   : > { %v1884_v58 = vpop.f32.mrf.mxu1  ;;  %2172 = vst [vmem:[#allocation2 + $0x37] sm:$0x1] %v2157_v14  ;;  %v1367_v46 = vadd.f32 %v4759_v36, %v1178_v26  ;;  %v3766_v36 = vld [vmem:[%s5832_s2 + $0x158] sm:$0xff]  ;;  %v2021_v14 = vrot.slane %v4908_v50, 5 }
 0x120   : > { %v2043_v24 = vrot.slane %v4993_v22, 3  ;;  %v1932_v62 = vadd.f32 %v1884_v58, %v1743_v61  ;;  %2055 = vst [vmem:[#allocation2 + $0x12] sm:$0x1] %v4993_v22  ;;  %v2041_v29 = vrot.slane %v4993_v22, 1  ;;  %v2042_v33 = vrot.slane %v4993_v22, 2  ;;  %2510 = vmatpush.msra.mxu0 %v3797_v47  ;;  %2361 = vmatpush.msrb.mxu2 %v3766_v36  ;;  %v3818_v58 = vld [vmem:[%s5832_s2 + $0x2f8] sm:$0xff] }
 0x121   : > { %2036 = vst [vmem:[#allocation2 + $0x51] sm:$0x1] %v2020_v28  ;;  %v2044_v42 = vrot.slane %v4993_v22, 4  ;;  %v1556_v56 = vadd.f32 %v4892_v17, %v1367_v46  ;;  %v1944_v17 = vperm.slane %v4811_v35, 7  ;;  %v1971_v28 = vperm.slane %v4829_v4, 7  ;;  %v3790_v4 = vld [vmem:[%s5832_s2 + $0x218] sm:$0xff]  ;;  %2579 = vmatpush.msra.mxu1 %v3818_v58 }
 0x122   : > { %v1958_v5 = vmul.f32 %v1942_v59, %v1932_v62  ;;  %2058 = vst [vmem:[#allocation2 + $0x42] sm:$0x1] %v2043_v24  ;;  %2511 = vmatpush.msra.mxu0 %v3796_v13  ;;  %2362 = vmatpush.msrb.mxu2 %v3765_v20  ;;  %v3763_v59 = vld [vmem:[%s5832_s2 + $0x140] sm:$0xff]  ;;  %v2045_v23 = vrot.slane %v4993_v22, 5  ;;  %v3789_v24 = vld [vmem:[%s5832_s2 + $0x210] sm:$0xff]  ;;  %v3816_v47 = vld [vmem:[%s5832_s2 + $0x2e8] sm:$0xff] }
 0x123   : > { %2056 = vst [vmem:[#allocation2 + $0x22] sm:$0x1] %v2041_v29  ;;  %v1745_v54 = vadd.f32 %v4988_v10, %v1556_v56  ;;  %v3817_v62 = vld [vmem:[%s5832_s2 + $0x2f0] sm:$0xff]  ;;  %v2068_v29 = vrot.slane %v4890_v25, 5  ;;  %v3787_v13 = vld [vmem:[%s5832_s2 + $0x200] sm:$0xff]  ;;  %v3850_v26 = vld [vmem:[%s5832_s2 + $0x3f8] sm:$0xff] }
 0x124   : > { %v1985_v8 = vadd.f32 %v1969_v0, %v1958_v5  ;;  %2057 = vst [vmem:[#allocation2 + $0x32] sm:$0x1] %v2042_v33  ;;  %2512 = vmatpush.msra.mxu0 %v3795_v6  ;;  %2363 = vmatpush.msrb.mxu2 %v3764_v34  ;;  %v3760_v33 = vld [vmem:[%s5832_s2 + $0x128] sm:$0xff]  ;;  %v2114_v6 = vrot.slane %v4961_v57, 5  ;;  %v3757_v46 = vld [vmem:[%s5832_s2 + $0x110] sm:$0xff]  ;;  %v3811_v20 = vld [vmem:[%s5832_s2 + $0x2c0] sm:$0xff] }
 0x125   : > { %v1844_v45 = vpop.f32.mrf.mxu3  ;;  %2059 = vst [vmem:[#allocation2 + $0x52] sm:$0x1] %v2044_v42  ;;  %2580 = vmatpush.msra.mxu1 %v3817_v62  ;;  %2728 = vmatpush.msrb.mxu3 %v3850_v26  ;;  %v2069_v56 = vrot.slane %v4890_v25, 6  ;;  %v3829_v26 = vld [vmem:[%s5832_s2 + $0x350] sm:$0xff] }
 0x126   : > { %v5035_v21 = vmax.f32 %v1985_v8, 0.0  ;;  %v1930_v12 = vadd.f32 %v1844_v45, %v1741_v18  ;;  %2082 = vst [vmem:[#allocation2 + $0x53] sm:$0x1] %v2067_v37  ;;  %2513 = vmatpush.msra.mxu0 %v3794_v7  ;;  %2364 = vmatpush.msrb.mxu2 %v3763_v59  ;;  %v3759_v8 = vld [vmem:[%s5832_s2 + $0x120] sm:$0xff]  ;;  %v3833_v59 = vld [vmem:[%s5832_s2 + $0x370] sm:$0xff] }
 0x127   : > { %2128 = vst [vmem:[#allocation2 + $0x55] sm:$0x1] %v2113_v30  ;;  %2581 = vmatpush.msra.mxu1 %v3816_v47  ;;  %2729 = vmatpush.msrb.mxu3 %v3849_v38  ;;  %v2116_v47 = vrot.slane %v4961_v57, 7  ;;  %v3828_v38 = vld [vmem:[%s5832_s2 + $0x348] sm:$0xff] }
 0x128   : > { %v2135_v52 = vrot.slane %v5035_v21, 3  ;;  %v1956_v31 = vmul.f32 %v1940_v48, %v1930_v12  ;;  %2147 = vst [vmem:[#allocation2 + $0x16] sm:$0x1] %v5035_v21  ;;  %v2133_v43 = vrot.slane %v5035_v21, 1  ;;  %v2134_v16 = vrot.slane %v5035_v21, 2  ;;  %2514 = vmatpush.msra.mxu0 %v3793_v19  ;;  %2365 = vmatpush.msrb.mxu2 %v3762_v3  ;;  %v3814_v48 = vld [vmem:[%s5832_s2 + $0x2d8] sm:$0xff] }
 0x129   : > { %v2136_v1 = vrot.slane %v5035_v21, 4  ;;  %2174 = vst [vmem:[#allocation2 + $0x57] sm:$0x1] %v2159_v63  ;;  %2582 = vmatpush.msra.mxu1 %v3815_v55  ;;  %v2137_v45 = vrot.slane %v5035_v21, 5  ;;  %v3758_v63 = vld [vmem:[%s5832_s2 + $0x118] sm:$0xff]  ;;  %v3813_v12 = vld [vmem:[%s5832_s2 + $0x2d0] sm:$0xff] }
 0x12a   : > { %v1983_v53 = vadd.f32 %v1967_v2, %v1956_v31  ;;  %2150 = vst [vmem:[#allocation2 + $0x46] sm:$0x1] %v2135_v52  ;;  %2515 = vmatpush.msra.mxu0 %v3792_v32  ;;  %2366 = vmatpush.msrb.mxu2 %v3761_v39  ;;  %v2160_v2 = vrot.slane %v4945_v27, 5  ;;  %v3812_v52 = vld [vmem:[%s5832_s2 + $0x2c8] sm:$0xff]  ;;  %v2046_v19 = vrot.slane %v4993_v22, 6  ;;  %v3755_v32 = vld [vmem:[%s5832_s2 + $0x100] sm:$0xff] }
 0x12b   : > { %2148 = vst [vmem:[#allocation2 + $0x26] sm:$0x1] %v2133_v43  ;;  %2583 = vmatpush.msra.mxu1 %v3814_v48  ;;  %v3848_v31 = vld [vmem:[%s5832_s2 + $0x3e8] sm:$0xff]  ;;  %v2022_v43 = vrot.slane %v4908_v50, 6  ;;  %v2047_v3 = vrot.slane %v4993_v22, 7  ;;  %v3843_v22 = vld [vmem:[%s5832_s2 + $0x3c0] sm:$0xff] }
 0x12c   : > { %v5068_v60 = vmax.f32 %v1983_v53, 0.0  ;;  %2149 = vst [vmem:[#allocation2 + $0x36] sm:$0x1] %v2134_v16  ;;  %2516 = vmatpush.msra.mxu0 %v3791_v9  ;;  %2367 = vmatpush.msrb.mxu2 %v3760_v33  ;;  %v3756_v16 = vld [vmem:[%s5832_s2 + $0x108] sm:$0xff]  ;;  %v3847_v53 = vld [vmem:[%s5832_s2 + $0x3e0] sm:$0xff]  ;;  %v3846_v9 = vld [vmem:[%s5832_s2 + $0x3d8] sm:$0xff] }
 0x12d   : > { %v1924_v51 = vpop.f32.mrf.mxu3  ;;  %2151 = vst [vmem:[#allocation2 + $0x56] sm:$0x1] %v2136_v1  ;;  %2584 = vmatpush.msra.mxu1 %v3813_v12  ;;  %2730 = vmatpush.msrb.mxu3 %v3848_v31  ;;  %v2139_v33 = vrot.slane %v5035_v21, 7  ;;  %v3837_v12 = vld [vmem:[%s5832_s2 + $0x390] sm:$0xff] }
 0x12e   : > { %v2089_v40 = vrot.slane %v5068_v60, 3  ;;  %v1934_v61 = vadd.f32 %v1924_v51, %v1745_v54  ;;  %2101 = vst [vmem:[#allocation2 + $0x14] sm:$0x1] %v5068_v60  ;;  %v2087_v10 = vrot.slane %v5068_v60, 1  ;;  %v2088_v35 = vrot.slane %v5068_v60, 2  ;;  %2517 = vmatpush.msra.mxu0 %v3790_v4  ;;  %2368 = vmatpush.msrb.mxu2 %v3759_v8  ;;  %v3810_v54 = vld [vmem:[%s5832_s2 + $0x2b8] sm:$0xff] }
 0x12f   : > { %v2090_v11 = vrot.slane %v5068_v60, 4  ;;  %2037 = vst [vmem:[#allocation2 + $0x61] sm:$0x1] %v2021_v14  ;;  %v2091_v41 = vrot.slane %v5068_v60, 5  ;;  %2585 = vmatpush.msra.mxu1 %v3812_v52  ;;  %v2092_v14 = vrot.slane %v5068_v60, 6  ;;  %v3834_v51 = vld [vmem:[%s5832_s2 + $0x378] sm:$0xff]  ;;  %2731 = vmatpush.msrb.mxu3 %v3847_v53 }
 0x130   : > { %v1960_v0 = vmul.f32 %v1944_v17, %v1934_v61  ;;  %2104 = vst [vmem:[#allocation2 + $0x44] sm:$0x1] %v2089_v40  ;;  %2518 = vmatpush.msra.mxu0 %v3789_v24  ;;  %2369 = vmatpush.msrb.mxu2 %v3758_v63  ;;  %v2115_v17 = vrot.slane %v4961_v57, 6  ;;  %v3809_v40 = vld [vmem:[%s5832_s2 + $0x2b0] sm:$0xff]  ;;  %v2161_v61 = vrot.slane %v4945_v27, 6  ;;  %v2023_v4 = vrot.slane %v4908_v50, 7 }
 0x131   : > { %2102 = vst [vmem:[#allocation2 + $0x24] sm:$0x1] %v2087_v10  ;;  %2586 = vmatpush.msra.mxu1 %v3811_v20  ;;  %v3845_v10 = vld [vmem:[%s5832_s2 + $0x3d0] sm:$0xff]  ;;  %2732 = vmatpush.msrb.mxu3 %v3846_v9  ;;  %v3807_v50 = vld [vmem:[%s5832_s2 + $0x2a0] sm:$0xff]  ;;  %v2070_v24 = vrot.slane %v4890_v25, 7  ;;  %v3832_v25 = vld [vmem:[%s5832_s2 + $0x368] sm:$0xff] }
 0x132   : > { %v1987_v44 = vadd.f32 %v1971_v28, %v1960_v0  ;;  %2103 = vst [vmem:[#allocation2 + $0x34] sm:$0x1] %v2088_v35  ;;  %2519 = vmatpush.msra.mxu0 %v3788_v15  ;;  %2370 = vmatpush.msrb.mxu2 %v3757_v46  ;;  %v2138_v28 = vrot.slane %v5035_v21, 6  ;;  %v2093_v39 = vrot.slane %v5068_v60, 7  ;;  %v3866_v15 = vld [vmem:[%s5832_s2 + $0x478] sm:$0xff]  ;;  %v3805_v60 = vld [vmem:[%s5832_s2 + $0x290] sm:$0xff] }
 0x133   : > { %2105 = vst [vmem:[#allocation2 + $0x54] sm:$0x1] %v2090_v11  ;;  %2587 = vmatpush.msra.mxu1 %v3810_v54  ;;  %v3808_v11 = vld [vmem:[%s5832_s2 + $0x2a8] sm:$0xff]  ;;  %2733 = vmatpush.msrb.mxu3 %v3845_v10  ;;  %v3831_v57 = vld [vmem:[%s5832_s2 + $0x360] sm:$0xff]  ;;  %v3862_v46 = vld [vmem:[%s5832_s2 + $0x458] sm:$0xff] }
 0x134   : > { %v5113_v5 = vmax.f32 %v1987_v44, 0.0  ;;  %2060 = vst [vmem:[#allocation2 + $0x62] sm:$0x1] %v2045_v23  ;;  %2520 = vmatpush.msra.mxu0 %v3787_v13  ;;  %2371 = vmatpush.msrb.mxu2 %v3756_v16  ;;  %v3844_v23 = vld [vmem:[%s5832_s2 + $0x3c8] sm:$0xff]  ;;  %v3842_v44 = vld [vmem:[%s5832_s2 + $0x3b8] sm:$0xff]  ;;  %v3835_v16 = vld [vmem:[%s5832_s2 + $0x380] sm:$0xff] }
 0x135   : > { %v2202_v42 = vld [vmem:[#allocation2 + $0x10] sm:$0xff]  ;;  %2083 = vst [vmem:[#allocation2 + $0x63] sm:$0x1] %v2068_v29  ;;  %2588 = vmatpush.msra.mxu1 %v3809_v40  ;;  %2734 = vmatpush.msrb.mxu3 %v3844_v23  ;;  %v3804_v21 = vld [vmem:[%s5832_s2 + $0x288] sm:$0xff]  ;;  %v3859_v53 = vld [vmem:[%s5832_s2 + $0x440] sm:$0xff] }
 0x136   : > { %v2181_v37 = vrot.slane %v5113_v5, 3  ;;  %2193 = vst [vmem:[#allocation2 + $0x18] sm:$0x1] %v5113_v5  ;;  %2310 = vmatmul.f32.gmra.mxu1 %v2202_v42  ;;  %2447 = vmatmul.f32.vlgmr.msra.gmra.mxu3 %v2202_v42  ;;  %v2179_v49 = vrot.slane %v5113_v5, 1  ;;  %v2182_v30 = vrot.slane %v5113_v5, 4  ;;  %v2180_v18 = vrot.slane %v5113_v5, 2 }
 0x137   : > { %2106 = vst [vmem:[#allocation2 + $0x64] sm:$0x1] %v2091_v41  ;;  %v2183_v7 = vrot.slane %v5113_v5, 5  ;;  %2372 = vmatpush.msrb.mxu2 %v3755_v32  ;;  %v2184_v35 = vrot.slane %v5113_v5, 6  ;;  %2589 = vmatpush.msra.mxu1 %v3808_v11  ;;  %v3806_v29 = vld [vmem:[%s5832_s2 + $0x298] sm:$0xff]  ;;  %v2162_v41 = vrot.slane %v4945_v27, 7 }
 0x138   : > { %2196 = vst [vmem:[#allocation2 + $0x48] sm:$0x1] %v2181_v37  ;;  %v5163_v1 = vld [vmem:[#allocation2 + $0x20] sm:$0xff]  ;;  %2735 = vmatpush.msrb.mxu3 %v3843_v22  ;;  %2802 = vmatpush.msrb.mxu0 %v3866_v15  ;;  %v3841_v42 = vld [vmem:[%s5832_s2 + $0x3b0] sm:$0xff]  ;;  %v3803_v27 = vld [vmem:[%s5832_s2 + $0x280] sm:$0xff]  ;;  %v2185_v48 = vrot.slane %v5113_v5, 7 }
 0x139   : > { %2194 = vst [vmem:[#allocation2 + $0x28] sm:$0x1] %v2179_v49  ;;  %v5211_v0 = vld [vmem:[#allocation2 + $0x30] sm:$0xff]  ;;  %2590 = vmatpush.msra.mxu1 %v3807_v50  ;;  %v5257_v55 = vld [vmem:[#allocation2 + $0x40] sm:$0xff]  ;;  %v3857_v9 = vld [vmem:[%s5832_s2 + $0x430] sm:$0xff] }
 0x13a   : > { %2197 = vst [vmem:[#allocation2 + $0x58] sm:$0x1] %v2182_v30  ;;  %2736 = vmatpush.msrb.mxu3 %v3842_v44  ;;  %v3840_v49 = vld [vmem:[%s5832_s2 + $0x3a8] sm:$0xff]  ;;  %v3865_v30 = vld [vmem:[%s5832_s2 + $0x470] sm:$0xff]  ;;  %v3838_v5 = vld [vmem:[%s5832_s2 + $0x398] sm:$0xff] }
 0x13b   : > { %2195 = vst [vmem:[#allocation2 + $0x38] sm:$0x1] %v2180_v18  ;;  %2591 = vmatpush.msra.mxu1 %v3806_v29  ;;  %v3830_v18 = vld [vmem:[%s5832_s2 + $0x358] sm:$0xff]  ;;  %v3864_v8 = vld [vmem:[%s5832_s2 + $0x468] sm:$0xff]  ;;  %2803 = vmatpush.msrb.mxu0 %v3865_v30  ;;  %v3855_v40 = vld [vmem:[%s5832_s2 + $0x420] sm:$0xff] }
 0x13c   : > { %2129 = vst [vmem:[#allocation2 + $0x65] sm:$0x1] %v2114_v6  ;;  %2737 = vmatpush.msrb.mxu3 %v3841_v42  ;;  %v3839_v6 = vld [vmem:[%s5832_s2 + $0x3a0] sm:$0xff]  ;;  %v3836_v52 = vld [vmem:[%s5832_s2 + $0x388] sm:$0xff]  ;;  %v3858_v54 = vld [vmem:[%s5832_s2 + $0x438] sm:$0xff] }
 0x13d   : > { %v5161_v36 = vld [vmem:[#allocation2 + $0x11] sm:$0xff]  ;;  %2152 = vst [vmem:[#allocation2 + $0x66] sm:$0x1] %v2137_v45  ;;  %2592 = vmatpush.msra.mxu1 %v3805_v60  ;;  %2804 = vmatpush.msrb.mxu0 %v3864_v8  ;;  %v3860_v20 = vld [vmem:[%s5832_s2 + $0x448] sm:$0xff]  ;;  %v3853_v11 = vld [vmem:[%s5832_s2 + $0x410] sm:$0xff] }
 0x13e   : > { %2269 = vmatmul.f32.gmra.mxu0 %v5161_v36  ;;  %2313 = vmatmul.f32.gmra.mxu1 %v5163_v1  ;;  %2175 = vst [vmem:[#allocation2 + $0x67] sm:$0x1] %v2160_v2  ;;  %v5290_v45 = vld [vmem:[#allocation2 + $0x50] sm:$0xff]  ;;  %v3863_v2 = vld [vmem:[%s5832_s2 + $0x460] sm:$0xff]  ;;  %v3852_v23 = vld [vmem:[%s5832_s2 + $0x408] sm:$0xff] }
 0x13f   : > { %2450 = vmatmul.f32.gmra.mxu3 %v5163_v1  ;;  %v5179_v34 = vld [vmem:[#allocation2 + $0x41] sm:$0xff]  ;;  %2198 = vst [vmem:[#allocation2 + $0x68] sm:$0x1] %v2183_v7  ;;  %2593 = vmatpush.msra.mxu1 %v3804_v21  ;;  %v3827_v7 = vld [vmem:[%s5832_s2 + $0x340] sm:$0xff] }
 0x140   : > { %2278 = vmatmul.f32.vlgmr.msra.gmra.mxu2 %v5179_v34  ;;  %2038 = vst [vmem:[#allocation2 + $0x71] sm:$0x1] %v2022_v43  ;;  %v5209_v58 = vld [vmem:[#allocation2 + $0x21] sm:$0xff]  ;;  %2738 = vmatpush.msrb.mxu3 %v3840_v49  ;;  %v3819_v22 = vld [vmem:[%s5832_s2 + $0x300] sm:$0xff] }
 0x141   : > { %2061 = vst [vmem:[#allocation2 + $0x72] sm:$0x1] %v2046_v19  ;;  %2654 = vmatpush.msra.mxu2 %v3834_v51  ;;  %v5224_v62 = vld [vmem:[#allocation2 + $0x51] sm:$0xff]  ;;  %2594 = vmatpush.msra.mxu1 %v3803_v27  ;;  %v2332_v43 = vld [vmem:[#allocation2 + $0x2] sm:$0xff] }
 0x142   : > { %2084 = vst [vmem:[#allocation2 + $0x73] sm:$0x1] %v2069_v56  ;;  %v5255_v13 = vld [vmem:[#allocation2 + $0x31] sm:$0xff]  ;;  %2739 = vmatpush.msrb.mxu3 %v3839_v6  ;;  %2805 = vmatpush.msrb.mxu0 %v3863_v2  ;;  %v3825_v56 = vld [vmem:[%s5832_s2 + $0x330] sm:$0xff]  ;;  %v3856_v51 = vld [vmem:[%s5832_s2 + $0x428] sm:$0xff] }
 0x143   : > { %2107 = vst [vmem:[#allocation2 + $0x74] sm:$0x1] %v2092_v14  ;;  %2655 = vmatpush.msra.mxu2 %v3833_v59  ;;  %v3826_v19 = vld [vmem:[%s5832_s2 + $0x338] sm:$0xff]  ;;  %v2334_v10 = vld [vmem:[#allocation2 + $0x22] sm:$0xff] }
 0x144   : > { %2130 = vst [vmem:[#allocation2 + $0x75] sm:$0x1] %v2115_v17  ;;  %2740 = vmatpush.msrb.mxu3 %v3838_v5  ;;  %2806 = vmatpush.msrb.mxu0 %v3862_v46  ;;  %v2333_v14 = vld [vmem:[#allocation2 + $0x12] sm:$0xff]  ;;  %v3824_v17 = vld [vmem:[%s5832_s2 + $0x328] sm:$0xff] }
 0x145   : > { %2153 = vst [vmem:[#allocation2 + $0x76] sm:$0x1] %v2138_v28  ;;  %2656 = vmatpush.msra.mxu2 %v3832_v25  ;;  %v5319_v31 = vld [vmem:[#allocation2 + $0x60] sm:$0xff]  ;;  %v3823_v28 = vld [vmem:[%s5832_s2 + $0x320] sm:$0xff]  ;;  %v3822_v59 = vld [vmem:[%s5832_s2 + $0x318] sm:$0xff] }
 0x146   : > { %2272 = vmatmul.f32.gmra.mxu0 %v5209_v58  ;;  %2316 = vmatmul.f32.gmra.mxu1 %v5211_v0  ;;  %2176 = vst [vmem:[#allocation2 + $0x77] sm:$0x1] %v2161_v61  ;;  %v5268_v37 = vld [vmem:[#allocation2 + $0x61] sm:$0xff]  ;;  %v2335_v50 = vld [vmem:[#allocation2 + $0x32] sm:$0xff] }
 0x147   : > { %2453 = vmatmul.f32.gmra.mxu3 %v5211_v0  ;;  %2199 = vst [vmem:[#allocation2 + $0x78] sm:$0x1] %v2184_v35  ;;  %2657 = vmatpush.msra.mxu2 %v3831_v57  ;;  %v3854_v35 = vld [vmem:[%s5832_s2 + $0x418] sm:$0xff]  ;;  %v2336_v29 = vld [vmem:[#allocation2 + $0x42] sm:$0xff] }
 0x148   : > { %2281 = vmatmul.f32.gmra.mxu2 %v5224_v62  ;;  %2039 = vst [vmem:[#allocation2 + $0x81] sm:$0x1] %v2023_v4  ;;  %2741 = vmatpush.msrb.mxu3 %v3837_v12  ;;  %v3821_v4 = vld [vmem:[%s5832_s2 + $0x310] sm:$0xff]  ;;  %v3933_v6 = vld [vmem:[#allocation2] sm:$0xff] }
 0x149   : > { %2062 = vst [vmem:[#allocation2 + $0x82] sm:$0x1] %v2047_v3  ;;  %2658 = vmatpush.msra.mxu2 %v3830_v18  ;;  %v3851_v3 = vld [vmem:[%s5832_s2 + $0x400] sm:$0xff] }
 0x14a   : > { %2085 = vst [vmem:[#allocation2 + $0x83] sm:$0x1] %v2070_v24  ;;  %2742 = vmatpush.msrb.mxu3 %v3836_v52  ;;  %v3820_v24 = vld [vmem:[%s5832_s2 + $0x308] sm:$0xff] }
 0x14b   : > { %2108 = vst [vmem:[#allocation2 + $0x84] sm:$0x1] %v2093_v39  ;;  %2659 = vmatpush.msra.mxu2 %v3829_v26  ;;  %v2338_v39 = vld [vmem:[#allocation2 + $0x62] sm:$0xff] }
 0x14c   : > { %2131 = vst [vmem:[#allocation2 + $0x85] sm:$0x1] %v2116_v47  ;;  %2743 = vmatpush.msrb.mxu3 %v3835_v16 }
 0x14d   : > { %2154 = vst [vmem:[#allocation2 + $0x86] sm:$0x1] %v2139_v33  ;;  %2660 = vmatpush.msra.mxu2 %v3828_v38  ;;  %v5342_v32 = vld [vmem:[#allocation2 + $0x70] sm:$0xff] }
 0x14e   : > { %2275 = vmatmul.f32.gmra.mxu0 %v5255_v13  ;;  %2319 = vmatmul.f32.gmra.mxu1 %v5257_v55  ;;  %2177 = vst [vmem:[#allocation2 + $0x87] sm:$0x1] %v2162_v41  ;;  %v5298_v63 = vld [vmem:[#allocation2 + $0x71] sm:$0xff] }
 0x14f   : > { %2456 = vmatmul.f32.gmra.mxu3 %v5257_v55  ;;  %2200 = vst [vmem:[#allocation2 + $0x88] sm:$0x1] %v2185_v48  ;;  %2661 = vmatpush.msra.mxu2 %v3827_v7  ;;  %v2339_v47 = vld [vmem:[#allocation2 + $0x72] sm:$0xff] }
 0x150   : > { %2284 = vmatmul.f32.gmra.mxu2 %v5268_v37  ;;  %v2710_v33 = vld [vmem:[#allocation2 + $0x91] sm:$0xff] }
 0x151   : > { %2662 = vmatpush.msra.mxu2 %v3826_v19 }
 0x153   : > { %2663 = vmatpush.msra.mxu2 %v3825_v56 }
 0x155   : > { %2664 = vmatpush.msra.mxu2 %v3824_v17  ;;  %v5365_v61 = vld [vmem:[#allocation2 + $0x80] sm:$0xff] }
 0x156   : > { %2322 = vmatmul.f32.gmra.mxu1 %v5290_v45  ;;  %2521 = vmatmul.f32.vlgmr.msra.gmra.mxu0 %v5161_v36  ;;  %v3861_v36 = vld [vmem:[%s5832_s2 + $0x450] sm:$0xff] }
 0x157   : > { %2459 = vmatmul.f32.gmra.mxu3 %v5290_v45  ;;  %2807 = vmatpush.msrb.mxu0 %v3861_v36  ;;  %v2487_v25 = vld [vmem:[#allocation2 + $0x81] sm:$0xff] }
 0x158   : > { %2287 = vmatmul.f32.gmra.mxu2 %v5298_v63 }
 0x159   : > { %2808 = vmatpush.msrb.mxu0 %v3860_v20  ;;  %2665 = vmatpush.msra.mxu2 %v3823_v28 }
 0x15b   : > { %2809 = vmatpush.msrb.mxu0 %v3859_v53  ;;  %2666 = vmatpush.msra.mxu2 %v3822_v59 }
 0x15d   : > { %2810 = vmatpush.msrb.mxu0 %v3858_v54  ;;  %2667 = vmatpush.msra.mxu2 %v3821_v4 }
 0x15e   : > { %2325 = vmatmul.f32.gmra.mxu1 %v5319_v31  ;;  %2524 = vmatmul.f32.gmra.mxu0 %v5209_v58 }
 0x15f   : > { %2462 = vmatmul.f32.gmra.mxu3 %v5319_v31  ;;  %2811 = vmatpush.msrb.mxu0 %v3857_v9 }
 0x160   : > { %2373 = vmatmul.f32.vlgmr.msrb.gmra.mxu2 %v2332_v43 }
 0x161   : > { %2812 = vmatpush.msrb.mxu0 %v3856_v51  ;;  %2668 = vmatpush.msra.mxu2 %v3820_v24 }
 0x163   : > { %2813 = vmatpush.msrb.mxu0 %v3855_v40  ;;  %2669 = vmatpush.msra.mxu2 %v3819_v22 }
 0x165   : > { %2814 = vmatpush.msrb.mxu0 %v3854_v35 }
 0x166   : > { %2328 = vmatmul.f32.gmra.mxu1 %v5342_v32  ;;  %2527 = vmatmul.f32.gmra.mxu0 %v5255_v13 }
 0x167   : > { %2465 = vmatmul.f32.gmra.mxu3 %v5342_v32  ;;  %2815 = vmatpush.msrb.mxu0 %v3853_v11 }
 0x168   : > { %2376 = vmatmul.f32.gmra.mxu2 %v2333_v14 }
 0x169   : > { %2816 = vmatpush.msrb.mxu0 %v3852_v23 }
 0x16b   : > { %2817 = vmatpush.msrb.mxu0 %v3851_v3 }
 0x16e   : > { %2530 = vmatmul.f32.gmra.mxu0 %v5179_v34  ;;  %2595 = vmatmul.f32.vlgmr.msra.gmra.mxu1 %v2333_v14 }
 0x16f   : > { %2468 = vmatmul.f32.gmra.mxu3 %v5365_v61 }
 0x170   : > { %2379 = vmatmul.f32.gmra.mxu2 %v2334_v10 }
 0x176   : > { %2533 = vmatmul.f32.gmra.mxu0 %v5224_v62  ;;  %2598 = vmatmul.f32.gmra.mxu1 %v2334_v10 }
 0x177   : > { %2744 = vmatmul.f32.vlgmr.msrb.gmra.mxu3 %v5209_v58  ;;  %v2337_v58 = vld [vmem:[#allocation2 + $0x52] sm:$0xff] }
 0x178   : > { %2382 = vmatmul.f32.gmra.mxu2 %v2335_v50 }
 0x17e   : > { %2536 = vmatmul.f32.gmra.mxu0 %v5268_v37  ;;  %2601 = vmatmul.f32.gmra.mxu1 %v2335_v50 }
 0x17f   : > { %2747 = vmatmul.f32.gmra.mxu3 %v5255_v13 }
 0x180   : > { %2385 = vmatmul.f32.gmra.mxu2 %v2336_v29 }
 0x186   : > { %2539 = vmatmul.f32.gmra.mxu0 %v5298_v63  ;;  %2604 = vmatmul.f32.gmra.mxu1 %v2336_v29 }
 0x187   : > { %2750 = vmatmul.f32.gmra.mxu3 %v5179_v34  ;;  %v2561_v34 = vld [vmem:[#allocation2 + $0x82] sm:$0xff] }
 0x188   : > { %2388 = vmatmul.f32.gmra.mxu2 %v2337_v58 }
 0x18e   : > { %2542 = vmatmul.f32.gmra.mxu0 %v2487_v25  ;;  %2607 = vmatmul.f32.gmra.mxu1 %v2337_v58 }
 0x18f   : > { %2753 = vmatmul.f32.gmra.mxu3 %v5224_v62  ;;  %v5404_v62 = vpop.f32.mrf.mxu1 }
 0x190   : > { %2391 = vmatmul.f32.gmra.mxu2 %v2338_v39 }
 0x192   : > { %v2267_v44 = vpop.f32.mrf.mxu0 }
 0x193   : > { %v2309_v23 = vadd.f32 %v5404_v62, %v2267_v44 }
 0x196   : > { %2610 = vmatmul.f32.gmra.mxu1 %v2338_v39  ;;  %2818 = vmatmul.f32.vlgmr.msrb.gmra.mxu0 %v2334_v10 }
 0x197   : > { %2756 = vmatmul.f32.gmra.mxu3 %v5268_v37 }
 0x198   : > { %2394 = vmatmul.f32.gmra.mxu2 %v2339_v47 }
 0x19e   : > { %2613 = vmatmul.f32.gmra.mxu1 %v2339_v47  ;;  %2821 = vmatmul.f32.gmra.mxu0 %v2335_v50 }
 0x19f   : > { %2759 = vmatmul.f32.gmra.mxu3 %v5298_v63 }
 0x1a0   : > { %2670 = vmatmul.f32.vlgmr.msra.gmra.mxu2 %v5163_v1 }
 0x1a6   : > { %2616 = vmatmul.f32.gmra.mxu1 %v2561_v34  ;;  %2824 = vmatmul.f32.gmra.mxu0 %v2336_v29 }
 0x1a7   : > { %2762 = vmatmul.f32.gmra.mxu3 %v2487_v25 }
 0x1a8   : > { %2673 = vmatmul.f32.gmra.mxu2 %v5211_v0 }
 0x1ae   : > { %2827 = vmatmul.f32.gmra.mxu0 %v2337_v58 }
 0x1af   : > { %2765 = vmatmul.f32.gmra.mxu3 %v2710_v33 }
 0x1b0   : > { %2676 = vmatmul.f32.gmra.mxu2 %v5257_v55  ;;  %v2784_v55 = vld [vmem:[#allocation2 + $0x92] sm:$0xff] }
 0x1b3   : > { %v5407_v15 = vpop.f32.mrf.mxu1 }
 0x1b6   : > { %2830 = vmatmul.f32.gmra.mxu0 %v2338_v39 }
 0x1b8   : > { %2679 = vmatmul.f32.gmra.mxu2 %v5290_v45 }
 0x1b9   : > { %v2448_v37 = vpop.f32.mrf.mxu3 }
 0x1bb   : > { %v5410_v60 = vpop.f32.mrf.mxu0  ;;  %v5412_v1 = vpop.f32.mrf.mxu1 }
 0x1be   : > { %2833 = vmatmul.f32.gmra.mxu0 %v2339_v47  ;;  %v2312_v47 = vadd.f32 %v5407_v15, %v5410_v60  ;;  %v5445_v15 = vld [vmem:[%s5834_s4 + $0x2] ss:$0 sm:$0xff] }
 0x1c0   : > { %2682 = vmatmul.f32.gmra.mxu2 %v5319_v31 }
 0x1c2   : > { %v2451_v48 = vpop.f32.mrf.mxu3 }
 0x1c3   : > { %v5415_v0 = vpop.f32.mrf.mxu0  ;;  %v2279_v57 = vpop.f32.mrf.mxu2 }
 0x1c4   : > { %v5417_v41 = vpop.f32.mrf.mxu1 }
 0x1c6   : > { %2836 = vmatmul.f32.gmra.mxu0 %v2561_v34 }
 0x1c8   : > { %2685 = vmatmul.f32.gmra.mxu2 %v5342_v32 }
 0x1ca   : > { %v2454_v12 = vpop.f32.mrf.mxu3 }
 0x1cb   : > { %v5420_v21 = vpop.f32.mrf.mxu0  ;;  %v2282_v13 = vpop.f32.mrf.mxu2 }
 0x1cc   : > { %v2320_v42 = vpop.f32.mrf.mxu1 }
 0x1cd   : > { %v2321_v27 = vadd.f32 %v2320_v42, %v2279_v57 }
 0x1ce   : > { %2839 = vmatmul.f32.gmra.mxu0 %v2784_v55 }
 0x1d0   : > { %2688 = vmatmul.f32.gmra.mxu2 %v5365_v61 }
 0x1d2   : > { %v5425_v31 = vpop.f32.mrf.mxu3 }
 0x1d3   : > { %v2285_v49 = vpop.f32.mrf.mxu2  ;;  %v2522_v30 = vpop.f32.mrf.mxu0 }
 0x1d4   : > { %v2323_v18 = vpop.f32.mrf.mxu1 }
 0x1d5   : > { %v2324_v8 = vadd.f32 %v2323_v18, %v2282_v13 }
 0x1d8   : > { %2691 = vmatmul.f32.gmra.mxu2 %v3933_v6 }
 0x1da   : > { %v2460_v36 = vpop.f32.mrf.mxu3 }
 0x1db   : > { %v2288_v26 = vpop.f32.mrf.mxu2  ;;  %v2525_v5 = vpop.f32.mrf.mxu0 }
 0x1dc   : > { %v2326_v45 = vpop.f32.mrf.mxu1 }
 0x1dd   : > { %v2327_v63 = vadd.f32 %v2326_v45, %v2285_v49  ;;  %v5450_v45 = vld [vmem:[%s5834_s4 + $0x3] ss:$0 sm:$0xff] }
 0x1e2   : > { %v2463_v56 = vpop.f32.mrf.mxu3 }
 0x1e3   : > { %v2374_v2 = vpop.f32.mrf.mxu2  ;;  %v5423_v7 = vpop.f32.mrf.mxu0 }
 0x1e4   : > { %v2329_v38 = vpop.f32.mrf.mxu1  ;;  %v2398_v50 = vadd.f32 %v2374_v2, %v2309_v23 }
 0x1e5   : > { %v2330_v46 = vadd.f32 %v2329_v38, %v2288_v26 }
 0x1e6   : > { %v2472_v25 = vadd.f32 %v2448_v37, %v2398_v50  ;;  %v5482_v50 = vld [vmem:[%s5833_s3 + $0x3] ss:$0 sm:$0xff] }
 0x1e8   : > { %v2546_v13 = vadd.f32 %v2522_v30, %v2472_v25 }
 0x1ea   : > { %v2466_v9 = vpop.f32.mrf.mxu3 }
 0x1eb   : > { %v2377_v52 = vpop.f32.mrf.mxu2  ;;  %v5427_v43 = vpop.f32.mrf.mxu0 }
 0x1ec   : > { %v2596_v40 = vpop.f32.mrf.mxu1  ;;  %v2399_v57 = vadd.f32 %v2377_v52, %v2312_v47 }
 0x1ed   : > { %v2620_v42 = vadd.f32 %v2596_v40, %v2546_v13 }
 0x1ee   : > { %v2473_v49 = vadd.f32 %v2451_v48, %v2399_v57 }
 0x1f0   : > { %v2547_v6 = vadd.f32 %v2525_v5, %v2473_v49  ;;  %v2318_v5 = vadd.f32 %v5417_v41, %v5420_v21  ;;  %v5468_v41 = vld [vmem:[%s5833_s3 + $0x1] ss:$0 sm:$0xff] }
 0x1f1   : > { %v2912_v57 = vrot.slane %v5468_v41, 4 }
 0x1f2   : > { %v2469_v11 = vpop.f32.mrf.mxu3 }
 0x1f3   : > { %v2380_v16 = vpop.f32.mrf.mxu2  ;;  %v2534_v19 = vpop.f32.mrf.mxu0 }
 0x1f4   : > { %v2599_v24 = vpop.f32.mrf.mxu1 }
 0x1f5   : > { %v2621_v48 = vadd.f32 %v2599_v24, %v2547_v6  ;;  %v5506_v6 = vld [vmem:[%s5833_s3 + $0x6] ss:$0 sm:$0xff] }
 0x1fa   : > { %v2745_v34 = vpop.f32.mrf.mxu3 }
 0x1fb   : > { %v2383_v20 = vpop.f32.mrf.mxu2  ;;  %v2537_v32 = vpop.f32.mrf.mxu0 }
 0x1fc   : > { %v2602_v62 = vpop.f32.mrf.mxu1 }
 0x202   : > { %v2748_v30 = vpop.f32.mrf.mxu3 }
 0x203   : > { %v2386_v53 = vpop.f32.mrf.mxu2  ;;  %v2540_v61 = vpop.f32.mrf.mxu0 }
 0x204   : > { %v2402_v14 = vadd.f32 %v2386_v53, %v2321_v27 }
 0x206   : > { %v2476_v54 = vadd.f32 %v2460_v36, %v2402_v14 }
 0x208   : > { %v5429_v17 = vadd.f32 %v2534_v19, %v2476_v54  ;;  %v2401_v19 = vadd.f32 %v2383_v20, %v2318_v5 }
 0x20a   : > { %v2751_v14 = vpop.f32.mrf.mxu3 }
 0x20b   : > { %v2389_v51 = vpop.f32.mrf.mxu2  ;;  %v2543_v22 = vpop.f32.mrf.mxu0 }
 0x20c   : > { %v2403_v28 = vadd.f32 %v2389_v51, %v2324_v8  ;;  %v2315_v8 = vadd.f32 %v5412_v1, %v5415_v0  ;;  %v2605_v0 = vpop.f32.mrf.mxu1  ;;  %v5463_v51 = vld [vmem:[%s5833_s3] ss:$0 sm:$0xff] }
 0x20e   : > { %v2477_v10 = vadd.f32 %v2463_v56, %v2403_v28  ;;  %v2400_v60 = vadd.f32 %v2380_v16, %v2315_v8  ;;  %v5474_v28 = vld [vmem:[%s5833_s3 + $0x2] ss:$0 sm:$0xff]  ;;  %v5500_v8 = vld [vmem:[%s5833_s3 + $0x5] ss:$0 sm:$0xff] }
 0x210   : > { %v5431_v35 = vadd.f32 %v2537_v32, %v2477_v10  ;;  %v2474_v1 = vadd.f32 %v2454_v12, %v2400_v60 }
 0x212   : > { %v2548_v56 = vadd.f32 %v5423_v7, %v2474_v1 }
 0x213   : > { %v2392_v59 = vpop.f32.mrf.mxu2  ;;  %v2819_v44 = vpop.f32.mrf.mxu0 }
 0x214   : > { %v2404_v4 = vadd.f32 %v2392_v59, %v2327_v63  ;;  %v2622_v32 = vadd.f32 %v2602_v62, %v2548_v56  ;;  %v2608_v20 = vpop.f32.mrf.mxu1 }
 0x216   : > { %v2478_v3 = vadd.f32 %v2466_v9, %v2404_v4  ;;  %v2475_v9 = vadd.f32 %v5425_v31, %v2401_v19 }
 0x218   : > { %v5434_v29 = vadd.f32 %v2540_v61, %v2478_v3  ;;  %v2549_v4 = vadd.f32 %v5427_v43, %v2475_v9  ;;  %v5489_v43 = vld [vmem:[%s5833_s3 + $0x4] ss:$0 sm:$0xff] }
 0x21b   : > { %v2395_v58 = vpop.f32.mrf.mxu2  ;;  %v2822_v38 = vpop.f32.mrf.mxu0 }
 0x21c   : > { %v2405_v39 = vadd.f32 %v2395_v58, %v2330_v46  ;;  %v2623_v58 = vadd.f32 %v2605_v0, %v2549_v4  ;;  %v5508_v1 = vpop.f32.mrf.mxu1 }
 0x21e   : > { %v2479_v33 = vadd.f32 %v2469_v11, %v2405_v39 }
 0x220   : > { %v5438_v55 = vadd.f32 %v2543_v22, %v2479_v33  ;;  %v2895_v33 = vrot.slane %v5463_v51, 4 }
 0x223   : > { %v2671_v27 = vpop.f32.mrf.mxu2  ;;  %v2825_v31 = vpop.f32.mrf.mxu0 }
 0x224   : > { %v2695_v18 = vadd.f32 %v2671_v27, %v2620_v42  ;;  %v2754_v42 = vpop.f32.mrf.mxu3 }
 0x226   : > { %v2769_v37 = vadd.f32 %v2745_v34, %v2695_v18  ;;  %v2929_v18 = vrot.slane %v5474_v28, 4 }
 0x228   : > { %v2843_v26 = vadd.f32 %v2819_v44, %v2769_v37 }
 0x22a   : > { %v2853_v63 = vmul.f32 %v5445_v15, %v2843_v26 }
 0x22b   : > { %v2674_v2 = vpop.f32.mrf.mxu2 }
 0x22c   : > { %v2863_v46 = vadd.f32 %v5450_v45, %v2853_v63  ;;  %v2696_v52 = vadd.f32 %v2674_v2, %v2621_v48 }
 0x22e   : > { %v2871_v16 = vmax.f32 %v2863_v46, 0.0  ;;  %v2770_v36 = vadd.f32 %v2748_v30, %v2696_v52  ;;  %v2946_v52 = vrot.slane %v5482_v50, 4 }
 0x230   : > { %2880 = vst.msk [vmem:[#allocation3] sm:$0xff] %vm2879_vm1, %v2871_v16  ;;  %v2844_v53 = vadd.f32 %v2822_v38, %v2770_v36  ;;  %v2828_v16 = vpop.f32.mrf.mxu0 }
 0x232   : > { %v2854_v12 = vmul.f32 %v5445_v15, %v2844_v53  ;;  %v5519_v53 = vld [vmem:[%s5833_s3 + $0x7] ss:$0 sm:$0xff] }
 0x233   : > { %v2677_v54 = vpop.f32.mrf.mxu2 }
 0x234   : > { %v2864_v21 = vadd.f32 %v5450_v45, %v2854_v12  ;;  %v2697_v7 = vadd.f32 %v2677_v54, %v2622_v32 }
 0x236   : > { %v2872_v40 = vmax.f32 %v2864_v21, 0.0  ;;  %v2771_v61 = vadd.f32 %v2751_v14, %v2697_v7  ;;  %v2624_v14 = vadd.f32 %v2608_v20, %v5429_v17  ;;  %v2963_v21 = vrot.slane %v5489_v43, 4 }
 0x237   : > { %v2888_v10 = vld [vmem:[#allocation3] sm:$0xf]  ;;  %v2956_v34 = vld [vmem:[#allocation3 + $0x4] sm:$0xf] }
 0x238   : > { %v2905_v59 = vld [vmem:[#allocation3 + $0x1] sm:$0xf]  ;;  %v2897_v23 = vmul.f32 %v5463_v51, %v2888_v10  ;;  %2881 = vst.msk [vmem:[#allocation3 + $0x8] sm:$0xff] %vm2879_vm1, %v2872_v40  ;;  %v2845_v24 = vadd.f32 %v2825_v31, %v2771_v61  ;;  %v2965_v60 = vmul.f32 %v5489_v43, %v2956_v34  ;;  %v5530_v40 = vld [vmem:[%s5833_s3 + $0x8] ss:$0 sm:$0xff] }
 0x239   : > { %v2922_v11 = vld [vmem:[#allocation3 + $0x2] sm:$0xf]  ;;  %v2914_v3 = vmul.f32 %v5468_v41, %v2905_v59 }
 0x23a   : > { %v2939_v22 = vld [vmem:[#allocation3 + $0x3] sm:$0xf]  ;;  %v2931_v39 = vmul.f32 %v5474_v28, %v2922_v11  ;;  %v2855_v47 = vmul.f32 %v5445_v15, %v2845_v24 }
 0x23b   : > { %v2918_v25 = vadd.f32 %v2914_v3, %v2897_v23  ;;  %v2680_v13 = vpop.f32.mrf.mxu2  ;;  %v2948_v44 = vmul.f32 %v5482_v50, %v2939_v22  ;;  %v5539_v3 = vld [vmem:[%s5833_s3 + $0x9] ss:$0 sm:$0xff]  ;;  %v2757_v22 = vpop.f32.mrf.mxu3 }
 0x23c   : > { %v2865_v27 = vadd.f32 %v5450_v45, %v2855_v47  ;;  %v2698_v49 = vadd.f32 %v2680_v13, %v2623_v58 }
 0x23d   : > { %v2935_v62 = vadd.f32 %v2931_v39, %v2918_v25  ;;  %v2981_v39 = vrot.slane %v5500_v8, 4 }
 0x23e   : > { %v2873_v30 = vmax.f32 %v2865_v27, 0.0  ;;  %v2772_v26 = vadd.f32 %v2754_v42, %v2698_v49  ;;  %v5550_v27 = vld [vmem:[%s5833_s3 + $0xa] ss:$0 sm:$0xff] }
 0x23f   : > { %v2952_v37 = vadd.f32 %v2948_v44, %v2935_v62  ;;  %v2889_v48 = vld [vmem:[#allocation3 + $0x8] sm:$0xf]  ;;  %v2957_v59 = vld [vmem:[#allocation3 + $0xc] sm:$0xf]  ;;  %v2998_v44 = vrot.slane %v5506_v6, 4 }
 0x240   : > { %v2906_v63 = vld [vmem:[#allocation3 + $0x9] sm:$0xf]  ;;  %v2898_v38 = vmul.f32 %v2895_v33, %v2889_v48  ;;  %v2846_v32 = vadd.f32 %v2828_v16, %v2772_v26  ;;  %2882 = vst.msk [vmem:[#allocation3 + $0x10] sm:$0xff] %vm2879_vm1, %v2873_v30  ;;  %v2966_v34 = vmul.f32 %v2963_v21, %v2957_v59  ;;  %v2831_v16 = vpop.f32.mrf.mxu0 }
 0x241   : > { %v2923_v2 = vld [vmem:[#allocation3 + $0xa] sm:$0xf]  ;;  %v2969_v0 = vadd.f32 %v2965_v60, %v2952_v37  ;;  %v2915_v46 = vmul.f32 %v2912_v57, %v2906_v63  ;;  %v2614_v63 = vpop.f32.mrf.mxu1 }
 0x242   : > { %v2974_v5 = vld [vmem:[#allocation3 + $0x8] sm:$0xf]  ;;  %v2932_v54 = vmul.f32 %v2929_v18, %v2923_v2  ;;  %v2856_v61 = vmul.f32 %v5445_v15, %v2846_v32  ;;  %v3042_v25 = vld [vmem:[#allocation3 + $0xc] sm:$0xf] }
 0x243   : > { %v2940_v36 = vld [vmem:[#allocation3 + $0xb] sm:$0xf]  ;;  %v2983_v19 = vmul.f32 %v5500_v8, %v2974_v5  ;;  %v2919_v12 = vadd.f32 %v2915_v46, %v2898_v38  ;;  %v2683_v17 = vpop.f32.mrf.mxu2  ;;  %v3051_v60 = vmul.f32 %v5539_v3, %v3042_v25  ;;  %v3015_v46 = vrot.slane %v5519_v53, 4  ;;  %v5559_v5 = vld [vmem:[%s5833_s3 + $0xb] ss:$0 sm:$0xff] }
 0x244   : > { %v2991_v56 = vld [vmem:[#allocation3 + $0x9] sm:$0xf]  ;;  %v2949_v10 = vmul.f32 %v2946_v52, %v2940_v36  ;;  %v2699_v24 = vadd.f32 %v2683_v17, %v2624_v14  ;;  %v2866_v47 = vadd.f32 %v5450_v45, %v2856_v61 }
 0x245   : > { %v3008_v9 = vld [vmem:[#allocation3 + $0xa] sm:$0xf]  ;;  %v2987_v7 = vadd.f32 %v2983_v19, %v2969_v0  ;;  %v3000_v31 = vmul.f32 %v5506_v6, %v2991_v56  ;;  %v2936_v20 = vadd.f32 %v2932_v54, %v2919_v12 }
 0x246   : > { %v3025_v11 = vld [vmem:[#allocation3 + $0xb] sm:$0xf]  ;;  %v3017_v23 = vmul.f32 %v5519_v53, %v3008_v9  ;;  %v2773_v62 = vadd.f32 %v2757_v22, %v2699_v24  ;;  %v2874_v36 = vmax.f32 %v2866_v47, 0.0 }
 0x247   : > { %v3004_v4 = vadd.f32 %v3000_v31, %v2987_v7  ;;  %v2953_v58 = vadd.f32 %v2949_v10, %v2936_v20  ;;  %v3034_v42 = vmul.f32 %v5530_v40, %v3025_v11  ;;  %v2890_v30 = vld [vmem:[#allocation3 + $0x10] sm:$0xf]  ;;  %v3032_v31 = vrot.slane %v5530_v40, 4 }
 0x248   : > { %v2907_v26 = vld [vmem:[#allocation3 + $0x11] sm:$0xf]  ;;  %v2899_v2 = vmul.f32 %v5463_v51, %v2890_v30  ;;  %v2847_v54 = vadd.f32 %v2831_v16, %v2773_v62  ;;  %2883 = vst.msk [vmem:[#allocation3 + $0x18] sm:$0xff] %vm2879_vm1, %v2874_v36  ;;  %v3049_v30 = vrot.slane %v5539_v3, 4 }
 0x249   : > { %v3021_v13 = vadd.f32 %v3017_v23, %v3004_v4  ;;  %v2970_v49 = vadd.f32 %v2966_v34, %v2953_v58  ;;  %v2924_v48 = vld [vmem:[#allocation3 + $0x12] sm:$0xf]  ;;  %v2916_v0 = vmul.f32 %v5468_v41, %v2907_v26  ;;  %v5571_v4 = vld [vmem:[%s5833_s3 + $0xc] ss:$0 sm:$0xff] }
 0x24a   : > { %v2975_v38 = vld [vmem:[#allocation3 + $0x10] sm:$0xf]  ;;  %v2933_v7 = vmul.f32 %v5474_v28, %v2924_v48  ;;  %v3043_v16 = vld [vmem:[#allocation3 + $0x14] sm:$0xf] }
 0x24b   : > { %v3038_v37 = vadd.f32 %v3034_v42, %v3021_v13  ;;  %v2941_v56 = vld [vmem:[#allocation3 + $0x13] sm:$0xf]  ;;  %v2984_v32 = vmul.f32 %v2981_v39, %v2975_v38  ;;  %v2920_v9 = vadd.f32 %v2916_v0, %v2899_v2  ;;  %v5581_v13 = vld [vmem:[%s5833_s3 + $0xd] ss:$0 sm:$0xff]  ;;  %v2857_v42 = vmul.f32 %v5445_v15, %v2847_v54  ;;  %v2686_v62 = vpop.f32.mrf.mxu2  ;;  %v2617_v54 = vpop.f32.mrf.mxu1 }
 0x24c   : > { %v2992_v14 = vld [vmem:[#allocation3 + $0x11] sm:$0xf]  ;;  %v2950_v24 = vmul.f32 %v5482_v50, %v2941_v56  ;;  %v2760_v56 = vpop.f32.mrf.mxu3 }
 0x24d   : > { %v3055_v19 = vadd.f32 %v3051_v60, %v3038_v37  ;;  %v3009_v12 = vld [vmem:[#allocation3 + $0x12] sm:$0xf]  ;;  %v2988_v20 = vadd.f32 %v2984_v32, %v2970_v49  ;;  %v3001_v10 = vmul.f32 %v2998_v44, %v2992_v14  ;;  %v2937_v23 = vadd.f32 %v2933_v7, %v2920_v9 }
 0x24e   : > { %v3060_v61 = vld [vmem:[#allocation3 + $0x10] sm:$0xf]  ;;  %v3018_v22 = vmul.f32 %v3015_v46, %v3009_v12  ;;  %v2625_v49 = vadd.f32 %v5508_v1, %v5431_v35  ;;  %v2958_v37 = vld [vmem:[#allocation3 + $0x14] sm:$0xf]  ;;  %v2867_v36 = vadd.f32 %v5450_v45, %v2857_v42  ;;  %v5596_v12 = vld [vmem:[%s5833_s3 + $0xe] ss:$0 sm:$0xff] }
 0x24f   : > { %v3077_v17 = vld [vmem:[#allocation3 + $0x11] sm:$0xf]  ;;  %v3069_v11 = vmul.f32 %v5550_v27, %v3060_v61  ;;  %v3005_v25 = vadd.f32 %v3001_v10, %v2988_v20  ;;  %v2954_v48 = vadd.f32 %v2950_v24, %v2937_v23  ;;  %v2967_v32 = vmul.f32 %v5489_v43, %v2958_v37  ;;  %v2891_v24 = vld [vmem:[#allocation3 + $0x18] sm:$0xf] }
 0x250   : > { %v3026_v59 = vld [vmem:[#allocation3 + $0x13] sm:$0xf]  ;;  %v3086_v34 = vmul.f32 %v5559_v5, %v3077_v17  ;;  %v3067_v7 = vrot.slane %v5550_v27, 4  ;;  %v3084_v61 = vrot.slane %v5559_v5, 4  ;;  %v3101_v17 = vrot.slane %v5571_v4, 4 }
 0x251   : > { %v3094_v58 = vld [vmem:[#allocation3 + $0x12] sm:$0xf]  ;;  %v3073_v47 = vadd.f32 %v3069_v11, %v3055_v19  ;;  %v3035_v60 = vmul.f32 %v3032_v31, %v3026_v59  ;;  %v3022_v2 = vadd.f32 %v3018_v22, %v3005_v25  ;;  %v2700_v19 = vadd.f32 %v2686_v62, %v2625_v49  ;;  %v2908_v22 = vld [vmem:[#allocation3 + $0x19] sm:$0xf]  ;;  %v2834_v25 = vpop.f32.mrf.mxu0 }
 0x252   : > { %v3111_v26 = vld [vmem:[#allocation3 + $0x13] sm:$0xf]  ;;  %v3103_v38 = vmul.f32 %v5571_v4, %v3094_v58  ;;  %v5602_v10 = vadd.f32 %v2614_v63, %v5434_v29  ;;  %v2971_v59 = vadd.f32 %v2967_v32, %v2954_v48  ;;  %v3052_v11 = vmul.f32 %v3049_v30, %v3043_v16  ;;  %v2925_v58 = vld [vmem:[#allocation3 + $0x1a] sm:$0xf]  ;;  %v5614_v29 = vld [vmem:[%s5833_s3 + $0xf] ss:$0 sm:$0xff] }
 0x253   : > { %v3090_v0 = vadd.f32 %v3086_v34, %v3073_v47  ;;  %v3039_v35 = vadd.f32 %v3035_v60, %v3022_v2  ;;  %v3120_v14 = vmul.f32 %v5581_v13, %v3111_v26  ;;  %v3128_v9 = vld [vmem:[#allocation3 + $0x14] sm:$0xf]  ;;  %v2774_v20 = vadd.f32 %v2760_v56, %v2700_v19  ;;  %v2976_v42 = vld [vmem:[#allocation3 + $0x18] sm:$0xf] }
 0x254   : > { %v2900_v47 = vmul.f32 %v2895_v33, %v2891_v24  ;;  %v2917_v34 = vmul.f32 %v2912_v57, %v2908_v22  ;;  %v3118_v62 = vrot.slane %v5581_v13, 4  ;;  %v2875_v63 = vmax.f32 %v2867_v36, 0.0  ;;  %v2942_v51 = vld [vmem:[#allocation3 + $0x1b] sm:$0xf] }
 0x255   : > { %v3107_v1 = vadd.f32 %v3103_v38, %v3090_v0  ;;  %v5617_v49 = vadd.f32 %v2617_v54, %v5438_v55  ;;  %v3056_v37 = vadd.f32 %v3052_v11, %v3039_v35  ;;  %v3137_v60 = vmul.f32 %v5596_v12, %v3128_v9  ;;  %v2993_v41 = vld [vmem:[#allocation3 + $0x19] sm:$0xf]  ;;  %v5633_v9 = vld [vmem:[%s5833_s3 + $0x10] ss:$0 sm:$0xff] }
 0x256   : > { %v2985_v33 = vmul.f32 %v5500_v8, %v2976_v42  ;;  %v3010_v57 = vld [vmem:[#allocation3 + $0x1a] sm:$0xf]  ;;  %v2921_v26 = vadd.f32 %v2917_v34, %v2900_v47  ;;  %v2934_v48 = vmul.f32 %v2929_v18, %v2925_v58  ;;  %v3135_v38 = vrot.slane %v5596_v12, 4  ;;  %2884 = vst.msk [vmem:[#allocation3 + $0x20] sm:$0xff] %vm2879_vm1, %v2875_v63  ;;  %v2763_v42 = vpop.f32.mrf.mxu3 }
 0x257   : > { %v3124_v23 = vadd.f32 %v3120_v14, %v3107_v1  ;;  %v3061_v2 = vld [vmem:[#allocation3 + $0x18] sm:$0xf]  ;;  %v2848_v16 = vadd.f32 %v2834_v25, %v2774_v20  ;;  %v3002_v19 = vmul.f32 %v5506_v6, %v2993_v41  ;;  %v2689_v1 = vpop.f32.mrf.mxu2  ;;  %v2951_v28 = vmul.f32 %v2946_v52, %v2942_v51 }
 0x258   : > { %v3078_v0 = vld [vmem:[#allocation3 + $0x19] sm:$0xf]  ;;  %v2989_v55 = vadd.f32 %v2985_v33, %v2971_v59  ;;  %v3070_v32 = vmul.f32 %v3067_v7, %v3061_v2  ;;  %v2938_v14 = vadd.f32 %v2934_v48, %v2921_v26  ;;  %v3019_v18 = vmul.f32 %v5519_v53, %v3010_v57  ;;  %v5655_v48 = vld [vmem:[%s5833_s3 + $0x11] ss:$0 sm:$0xff]  ;;  %v5660_v2 = vld [vmem:[%s5833_s3 + $0x12] ss:$0 sm:$0xff] }
 0x259   : > { %v3141_v36 = vadd.f32 %v3137_v60, %v3124_v23  ;;  %v3027_v56 = vld [vmem:[#allocation3 + $0x1b] sm:$0xf]  ;;  %v3153_v20 = vrot.slane %v5614_v29, 4  ;;  %v3087_v24 = vmul.f32 %v3084_v61, %v3078_v0  ;;  %v3170_v34 = vrot.slane %v5633_v9, 4 }
 0x25a   : > { %v3095_v35 = vld [vmem:[#allocation3 + $0x1a] sm:$0xf]  ;;  %v3006_v11 = vadd.f32 %v3002_v19, %v2989_v55  ;;  %v3074_v23 = vadd.f32 %v3070_v32, %v3056_v37  ;;  %v2955_v52 = vadd.f32 %v2951_v28, %v2938_v14  ;;  %v3036_v58 = vmul.f32 %v5530_v40, %v3027_v56  ;;  %v5667_v19 = vld [vmem:[%s5833_s3 + $0x13] ss:$0 sm:$0xff]  ;;  %v2837_v56 = vpop.f32.mrf.mxu0 }
 0x25b   : > { %v3146_v54 = vld [vmem:[#allocation3 + $0x18] sm:$0xf]  ;;  %v2959_v59 = vld [vmem:[#allocation3 + $0x1c] sm:$0xf]  ;;  %v3104_v25 = vmul.f32 %v3101_v17, %v3095_v35  ;;  %v2858_v41 = vmul.f32 %v5445_v15, %v2848_v16  ;;  %v2701_v0 = vadd.f32 %v2689_v1, %v5602_v10  ;;  %v3943_v35 = vmov 64  }
 0x25c   : > { %v3112_v22 = vld [vmem:[#allocation3 + $0x1b] sm:$0xf]  ;;  %v3155_v50 = vmul.f32 %v5614_v29, %v3146_v54  ;;  %v3023_v60 = vadd.f32 %v3019_v18, %v3006_v11  ;;  %v3091_v51 = vadd.f32 %v3087_v24, %v3074_v23  ;;  %v2968_v57 = vmul.f32 %v2963_v21, %v2959_v59  ;;  %3902 = vset.pattern.permute.xlu0 %v3943_v35 }
 0x25d   : > { %v3163_v47 = vld [vmem:[#allocation3 + $0x19] sm:$0xf]  ;;  %v3121_v26 = vmul.f32 %v3118_v62, %v3112_v22  ;;  %v2868_v32 = vadd.f32 %v5450_v45, %v2858_v41  ;;  %v3187_v1 = vrot.slane %v5655_v48, 4  ;;  %v3204_v18 = vrot.slane %v5660_v2, 4 }
 0x25e   : > { %v3044_v37 = vld [vmem:[#allocation3 + $0x1c] sm:$0xf]  ;;  %v3159_v33 = vadd.f32 %v3155_v50, %v3141_v36  ;;  %v3338_v63 = vld [vmem:[%s5834_s4 + $0x3] sm:$0x1]  ;;  %v3040_v16 = vadd.f32 %v3036_v58, %v3023_v60  ;;  %v3108_v36 = vadd.f32 %v3104_v25, %v3091_v51  ;;  %v3172_v43 = vmul.f32 %v5633_v9, %v3163_v47  ;;  %v2977_v47 = vld [vmem:[#allocation3 + $0x20] sm:$0xf] }
 0x25f   : > { %v3129_v55 = vld [vmem:[#allocation3 + $0x1c] sm:$0xf]  ;;  %v3053_v14 = vmul.f32 %v5539_v3, %v3044_v37  ;;  %3341 = vperm.xlu0 %3902, %v3338_v63   ;;  %v2775_v54 = vadd.f32 %v2763_v42, %v2701_v0  ;;  %v2972_v59 = vadd.f32 %v2968_v57, %v2955_v52  ;;  %v3221_v24 = vrot.slane %v5667_v19, 4  ;;  %v2692_v22 = vpop.f32.mrf.mxu2  ;;  %v2994_v60 = vld [vmem:[#allocation3 + $0x21] sm:$0xf] }
 0x260   : > { %v3180_v21 = vld [vmem:[#allocation3 + $0x1a] sm:$0xf]  ;;  %v3125_v11 = vadd.f32 %v3121_v26, %v3108_v36  ;;  %v3176_v23 = vadd.f32 %v3172_v43, %v3159_v33  ;;  %v3138_v58 = vmul.f32 %v3135_v38, %v3129_v55  ;;  %v3011_v37 = vld [vmem:[#allocation3 + $0x22] sm:$0xf]  ;;  %v2986_v52 = vmul.f32 %v2981_v39, %v2977_v47 }
 0x261   : > { %v3197_v28 = vld [vmem:[#allocation3 + $0x1b] sm:$0xf]  ;;  %v3057_v50 = vadd.f32 %v3053_v14, %v3040_v16  ;;  %v3189_v25 = vmul.f32 %v5655_v48, %v3180_v21  ;;  %v2849_v51 = vadd.f32 %v2837_v56, %v2775_v54  ;;  %v3028_v33 = vld [vmem:[#allocation3 + $0x23] sm:$0xf]  ;;  %v2876_v57 = vmax.f32 %v2868_v32, 0.0 }
 0x262   : > { %v3214_v10 = vld [vmem:[#allocation3 + $0x1c] sm:$0xf]  ;;  %v3206_v41 = vmul.f32 %v5660_v2, %v3197_v28  ;;  %v3062_v63 = vld [vmem:[#allocation3 + $0x20] sm:$0xf]  ;;  %v3142_v26 = vadd.f32 %v3138_v58, %v3125_v11  ;;  %v3045_v0 = vld [vmem:[#allocation3 + $0x24] sm:$0xf]  ;;  %v2702_v21 = vadd.f32 %v2692_v22, %v5617_v49  ;;  %v2990_v35 = vadd.f32 %v2986_v52, %v2972_v59  ;;  %v2766_v28 = vpop.f32.mrf.mxu3  ;;  %v2840_v40 = vpop.f32.mrf.mxu0 }
 0x263   : > { %v3223_v42 = vmul.f32 %v5667_v19, %v3214_v10  ;;  %v3071_v16 = vmul.f32 %v5550_v27, %v3062_v63  ;;  %v3079_v36 = vld [vmem:[#allocation3 + $0x21] sm:$0xf]  ;;  %v2859_v43 = vmul.f32 %v5445_v15, %v2849_v51  ;;  %v3193_v56 = vadd.f32 %v3189_v25, %v3176_v23  ;;  %2885 = vst.msk [vmem:[#allocation3 + $0x28] sm:$0xff] %vm2879_vm1, %v2876_v57  ;;  %v5711_v52 = vld [vmem:[%s5833_s3 + $0x15] ss:$0 sm:$0xff] }
 0x264   : > { %v3096_v55 = vld [vmem:[#allocation3 + $0x22] sm:$0xf]  ;;  %v3003_v14 = vmul.f32 %v2998_v44, %v2994_v60  ;;  %v3020_v8 = vmul.f32 %v3015_v46, %v3011_v37  ;;  %v3037_v10 = vmul.f32 %v3032_v31, %v3028_v33  ;;  %v3088_v11 = vmul.f32 %v5559_v5, %v3079_v36  ;;  %v5702_v46 = vld [vmem:[%s5833_s3 + $0x14] ss:$0 sm:$0xff] }
 0x265   : > { %v3147_v39 = vld [vmem:[#allocation3 + $0x20] sm:$0xf]  ;;  %v3075_v54 = vadd.f32 %v3071_v16, %v3057_v50  ;;  %v3054_v6 = vmul.f32 %v3049_v30, %v3045_v0  ;;  %v3105_v53 = vmul.f32 %v5571_v4, %v3096_v55  ;;  %v3130_v22 = vld [vmem:[#allocation3 + $0x24] sm:$0xf]  ;;  %v2869_v3 = vadd.f32 %v5450_v45, %v2859_v43 }
 0x266   : > { %v3164_v32 = vld [vmem:[#allocation3 + $0x21] sm:$0xf]  ;;  %v3156_v49 = vmul.f32 %v3153_v20, %v3147_v39  ;;  %v3007_v23 = vadd.f32 %v3003_v14, %v2990_v35  ;;  %v2776_v30 = vadd.f32 %v2766_v28, %v2702_v21  ;;  %v3210_v33 = vadd.f32 %v3206_v41, %v3193_v56 }
 0x267   : > { %v3113_v58 = vld [vmem:[#allocation3 + $0x23] sm:$0xf]  ;;  %v3173_v44 = vmul.f32 %v3170_v34, %v3164_v32  ;;  %v3092_v31 = vadd.f32 %v3088_v11, %v3075_v54  ;;  %v3139_v55 = vmul.f32 %v5596_v12, %v3130_v22 }
 0x268   : > { %v3181_v59 = vld [vmem:[#allocation3 + $0x22] sm:$0xf]  ;;  %v3160_v50 = vadd.f32 %v3156_v49, %v3142_v26  ;;  %v3024_v47 = vadd.f32 %v3020_v8, %v3007_v23  ;;  %v3122_v60 = vmul.f32 %v5581_v13, %v3113_v58  ;;  %v2877_v26 = vmax.f32 %v2869_v3, 0.0 }
 0x269   : > { %v3232_v25 = vld [vmem:[#allocation3 + $0x20] sm:$0xf]  ;;  %v3190_v37 = vmul.f32 %v3187_v1, %v3181_v59  ;;  %v3109_v63 = vadd.f32 %v3105_v53, %v3092_v31  ;;  %v2850_v0 = vadd.f32 %v2840_v40, %v2776_v30  ;;  %v3227_v43 = vadd.f32 %v3223_v42, %v3210_v33  ;;  %v3215_v39 = vld [vmem:[#allocation3 + $0x24] sm:$0xf]  ;;  %v5723_v42 = vld [vmem:[%s5833_s3 + $0x16] ss:$0 sm:$0xff] }
 0x26a   : > { %v3198_v51 = vld [vmem:[#allocation3 + $0x23] sm:$0xf]  ;;  %v3177_v57 = vadd.f32 %v3173_v44, %v3160_v50  ;;  %v3041_v36 = vadd.f32 %v3037_v10, %v3024_v47  ;;  %v3241_v21 = vmul.f32 %v5702_v46, %v3232_v25  ;;  %2886 = vst.msk [vmem:[#allocation3 + $0x30] sm:$0xff] %vm2879_vm1, %v2877_v26  ;;  %v3063_v54 = vld [vmem:[#allocation3 + $0x28] sm:$0xf]  ;;  %v3224_v23 = vmul.f32 %v3221_v24, %v3215_v39 }
 0x26b   : > { %v3249_v16 = vld [vmem:[#allocation3 + $0x21] sm:$0xf]  ;;  %v3126_v35 = vadd.f32 %v3122_v60, %v3109_v63  ;;  %v3207_v8 = vmul.f32 %v3204_v18, %v3198_v51  ;;  %v2860_v41 = vmul.f32 %v5445_v15, %v2850_v0  ;;  %v3080_v11 = vld [vmem:[#allocation3 + $0x29] sm:$0xf]  ;;  %v5729_v15 = vld [vmem:[%s5833_s3 + $0x17] ss:$0 sm:$0xff] }
 0x26c   : > { %v3194_v14 = vadd.f32 %v3190_v37, %v3177_v57  ;;  %v3058_v56 = vadd.f32 %v3054_v6, %v3041_v36  ;;  %v3245_v32 = vadd.f32 %v3241_v21, %v3227_v43  ;;  %v3258_v28 = vmul.f32 %v5711_v52, %v3249_v16  ;;  %v3266_v59 = vld [vmem:[#allocation3 + $0x22] sm:$0xf]  ;;  %v3148_v53 = vld [vmem:[#allocation3 + $0x28] sm:$0xf]  ;;  %v3131_v33 = vld [vmem:[#allocation3 + $0x2c] sm:$0xf] }
 0x26d   : > { %v3143_v10 = vadd.f32 %v3139_v55, %v3126_v35  ;;  %v2870_v58 = vadd.f32 %v5450_v45, %v2860_v41  ;;  %v3072_v6 = vmul.f32 %v3067_v7, %v3063_v54  ;;  %v3239_v44 = vrot.slane %v5702_v46, 4  ;;  %v3283_v31 = vld [vmem:[#allocation3 + $0x23] sm:$0xf]  ;;  %v3097_v22 = vld [vmem:[#allocation3 + $0x2a] sm:$0xf] }
 0x26e   : > { %v3211_v49 = vadd.f32 %v3207_v8, %v3194_v14  ;;  %v3262_v40 = vadd.f32 %v3258_v28, %v3245_v32  ;;  %v3157_v45 = vmul.f32 %v5614_v29, %v3148_v53  ;;  %v3165_v50 = vld [vmem:[#allocation3 + $0x29] sm:$0xf]  ;;  %v3256_v25 = vrot.slane %v5711_v52, 4  ;;  %v5751_v35 = vld [vmem:[%s5833_s3 + $0x18] ss:$0 sm:$0xff] }
 0x26f   : > { %v3273_v3 = vrot.slane %v5723_v42, 4  ;;  %v3076_v30 = vadd.f32 %v3072_v6, %v3058_v56  ;;  %v3089_v47 = vmul.f32 %v3084_v61, %v3080_v11  ;;  %v3114_v60 = vld [vmem:[#allocation3 + $0x2b] sm:$0xf]  ;;  %v3275_v51 = vmul.f32 %v5723_v42, %v3266_v59 }
 0x270   : > { %v3182_v27 = vld [vmem:[#allocation3 + $0x2a] sm:$0xf]  ;;  %v3228_v37 = vadd.f32 %v3224_v23, %v3211_v49  ;;  %v3161_v63 = vadd.f32 %v3157_v45, %v3143_v10  ;;  %v3174_v57 = vmul.f32 %v5633_v9, %v3165_v50  ;;  %v2878_v26 = vmax.f32 %v2870_v58, 0.0 }
 0x271   : > { %v3233_v7 = vld [vmem:[#allocation3 + $0x28] sm:$0xf]  ;;  %v3290_v16 = vrot.slane %v5729_v15, 4  ;;  %v3093_v36 = vadd.f32 %v3089_v47, %v3076_v30  ;;  %v3106_v55 = vmul.f32 %v3101_v17, %v3097_v22  ;;  %v3279_v21 = vadd.f32 %v3275_v51, %v3262_v40  ;;  %v3300_v17 = vld [vmem:[#allocation3 + $0x24] sm:$0xf] }
 0x272   : > { %v3250_v0 = vld [vmem:[#allocation3 + $0x29] sm:$0xf]  ;;  %v3242_v61 = vmul.f32 %v3239_v44, %v3233_v7  ;;  %v3123_v14 = vmul.f32 %v3118_v62, %v3114_v60  ;;  %v3178_v8 = vadd.f32 %v3174_v57, %v3161_v63  ;;  %v3191_v39 = vmul.f32 %v5655_v48, %v3182_v27  ;;  %v3149_v28 = vld [vmem:[#allocation3 + $0x30] sm:$0xf]  ;;  %2887 = vst.msk [vmem:[#allocation3 + $0x38] sm:$0xff] %vm2879_vm1, %v2878_v26 }
 0x273   : > { %v3199_v5 = vld [vmem:[#allocation3 + $0x2b] sm:$0xf]  ;;  %v3292_v4 = vmul.f32 %v5729_v15, %v3283_v31  ;;  %v3110_v41 = vadd.f32 %v3106_v55, %v3093_v36  ;;  %v3140_v56 = vmul.f32 %v3135_v38, %v3131_v33  ;;  %v3259_v54 = vmul.f32 %v3256_v25, %v3250_v0  ;;  %v3234_v23 = vld [vmem:[#allocation3 + $0x30] sm:$0xf] }
 0x274   : > { %v3267_v43 = vld [vmem:[#allocation3 + $0x2a] sm:$0xf]  ;;  %v3246_v10 = vadd.f32 %v3242_v61, %v3228_v37  ;;  %v3195_v13 = vadd.f32 %v3191_v39, %v3178_v8  ;;  %v3208_v62 = vmul.f32 %v5660_v2, %v3199_v5  ;;  %v3307_v38 = vrot.slane %v5751_v35, 4  ;;  %v3166_v31 = vld [vmem:[#allocation3 + $0x31] sm:$0xf] }
 0x275   : > { %v3216_v32 = vld [vmem:[#allocation3 + $0x2c] sm:$0xf]  ;;  %v3276_v11 = vmul.f32 %v3273_v3, %v3267_v43  ;;  %v3296_v49 = vadd.f32 %v3292_v4, %v3279_v21  ;;  %v3127_v59 = vadd.f32 %v3123_v14, %v3110_v41  ;;  %v3309_v6 = vmul.f32 %v5751_v35, %v3300_v17  ;;  %v3251_v27 = vld [vmem:[#allocation3 + $0x31] sm:$0xf] }
 0x276   : > { %v3284_v58 = vld [vmem:[#allocation3 + $0x2b] sm:$0xf]  ;;  %v3263_v12 = vadd.f32 %v3259_v54, %v3246_v10  ;;  %v3225_v53 = vmul.f32 %v5667_v19, %v3216_v32  ;;  %v3158_v40 = vmul.f32 %v3153_v20, %v3149_v28  ;;  %v3212_v45 = vadd.f32 %v3208_v62, %v3195_v13  ;;  %v3183_v7 = vld [vmem:[#allocation3 + $0x32] sm:$0xf] }
 0x277   : > { %v3301_v22 = vld [vmem:[#allocation3 + $0x2c] sm:$0xf]  ;;  %v3144_v50 = vadd.f32 %v3140_v56, %v3127_v59  ;;  %v3293_v47 = vmul.f32 %v3290_v16, %v3284_v58  ;;  %v3313_v60 = vadd.f32 %v3309_v6, %v3296_v49  ;;  %v3243_v51 = vmul.f32 %v5702_v46, %v3234_v23  ;;  %v3268_v57 = vld [vmem:[#allocation3 + $0x32] sm:$0xf] }
 0x278   : > { %v3280_v30 = vadd.f32 %v3276_v11, %v3263_v12  ;;  %v3229_v37 = vadd.f32 %v3225_v53, %v3212_v45  ;;  %v3175_v63 = vmul.f32 %v3170_v34, %v3166_v31  ;;  %v3310_v20 = vmul.f32 %v3307_v38, %v3301_v22  ;;  %v3200_v26 = vld [vmem:[#allocation3 + $0x33] sm:$0xf]  ;;  %v3355_v53 = vld [vmem:[%s5835_s5 + $0x10] sm:$0xff] }
 0x279   : > { %v3162_v33 = vadd.f32 %v3158_v40, %v3144_v50  ;;  %3321 = vst [vmem:[#allocation1] ss:$2 sm:$0xff] %v3313_v60  ;;  %v3260_v36 = vmul.f32 %v5711_v52, %v3251_v27  ;;  %v3192_v5 = vmul.f32 %v3187_v1, %v3183_v7  ;;  %v3285_v43 = vld [vmem:[#allocation3 + $0x33] sm:$0xf]  ;;  %v3277_v8 = vmul.f32 %v5723_v42, %v3268_v57  ;;  %v3235_v4 = vld [vmem:[#allocation3 + $0x38] sm:$0xf] }
 0x27a   : > { %v3297_v29 = vadd.f32 %v3293_v47, %v3280_v30  ;;  %v3247_v0 = vadd.f32 %v3243_v51, %v3229_v37  ;;  %v3217_v21 = vld [vmem:[#allocation3 + $0x34] sm:$0xf]  ;;  %v3209_v34 = vmul.f32 %v3204_v18, %v3200_v26  ;;  %v3294_v41 = vmul.f32 %v5729_v15, %v3285_v43  ;;  %v3252_v56 = vld [vmem:[#allocation3 + $0x39] sm:$0xf]  ;;  %v3358_v15 = vld [vmem:[%s5835_s5 + $0x28] sm:$0xff] }
 0x27b   : > { %v3179_v55 = vadd.f32 %v3175_v63, %v3162_v33  ;;  %v3302_v39 = vld [vmem:[#allocation3 + $0x34] sm:$0xf]  ;;  %v3226_v48 = vmul.f32 %v3221_v24, %v3217_v21  ;;  %v3244_v10 = vmul.f32 %v3239_v44, %v3235_v4  ;;  %v3269_v2 = vld [vmem:[#allocation3 + $0x3a] sm:$0xf]  ;;  %v3261_v13 = vmul.f32 %v3256_v25, %v3252_v56  ;;  %3412 = vmatpush.msrb.mxu2 %v3358_v15 }
 0x27c   : > { %v3314_v61 = vadd.f32 %v3310_v20, %v3297_v29  ;;  %v3264_v14 = vadd.f32 %v3260_v36, %v3247_v0  ;;  %v3311_v28 = vmul.f32 %v5751_v35, %v3302_v39  ;;  %v3286_v11 = vld [vmem:[#allocation3 + $0x3b] sm:$0xf]  ;;  %v3278_v49 = vmul.f32 %v3273_v3, %v3269_v2  ;;  %v3359_v3 = vld [vmem:[%s5835_s5 + $0x30] sm:$0xff]  ;;  %v3360_v37 = vld [vmem:[%s5835_s5 + $0x38] sm:$0xff] }
 0x27d   : > { %v3196_v9 = vadd.f32 %v3192_v5, %v3179_v55  ;;  %v3303_v35 = vld [vmem:[#allocation3 + $0x3c] sm:$0xf]  ;;  %v3295_v46 = vmul.f32 %v3290_v16, %v3286_v11  ;;  %v3944_v6 = vmov 0   ;;  %v3945_v40 = vmov 839922192   ;;  %3432 = vmatpush.msra.mxu3 %v3359_v3  ;;  %v3356_v51 = vld [vmem:[%s5835_s5 + $0x18] sm:$0xff] }
 0x27e   : > { %3323 = vst [vmem:[#allocation1 + $0x1] ss:$2 sm:$0xff] %v3314_v61  ;;  %v3281_v17 = vadd.f32 %v3277_v8, %v3264_v14  ;;  %v3312_v23 = vmul.f32 %v3307_v38, %v3303_v35  ;;  %3903 = vset.pattern.permute.xlu1 %v3944_v6  ;;  %3904 = vset.pattern.permute.xlu2 %v3944_v6  ;;  %v3357_v42 = vld [vmem:[%s5835_s5 + $0x20] sm:$0xff]  ;;  %v3354_v38 = vld [vmem:[%s5835_s5 + $0x8] sm:$0xff]  ;;  %v3345_v31 = vunpack.c.l.s4 %v3945_v40  ;;  %v3369_v33 = vlaneseq }
 0x27f   : > { %v3213_v1 = vadd.f32 %v3209_v34, %v3196_v9  ;;  %3905 = vset.pattern.permute.xlu0 %v3944_v6  ;;  %3392 = vmatpush.msrb.mxu1 %v3357_v42  ;;  %v3353_v16 = vld [vmem:[%s5835_s5] sm:$0xff] }
 0x280   : > { %v3298_v32 = vadd.f32 %v3294_v41, %v3281_v17  ;;  %3413 = vmatpush.msrb.mxu2 %v3354_v38  ;;  %3433 = vmatpush.msra.mxu3 %v3355_v53  ;;  %v3346_v22 = vunpack.c.0.s8 %v3345_v31  ;;  %v3370_v63 = vand.u32 127, %v3369_v33  ;;  %vm3474_vm6 = vcmp.lt.s32.totalorder %v3369_v33, 400 }
 0x281   : > { %v3230_v54 = vadd.f32 %v3226_v48, %v3213_v1  ;;  %3393 = vmatpush.msrb.mxu1 %v3353_v16 }
 0x282   : > { %v3315_v18 = vadd.f32 %v3311_v28, %v3298_v32  ;;  %v3372_v29 = vadd.s32 4294967288, %v3370_v63 }
 0x283   : > { %v3248_v62 = vadd.f32 %v3244_v10, %v3230_v54  ;;  %3452 = vmatpush.msra.mxu1 %v3360_v37 }
 0x284   : > { %3325 = vst [vmem:[#allocation1 + $0x10] ss:$2 sm:$0xff] %v3315_v18 }
 0x285   : > { %v3328_v58 = vld.sshfl [vmem:[#allocation1] sm:$0xff pattern:$0x75316420]  ;;  %v3265_v24 = vadd.f32 %v3261_v13, %v3248_v62  ;;  %3453 = vmatpush.msra.mxu1 %v3356_v51 }
 0x286   : > { %v3332_v19 = vsel %vm2879_vm1, %v3328_v58, 0.0 }
 0x287   : > { %v3282_v59 = vadd.f32 %v3278_v49, %v3265_v24 }
 0x289   : > { %3333 = vadd.xlane.f32.xlu0 %v3332_v19  ;;  %v3299_v44 = vadd.f32 %v3295_v46, %v3282_v59 }
 0x28b   : > { %v3316_v52 = vadd.f32 %v3312_v23, %v3299_v44 }
 0x28d   : > { %3327 = vst [vmem:[#allocation1 + $0x11] ss:$2 sm:$0xff] %v3316_v52 }
 0x294   : > { %v3329_v25 = vld.sshfl [vmem:[#allocation1 + $0x10] sm:$0xff pattern:$0x75316420] }
 0x295   : > { %v3335_v12 = vsel %vm2879_vm1, %v3329_v25, 0.0 }
 0x296   : > { %3336 = vadd.xlane.f32.xlu1 %v3335_v12 }
 0x2d1   : > { %v3342_v45 = vpop.permute.xlu0 %3341 }
 0x2d2   : > { %v3347_v50 = vperm.slane %v3342_v45, %v3346_v22 }
 0x2d4   : > { %v3349_v30 = vperm.slane %v3347_v50, 0 }
 0x2fc   : > { %v3334_v47 = vpop.xlane.xlu0 %3333 }
 0x2fd   : > { %v3351_v60 = vadd.f32 %v3349_v30, %v3334_v47 }
 0x2ff   : > { %3364 = vperm.xlu1 %3903, %v3351_v60  }
 0x309   : > { %v3337_v27 = vpop.xlane.xlu1 %3336 }
 0x30a   : > { %v3352_v7 = vadd.f32 %v3349_v30, %v3337_v27 }
 0x30c   : > { %3367 = vperm.xlu2 %3904, %v3352_v7  }
 0x366   : > { %v3368_v20 = vpop.permute.xlu2 %3367 }
 0x367   : > { %v3373_v26 = vperm.slane %v3368_v20, %v3372_v29 }
 0x371   : > { %v3365_v57 = vpop.permute.xlu1 %3364 }
 0x372   : > { %v3371_v0 = vperm.slane %v3365_v57, %v3370_v63 }
 0x374   : > { %v3375_v36 = vsel %vm3374_vm2, %v3373_v26, %v3371_v0 }
 0x375   : > { %3867 = vmatmul.msk.f32.vlgmr.msrb.gmra.mxu1 %vm285_vm0, %v3375_v36  ;;  %3868 = vmatmul.msk.f32.vlgmr.msrb.gmra.mxu2 %vm285_vm0, %v3375_v36 }
 0x376   : > { %3869 = vmatmul.msk.f32.vlgmr.msra.gmra.mxu3 %vm285_vm0, %v3375_v36 }
 0x37d   : > { %3870 = vmatmul.msk.f32.vlgmr.msra.gmra.mxu1 %vm285_vm0, %v3375_v36 }
 0x3f2   : > { %v3395_v55 = vpop.f32.mrf.mxu1 }
 0x3f8   : > { %v3415_v5 = vpop.f32.mrf.mxu2 }
 0x3f9   : > { %v3462_v61 = vrot.slane %v3415_v5, 7  ;;  %v3435_v43 = vpop.f32.mrf.mxu3 }
 0x3fa   : > { %v3455_v21 = vpop.f32.mrf.mxu1  ;;  %v3463_v14 = vrot.slane %v3435_v43, 6 }
 0x3fb   : > { %v3464_v8 = vrot.slane %v3455_v21, 5  ;;  %v3466_v9 = vsel %vm3465_vm3, %v3395_v55, %v3462_v61 }
 0x3fd   : > { %v3468_v34 = vsel %vm3467_vm4, %v3463_v14, %v3464_v8 }
 0x3fe   : > { %v3470_v39 = vsel %vm3469_vm5, %v3466_v9, %v3468_v34 }
 0x3ff   : > { %3476 = vst.msk [vmem:[%s249_s9] sm:$0xf] %vm3474_vm6, %v3470_v39 }
 0x400 PF: > { %s16_s21 = sadd.s32 1, %s3940_s21  }
 0x401   : > { %p13_p4 = scmp.ge.s32.totalorder %s16_s21, 4  }
 0x403   :  { %15 = sbr.rel (!%p13_p4) target bundleno = 1 (0x1), region = 100 }

</bundles_post_ra>
